<compile_context>
chip_gen: v6e
topology: v6e:2x2x1
jax: 0.10.0
libtpu: 0.0.40
codegen_flags: <defaults>
</compile_context>

<pallas_src>
import functools

import numpy as np
import jax
import jax.numpy as jnp
from jax.experimental import pallas as pl
from jax.experimental.pallas import tpu as pltpu

C_PAD = 128                  # channels padded to one full lane width
ACT_DTYPE = jnp.float32      # activation ("canvas") dtype in HBM
MXU_DTYPE = jnp.bfloat16     # matmul operand dtype


def _round_up(x, m):
    return ((x + m - 1) // m) * m


# ---------------------------------------------------------------------------
# Kernel 1: stem conv (7x7 / stride 2) as a tiled GEMM, fused folded-BN + ReLU
# ---------------------------------------------------------------------------
def _stem_gemm_kernel(a_ref, b_ref, bias_ref, o_ref, acc_ref):
    @pl.when(pl.program_id(2) == 0)
    def _init():
        acc_ref[...] = jnp.zeros_like(acc_ref)

    acc_ref[...] += jnp.dot(a_ref[...], b_ref[...],
                            preferred_element_type=jnp.float32)

    @pl.when(pl.program_id(2) == pl.num_programs(2) - 1)
    def _finalize():
        o_ref[...] = jnp.maximum(acc_ref[...] + bias_ref[...], 0.0
                                 ).astype(o_ref.dtype)


def stem_conv_gemm(a, b, bias):
    """a:[N,M,K] bf16 (im2col rows), b:[K,Cp] bf16 (BN scale folded), bias:[1,Cp]."""
    N, M, K = a.shape
    Cp = b.shape[1]
    tile_m = min(256, _round_up(M, 8))
    m_pad = _round_up(M, tile_m)
    tile_k = min(512, K)
    assert K % tile_k == 0 and Cp % 128 == 0
    if m_pad != M:
        a = jnp.pad(a, ((0, 0), (0, m_pad - M), (0, 0)))
    grid = (N, m_pad // tile_m, K // tile_k)
    out = pl.pallas_call(
        _stem_gemm_kernel,
        out_shape=jax.ShapeDtypeStruct((N, m_pad, Cp), ACT_DTYPE),
        grid=grid,
        in_specs=[
            pl.BlockSpec((None, tile_m, tile_k), lambda n, m, k: (n, m, k)),
            pl.BlockSpec((tile_k, Cp), lambda n, m, k: (k, 0)),
            pl.BlockSpec((1, Cp), lambda n, m, k: (0, 0)),
        ],
        out_specs=pl.BlockSpec((None, tile_m, Cp), lambda n, m, k: (n, m, 0)),
        scratch_shapes=[pltpu.VMEM((tile_m, Cp), jnp.float32)],
        compiler_params=pltpu.CompilerParams(
            dimension_semantics=("parallel", "parallel", "arbitrary")),
    )(a, b, bias)
    return out[:, :M, :]


def _im2col(x_nhwc, kh, kw, stride, pad):
    """Wrapper-side patch extraction for the 3-channel stem only."""
    N, H, W, C = x_nhwc.shape
    xp = jnp.pad(x_nhwc, ((0, 0), (pad, pad), (pad, pad), (0, 0)))
    Ho = (H + 2 * pad - kh) // stride + 1
    Wo = (W + 2 * pad - kw) // stride + 1
    cols = []
    for i in range(kh):
        for j in range(kw):
            cols.append(xp[:, i:i + stride * Ho:stride, j:j + stride * Wo:stride, :])
    patches = jnp.stack(cols, axis=3).reshape(N, Ho, Wo, kh * kw * C)
    return patches.reshape(N, Ho * Wo, kh * kw * C), (Ho, Wo)


# ---------------------------------------------------------------------------
# Kernel 2: fused 3x3/s2/p1 maxpool over the flattened padded canvas
# ---------------------------------------------------------------------------
def _maxpool9_kernel(x_ref, o_ref, *, wrow, tile_r):
    t0 = pl.multiple_of(pl.program_id(1) * tile_r, 8)
    m = x_ref[pl.ds(t0, tile_r), :]
    for i in range(3):
        for j in range(3):
            if i == 0 and j == 0:
                continue
            m = jnp.maximum(m, x_ref[pl.ds(t0 + i * wrow + j, tile_r), :])
    o_ref[...] = m


def maxpool_3x3_s2_p1(x_nhwc):
    # Inputs are post-ReLU (>= 0), so 0-padding is equivalent to -inf padding.
    N, H, W, C = x_nhwc.shape
    Hp, Wp = H + 2, W + 2
    Ho, Wo = (H + 2 - 3) // 2 + 1, (W + 2 - 3) // 2 + 1
    canvas = jnp.pad(x_nhwc, ((0, 0), (1, 1), (1, 1), (0, 0))).reshape(N, Hp * Wp, C)
    tile_r = min(512, _round_up(Hp * Wp, 8))
    r_out = _round_up(Hp * Wp, tile_r)
    r_in = _round_up(r_out + 2 * Wp + 2, 8)
    xin = jnp.pad(canvas, ((0, 0), (0, r_in - Hp * Wp), (0, 0)))
    out = pl.pallas_call(
        functools.partial(_maxpool9_kernel, wrow=Wp, tile_r=tile_r),
        out_shape=jax.ShapeDtypeStruct((N, r_out, C), x_nhwc.dtype),
        grid=(N, r_out // tile_r),
        in_specs=[pl.BlockSpec((None, r_in, C), lambda n, m: (n, 0, 0))],
        out_specs=pl.BlockSpec((None, tile_r, C), lambda n, m: (n, m, 0)),
        compiler_params=pltpu.CompilerParams(
            dimension_semantics=("parallel", "parallel")),
    )(xin)
    # valid pool outputs sit at canvas rows r = 2h*Wp + 2w
    out = out[:, :Hp * Wp, :].reshape(N, Hp, Wp, C)
    return out[:, 0:2 * Ho:2, 0:2 * Wo:2, :]


# ---------------------------------------------------------------------------
# Kernel 3: 3x3/s1/p1 conv on the flattened canvas, 9 shifted MXU dots,
#           fused folded-BN bias (+ residual) + ReLU epilogue.
# ---------------------------------------------------------------------------
def _conv3x3_kernel(*refs, wrow, tile_r, relu, has_res):
    if has_res:
        x_ref, w_ref, b_ref, m_ref, res_ref, o_ref = refs
    else:
        x_ref, w_ref, b_ref, m_ref, o_ref = refs
        res_ref = None
    cp = o_ref.shape[-1]
    t0 = pl.multiple_of(pl.program_id(1) * tile_r, 8)
    acc = jnp.zeros((tile_r, cp), jnp.float32)
    for i in range(3):
        for j in range(3):
            a = x_ref[pl.ds(t0 + i * wrow + j, tile_r), :].astype(MXU_DTYPE)
            acc = acc + jnp.dot(a, w_ref[i * 3 + j],
                                preferred_element_type=jnp.float32)
    y = (acc + b_ref[...]) * m_ref[...]          # mask keeps the zero pad ring
    if has_res:
        y = y + res_ref[...]
    if relu:
        y = jnp.maximum(y, 0.0)
    o_ref[...] = y.astype(o_ref.dtype)


def conv3x3_canvas(canvas, w_taps, bias, mask, *, wrow, relu, tile_r, residual=None):
    """canvas:[N,R,Cp] f32 (zero ring / zero tail rows), w_taps:[9,Cp,Cp] bf16."""
    N, R, Cp = canvas.shape
    L = wrow + 1                      # leading/trailing slack so all taps are >= 0
    xin = jnp.pad(canvas, ((0, 0), (L, L), (0, 0)))
    r_in = R + 2 * wrow + 2
    in_specs = [
        pl.BlockSpec((None, r_in, Cp), lambda n, m: (n, 0, 0)),
        pl.BlockSpec((9, Cp, Cp), lambda n, m: (0, 0, 0)),
        pl.BlockSpec((1, Cp), lambda n, m: (0, 0)),
        pl.BlockSpec((tile_r, 1), lambda n, m: (m, 0)),
    ]
    args = [xin, w_taps, bias, mask]
    if residual is not None:
        in_specs.append(pl.BlockSpec((None, tile_r, Cp), lambda n, m: (n, m, 0)))
        args.append(residual)
    kernel = functools.partial(_conv3x3_kernel, wrow=wrow, tile_r=tile_r,
                               relu=relu, has_res=residual is not None)
    return pl.pallas_call(
        kernel,
        out_shape=jax.ShapeDtypeStruct((N, R, Cp), ACT_DTYPE),
        grid=(N, R // tile_r),
        in_specs=in_specs,
        out_specs=pl.BlockSpec((None, tile_r, Cp), lambda n, m: (n, m, 0)),
        compiler_params=pltpu.CompilerParams(
            dimension_semantics=("parallel", "parallel")),
    )(*args)


def basic_block(canvas, blk, mask, *, wrow, tile_r):
    h = conv3x3_canvas(canvas, blk["w1"], blk["b1"], mask,
                       wrow=wrow, relu=True, tile_r=tile_r)
    # residual add + final ReLU fused into the second conv's epilogue
    return conv3x3_canvas(h, blk["w2"], blk["b2"], mask,
                          wrow=wrow, relu=True, tile_r=tile_r, residual=canvas)


# ---------------------------------------------------------------------------
# Parameter folding / padding (done once, outside the hot path)
# ---------------------------------------------------------------------------
def _fold_bn(w_oihw, bn, eps=1e-5):
    gamma, beta, mean, var = bn
    scale = gamma / jnp.sqrt(var + eps)
    bias = beta - mean * scale
    return w_oihw * scale[:, None, None, None], bias


def prepare_params(params):
    def stem(w, bn):
        wf, bias = _fold_bn(w, bn)
        co, ci, kh, kw = wf.shape
        k = kh * kw * ci
        kp = _round_up(k, 128)
        wm = jnp.transpose(wf, (2, 3, 1, 0)).reshape(k, co)
        wm = jnp.pad(wm, ((0, kp - k), (0, C_PAD - co))).astype(MXU_DTYPE)
        b = jnp.pad(bias, (0, C_PAD - co)).astype(jnp.float32).reshape(1, C_PAD)
        return wm, b

    def block_conv(w, bn):
        wf, bias = _fold_bn(w, bn)
        co, ci, kh, kw = wf.shape
        wt = jnp.transpose(wf, (2, 3, 1, 0)).reshape(kh * kw, ci, co)
        wt = jnp.pad(wt, ((0, 0), (0, C_PAD - ci), (0, C_PAD - co))).astype(MXU_DTYPE)
        b = jnp.pad(bias, (0, C_PAD - co)).astype(jnp.float32).reshape(1, C_PAD)
        return wt, b

    sw, sb = stem(params["conv1_w"], params["bn1"])
    prep = {"stem_w": sw, "stem_b": sb}
    for name in ("block1", "block2"):
        bp = params[name]
        w1, b1 = block_conv(bp["conv1_w"], bp["bn1"])
        w2, b2 = block_conv(bp["conv2_w"], bp["bn2"])
        prep[name] = {"w1": w1, "b1": b1, "w2": w2, "b2": b2}
    return prep


def _canvas_mask(hp, wp, r):
    m = np.zeros((r, 1), np.float32)
    for p in range(1, hp - 1):
        for q in range(1, wp - 1):
            m[p * wp + q, 0] = 1.0
    return jnp.asarray(m)


# ---------------------------------------------------------------------------
# Forward pass: conv7x7/s2 + BN + ReLU -> maxpool3x3/s2 -> 2 BasicBlocks
# ---------------------------------------------------------------------------
def new_model_forward(x_nchw, prep, *, c_out):
    N = x_nchw.shape[0]
    x = jnp.transpose(x_nchw, (0, 2, 3, 1)).astype(jnp.float32)        # NHWC

    # --- stem conv as tiled bf16 GEMM with fused folded-BN + ReLU ---
    a, (Ho, Wo) = _im2col(x, 7, 7, 2, 3)                               # [N, Ho*Wo, 147]
    kp = prep["stem_w"].shape[0]
    a = jnp.pad(a, ((0, 0), (0, 0), (0, kp - a.shape[-1]))).astype(MXU_DTYPE)
    y = stem_conv_gemm(a, prep["stem_w"], prep["stem_b"])              # [N, Ho*Wo, 128]
    y = y.reshape(N, Ho, Wo, C_PAD)

    # --- maxpool 3x3 / stride 2 / pad 1 (fused 9-way max kernel) ---
    y = maxpool_3x3_s2_p1(y)                                           # [N, H, W, 128]

    # --- layer1 (two BasicBlocks) on a flattened zero-padded canvas ---
    _, H, W, _ = y.shape
    Hp, Wp = H + 2, W + 2
    tile_r = min(256, _round_up(Hp * Wp, 8))
    R = _round_up(Hp * Wp, tile_r)
    canvas = jnp.pad(y, ((0, 0), (1, 1), (1, 1), (0, 0))).reshape(N, Hp * Wp, C_PAD)
    canvas = jnp.pad(canvas, ((0, 0), (0, R - Hp * Wp), (0, 0)))
    mask = _canvas_mask(Hp, Wp, R)
    canvas = basic_block(canvas, prep["block1"], mask, wrow=Wp, tile_r=tile_r)
    canvas = basic_block(canvas, prep["block2"], mask, wrow=Wp, tile_r=tile_r)

    feat = canvas[:, :Hp * Wp, :].reshape(N, Hp, Wp, C_PAD)
    feat = feat[:, 1:1 + H, 1:1 + W, :c_out]                           # drop pad ring + pad channels
    # TODO(synk): keep activations bf16 end-to-end once unaligned packed-sublane
    # tap loads are verified on all target chips; fp32 canvases are used here for safety.
    return jnp.transpose(feat, (0, 3, 1, 2))                           # NHWC -> NCHW


# ---------------------------------------------------------------------------
# Deterministic synthetic parameters (frozen pretrained backbone, eval-mode BN)
# ---------------------------------------------------------------------------
def _bn_params(key, c):
    k1, k2, k3 = jax.random.split(key, 3)
    gamma = 1.0 + 0.1 * jax.random.normal(k1, (c,), jnp.float32)
    beta = 0.1 * jax.random.normal(k2, (c,), jnp.float32)
    mean = 0.1 * jax.random.normal(k3, (c,), jnp.float32)
    var = jnp.full((c,), 0.9, jnp.float32)
    return (gamma, beta, mean, var)


def init_params(key, cin=3, width=16):
    ks = jax.random.split(key, 16)

    def conv_w(k, cout, cin_, kh, kw):
        fan_in = cin_ * kh * kw
        return jax.random.normal(k, (cout, cin_, kh, kw), jnp.float32) / jnp.sqrt(fan_in)

    return {
        "conv1_w": conv_w(ks[0], width, cin, 7, 7),
        "bn1": _bn_params(ks[1], width),
        "block1": {
            "conv1_w": conv_w(ks[2], width, width, 3, 3),
            "bn1": _bn_params(ks[3], width),
            "conv2_w": conv_w(ks[4], width, width, 3, 3),
            "bn2": _bn_params(ks[5], width),
        },
        "block2": {
            "conv1_w": conv_w(ks[6], width, width, 3, 3),
            "bn1": _bn_params(ks[7], width),
            "conv2_w": conv_w(ks[8], width, width, 3, 3),
            "bn2": _bn_params(ks[9], width),
        },
    }


if __name__ == "__main__":
    key = jax.random.PRNGKey(0)
    kx, kp = jax.random.split(key)
    # Small shapes: batch=2, channels=3 (RGB), spatial=16.
    x = jax.random.normal(kx, (2, 3, 16, 16), jnp.float32)
    params = init_params(kp, cin=3, width=16)
    prep = prepare_params(params)

    fwd = jax.jit(functools.partial(new_model_forward, c_out=16))
    out = fwd(x, prep)
    out = jax.block_until_ready(out)
    assert out.shape == (2, 16, 4, 4), out.shape
    assert bool(jnp.all(jnp.isfinite(out)))
    print("KERNEL_OK")
</pallas_src>

<mosaic_0001>
module attributes {stable_mosaic.version = 11 : i64} {
  func.func @_stem_gemm_kernel(%arg0: i32, %arg1: i32, %arg2: i32, %arg3: memref<1x64x256xbf16, #tpu.memory_space<vmem>>, %arg4: memref<256x128xbf16, #tpu.memory_space<vmem>>, %arg5: memref<1x128xf32, #tpu.memory_space<vmem>>, %arg6: memref<1x64x128xf32, #tpu.memory_space<vmem>>, %arg7: memref<64x128xf32, #tpu.memory_space<vmem>>) attributes {dimension_semantics = [#tpu.dimension_semantics<parallel>, #tpu.dimension_semantics<parallel>, #tpu.dimension_semantics<arbitrary>], iteration_bounds = array<i64: 2, 1, 1>, scalar_prefetch = 0 : i64, scratch_operands = 1 : i64, tpu.core_type = #tpu.core_type<tc>, window_params = [{transform_indices = @transform_0, window_bounds = array<i64: 1, 64, 256>}, {transform_indices = @transform_1, window_bounds = array<i64: 256, 128>}, {pipeline_mode = #tpu.pipeline_mode<synchronous>, transform_indices = @transform_2, window_bounds = array<i64: 1, 128>}, {transform_indices = @transform_3, window_bounds = array<i64: 1, 64, 128>}]} {
    %c0_i32 = arith.constant 0 : i32
    %0 = arith.cmpi eq, %arg2, %c0_i32 : i32
    %1 = arith.extui %0 : i1 to i32
    %c0_i32_0 = arith.constant 0 : i32
    %2 = arith.cmpi ne, %1, %c0_i32_0 : i32
    scf.if %2 {
      %cst_11 = arith.constant 0.000000e+00 : f32
      %13 = vector.broadcast %cst_11 : f32 to vector<64x128xf32>
      %c0_12 = arith.constant 0 : index
      %c0_13 = arith.constant 0 : index
      %14 = vector.load %arg7[%c0_12, %c0_13] : memref<64x128xf32, #tpu.memory_space<vmem>>, vector<64x128xf32>
      tpu.vector_store %arg7[%c0_12, %c0_13], %13 {strides = array<i32>} : memref<64x128xf32, #tpu.memory_space<vmem>>, vector<64x128xf32>,
    } else {
    }
    %c0 = arith.constant 0 : index
    %c0_1 = arith.constant 0 : index
    %3 = vector.load %arg7[%c0, %c0_1] : memref<64x128xf32, #tpu.memory_space<vmem>>, vector<64x128xf32>
    %c0_2 = arith.constant 0 : index
    %c0_3 = arith.constant 0 : index
    %c0_4 = arith.constant 0 : index
    %4 = vector.load %arg3[%c0_2, %c0_3, %c0_4] : memref<1x64x256xbf16, #tpu.memory_space<vmem>>, vector<1x64x256xbf16>
    %5 = vector.shape_cast %4 : vector<1x64x256xbf16> to vector<64x256xbf16>
    %c0_5 = arith.constant 0 : index
    %c0_6 = arith.constant 0 : index
    %6 = vector.load %arg4[%c0_5, %c0_6] : memref<256x128xbf16, #tpu.memory_space<vmem>>, vector<256x128xbf16>
    %cst = arith.constant dense<0.000000e+00> : vector<64x128xf32>
    %7 = tpu.matmul %5, %6, %cst {dimension_numbers = #tpu.dot_dimension_numbers<[1], [0], [0], [1], [0, 0, 1, 1], [], []>} : vector<64x256xbf16>, vector<256x128xbf16>, vector<64x128xf32> -> vector<64x128xf32>
    %8 = arith.addf %3, %7 : vector<64x128xf32>
    %c0_7 = arith.constant 0 : index
    %c0_8 = arith.constant 0 : index
    %9 = vector.load %arg7[%c0_7, %c0_8] : memref<64x128xf32, #tpu.memory_space<vmem>>, vector<64x128xf32>
    tpu.vector_store %arg7[%c0_7, %c0_8], %8 {strides = array<i32>} : memref<64x128xf32, #tpu.memory_space<vmem>>, vector<64x128xf32>,
    %c0_i32_9 = arith.constant 0 : i32
    %10 = arith.cmpi eq, %arg2, %c0_i32_9 : i32
    %11 = arith.extui %10 : i1 to i32
    %c0_i32_10 = arith.constant 0 : i32
    %12 = arith.cmpi ne, %11, %c0_i32_10 : i32
    scf.if %12 {
      %c0_11 = arith.constant 0 : index
      %c0_12 = arith.constant 0 : index
      %13 = vector.load %arg7[%c0_11, %c0_12] : memref<64x128xf32, #tpu.memory_space<vmem>>, vector<64x128xf32>
      %c0_13 = arith.constant 0 : index
      %c0_14 = arith.constant 0 : index
      %14 = vector.load %arg5[%c0_13, %c0_14] : memref<1x128xf32, #tpu.memory_space<vmem>>, vector<1x128xf32>
      %15 = vector.broadcast %14 : vector<1x128xf32> to vector<64x128xf32>
      %16 = arith.addf %13, %15 : vector<64x128xf32>
      %cst_15 = arith.constant 0.000000e+00 : f32
      %17 = vector.broadcast %cst_15 : f32 to vector<64x128xf32>
      %18 = arith.maximumf %16, %17 : vector<64x128xf32>
      %c0_16 = arith.constant 0 : index
      %c0_17 = arith.constant 0 : index
      %c0_18 = arith.constant 0 : index
      %19 = vector.load %arg6[%c0_16, %c0_17, %c0_18] : memref<1x64x128xf32, #tpu.memory_space<vmem>>, vector<1x64x128xf32>
      %20 = vector.shape_cast %19 : vector<1x64x128xf32> to vector<64x128xf32>
      %21 = vector.shape_cast %18 : vector<64x128xf32> to vector<1x64x128xf32>
      tpu.vector_store %arg6[%c0_16, %c0_17, %c0_18], %21 {strides = array<i32>} : memref<1x64x128xf32, #tpu.memory_space<vmem>>, vector<1x64x128xf32>,
    } else {
    }
    return
  }
  func.func @transform_0(%arg0: i32, %arg1: i32, %arg2: i32) -> (i32, i32, i32) {
    %c0_i32 = arith.constant 0 : i32
    return %arg0, %arg1, %arg2 : i32, i32, i32
  }
  func.func @transform_1(%arg0: i32, %arg1: i32, %arg2: i32) -> (i32, i32) {
    %c0_i32 = arith.constant 0 : i32
    %c0_i32_0 = arith.constant 0 : i32
    return %arg2, %c0_i32 : i32, i32
  }
  func.func @transform_2(%arg0: i32, %arg1: i32, %arg2: i32) -> (i32, i32) {
    %c0_i32 = arith.constant 0 : i32
    %c0_i32_0 = arith.constant 0 : i32
    %c0_i32_1 = arith.constant 0 : i32
    return %c0_i32, %c0_i32_0 : i32, i32
  }
  func.func @transform_3(%arg0: i32, %arg1: i32, %arg2: i32) -> (i32, i32, i32) {
    %c0_i32 = arith.constant 0 : i32
    %c0_i32_0 = arith.constant 0 : i32
    return %arg0, %arg1, %c0_i32 : i32, i32, i32
  }
}

module attributes {stable_mosaic.version = 11 : i64} {
  func.func @_maxpool9_kernel(%arg0: i32, %arg1: i32, %arg2: memref<1x128x128xf32, #tpu.memory_space<vmem>>, %arg3: memref<1x104x128xf32, #tpu.memory_space<vmem>>) attributes {dimension_semantics = [#tpu.dimension_semantics<parallel>, #tpu.dimension_semantics<parallel>], iteration_bounds = array<i64: 2, 1>, scalar_prefetch = 0 : i64, scratch_operands = 0 : i64, tpu.core_type = #tpu.core_type<tc>, window_params = [{transform_indices = @transform_0, window_bounds = array<i64: 1, 128, 128>}, {transform_indices = @transform_1, window_bounds = array<i64: 1, 104, 128>}]} {
    %c104_i32 = arith.constant 104 : i32
    %0 = arith.muli %arg1, %c104_i32 : i32
    %1 = tpu.assume_multiple %0, 8 : i32
    %c0 = arith.constant 0 : index
    %2 = arith.index_cast %1 : i32 to index
    %c0_0 = arith.constant 0 : index
    %3 = vector.load %arg2[%c0, %2, %c0_0] : memref<1x128x128xf32, #tpu.memory_space<vmem>>, vector<1x104x128xf32>
    %4 = vector.shape_cast %3 : vector<1x104x128xf32> to vector<104x128xf32>
    %c0_i32 = arith.constant 0 : i32
    %5 = arith.addi %1, %c0_i32 : i32
    %c1_i32 = arith.constant 1 : i32
    %6 = arith.addi %5, %c1_i32 : i32
    %c0_1 = arith.constant 0 : index
    %7 = arith.index_cast %6 : i32 to index
    %c0_2 = arith.constant 0 : index
    %8 = vector.load %arg2[%c0_1, %7, %c0_2] : memref<1x128x128xf32, #tpu.memory_space<vmem>>, vector<1x104x128xf32>
    %9 = vector.shape_cast %8 : vector<1x104x128xf32> to vector<104x128xf32>
    %10 = arith.maximumf %4, %9 : vector<104x128xf32>
    %c0_i32_3 = arith.constant 0 : i32
    %11 = arith.addi %1, %c0_i32_3 : i32
    %c2_i32 = arith.constant 2 : i32
    %12 = arith.addi %11, %c2_i32 : i32
    %c0_4 = arith.constant 0 : index
    %13 = arith.index_cast %12 : i32 to index
    %c0_5 = arith.constant 0 : index
    %14 = vector.load %arg2[%c0_4, %13, %c0_5] : memref<1x128x128xf32, #tpu.memory_space<vmem>>, vector<1x104x128xf32>
    %15 = vector.shape_cast %14 : vector<1x104x128xf32> to vector<104x128xf32>
    %16 = arith.maximumf %10, %15 : vector<104x128xf32>
    %c10_i32 = arith.constant 10 : i32
    %17 = arith.addi %1, %c10_i32 : i32
    %c0_i32_6 = arith.constant 0 : i32
    %18 = arith.addi %17, %c0_i32_6 : i32
    %c0_7 = arith.constant 0 : index
    %19 = arith.index_cast %18 : i32 to index
    %c0_8 = arith.constant 0 : index
    %20 = vector.load %arg2[%c0_7, %19, %c0_8] : memref<1x128x128xf32, #tpu.memory_space<vmem>>, vector<1x104x128xf32>
    %21 = vector.shape_cast %20 : vector<1x104x128xf32> to vector<104x128xf32>
    %22 = arith.maximumf %16, %21 : vector<104x128xf32>
    %c10_i32_9 = arith.constant 10 : i32
    %23 = arith.addi %1, %c10_i32_9 : i32
    %c1_i32_10 = arith.constant 1 : i32
    %24 = arith.addi %23, %c1_i32_10 : i32
    %c0_11 = arith.constant 0 : index
    %25 = arith.index_cast %24 : i32 to index
    %c0_12 = arith.constant 0 : index
    %26 = vector.load %arg2[%c0_11, %25, %c0_12] : memref<1x128x128xf32, #tpu.memory_space<vmem>>, vector<1x104x128xf32>
    %27 = vector.shape_cast %26 : vector<1x104x128xf32> to vector<104x128xf32>
    %28 = arith.maximumf %22, %27 : vector<104x128xf32>
    %c10_i32_13 = arith.constant 10 : i32
    %29 = arith.addi %1, %c10_i32_13 : i32
    %c2_i32_14 = arith.constant 2 : i32
    %30 = arith.addi %29, %c2_i32_14 : i32
    %c0_15 = arith.constant 0 : index
    %31 = arith.index_cast %30 : i32 to index
    %c0_16 = arith.constant 0 : index
    %32 = vector.load %arg2[%c0_15, %31, %c0_16] : memref<1x128x128xf32, #tpu.memory_space<vmem>>, vector<1x104x128xf32>
    %33 = vector.shape_cast %32 : vector<1x104x128xf32> to vector<104x128xf32>
    %34 = arith.maximumf %28, %33 : vector<104x128xf32>
    %c20_i32 = arith.constant 20 : i32
    %35 = arith.addi %1, %c20_i32 : i32
    %c0_i32_17 = arith.constant 0 : i32
    %36 = arith.addi %35, %c0_i32_17 : i32
    %c0_18 = arith.constant 0 : index
    %37 = arith.index_cast %36 : i32 to index
    %c0_19 = arith.constant 0 : index
    %38 = vector.load %arg2[%c0_18, %37, %c0_19] : memref<1x128x128xf32, #tpu.memory_space<vmem>>, vector<1x104x128xf32>
    %39 = vector.shape_cast %38 : vector<1x104x128xf32> to vector<104x128xf32>
    %40 = arith.maximumf %34, %39 : vector<104x128xf32>
    %c20_i32_20 = arith.constant 20 : i32
    %41 = arith.addi %1, %c20_i32_20 : i32
    %c1_i32_21 = arith.constant 1 : i32
    %42 = arith.addi %41, %c1_i32_21 : i32
    %c0_22 = arith.constant 0 : index
    %43 = arith.index_cast %42 : i32 to index
    %c0_23 = arith.constant 0 : index
    %44 = vector.load %arg2[%c0_22, %43, %c0_23] : memref<1x128x128xf32, #tpu.memory_space<vmem>>, vector<1x104x128xf32>
    %45 = vector.shape_cast %44 : vector<1x104x128xf32> to vector<104x128xf32>
    %46 = arith.maximumf %40, %45 : vector<104x128xf32>
    %c20_i32_24 = arith.constant 20 : i32
    %47 = arith.addi %1, %c20_i32_24 : i32
    %c2_i32_25 = arith.constant 2 : i32
    %48 = arith.addi %47, %c2_i32_25 : i32
    %c0_26 = arith.constant 0 : index
    %49 = arith.index_cast %48 : i32 to index
    %c0_27 = arith.constant 0 : index
    %50 = vector.load %arg2[%c0_26, %49, %c0_27] : memref<1x128x128xf32, #tpu.memory_space<vmem>>, vector<1x104x128xf32>
    %51 = vector.shape_cast %50 : vector<1x104x128xf32> to vector<104x128xf32>
    %52 = arith.maximumf %46, %51 : vector<104x128xf32>
    %c0_28 = arith.constant 0 : index
    %c0_29 = arith.constant 0 : index
    %c0_30 = arith.constant 0 : index
    %53 = vector.load %arg3[%c0_28, %c0_29, %c0_30] : memref<1x104x128xf32, #tpu.memory_space<vmem>>, vector<1x104x128xf32>
    %54 = vector.shape_cast %53 : vector<1x104x128xf32> to vector<104x128xf32>
    %55 = vector.shape_cast %52 : vector<104x128xf32> to vector<1x104x128xf32>
    tpu.vector_store %arg3[%c0_28, %c0_29, %c0_30], %55 {strides = array<i32>} : memref<1x104x128xf32, #tpu.memory_space<vmem>>, vector<1x104x128xf32>,
    return
  }
  func.func @transform_0(%arg0: i32, %arg1: i32) -> (i32, i32, i32) {
    %c0_i32 = arith.constant 0 : i32
    %c0_i32_0 = arith.constant 0 : i32
    %c0_i32_1 = arith.constant 0 : i32
    return %arg0, %c0_i32, %c0_i32_0 : i32, i32, i32
  }
  func.func @transform_1(%arg0: i32, %arg1: i32) -> (i32, i32, i32) {
    %c0_i32 = arith.constant 0 : i32
    %c0_i32_0 = arith.constant 0 : i32
    return %arg0, %arg1, %c0_i32 : i32, i32, i32
  }
}

module attributes {stable_mosaic.version = 11 : i64} {
  func.func @_conv3x3_kernel(%arg0: i32, %arg1: i32, %arg2: memref<1x54x128xf32, #tpu.memory_space<vmem>>, %arg3: memref<9x128x128xbf16, #tpu.memory_space<vmem>>, %arg4: memref<1x128xf32, #tpu.memory_space<vmem>>, %arg5: memref<40x1xf32, #tpu.memory_space<vmem>>, %arg6: memref<1x40x128xf32, #tpu.memory_space<vmem>>) attributes {dimension_semantics = [#tpu.dimension_semantics<parallel>, #tpu.dimension_semantics<parallel>], iteration_bounds = array<i64: 2, 1>, scalar_prefetch = 0 : i64, scratch_operands = 0 : i64, tpu.core_type = #tpu.core_type<tc>, window_params = [{transform_indices = @transform_0, window_bounds = array<i64: 1, 54, 128>}, {pipeline_mode = #tpu.pipeline_mode<synchronous>, transform_indices = @transform_1, window_bounds = array<i64: 9, 128, 128>}, {pipeline_mode = #tpu.pipeline_mode<synchronous>, transform_indices = @transform_2, window_bounds = array<i64: 1, 128>}, {transform_indices = @transform_3, window_bounds = array<i64: 40, 1>}, {transform_indices = @transform_4, window_bounds = array<i64: 1, 40, 128>}]} {
    %c40_i32 = arith.constant 40 : i32
    %0 = arith.muli %arg1, %c40_i32 : i32
    %1 = tpu.assume_multiple %0, 8 : i32
    %cst = arith.constant 0.000000e+00 : f32
    %2 = vector.broadcast %cst : f32 to vector<40x128xf32>
    %c0_i32 = arith.constant 0 : i32
    %3 = arith.addi %1, %c0_i32 : i32
    %c0_i32_0 = arith.constant 0 : i32
    %4 = arith.addi %3, %c0_i32_0 : i32
    %c0 = arith.constant 0 : index
    %5 = arith.index_cast %4 : i32 to index
    %c0_1 = arith.constant 0 : index
    %6 = vector.load %arg2[%c0, %5, %c0_1] : memref<1x54x128xf32, #tpu.memory_space<vmem>>, vector<1x40x128xf32>
    %7 = vector.shape_cast %6 : vector<1x40x128xf32> to vector<40x128xf32>
    %8 = arith.truncf %7 : vector<40x128xf32> to vector<40x128xbf16>
    %c0_2 = arith.constant 0 : index
    %c0_3 = arith.constant 0 : index
    %c0_4 = arith.constant 0 : index
    %9 = vector.load %arg3[%c0_2, %c0_3, %c0_4] : memref<9x128x128xbf16, #tpu.memory_space<vmem>>, vector<1x128x128xbf16>
    %10 = vector.shape_cast %9 : vector<1x128x128xbf16> to vector<128x128xbf16>
    %cst_5 = arith.constant dense<0.000000e+00> : vector<40x128xf32>
    %11 = tpu.matmul %8, %10, %cst_5 {dimension_numbers = #tpu.dot_dimension_numbers<[1], [0], [0], [1], [0, 0, 1, 1], [], []>} : vector<40x128xbf16>, vector<128x128xbf16>, vector<40x128xf32> -> vector<40x128xf32>
    %12 = arith.addf %2, %11 : vector<40x128xf32>
    %c0_i32_6 = arith.constant 0 : i32
    %13 = arith.addi %1, %c0_i32_6 : i32
    %c1_i32 = arith.constant 1 : i32
    %14 = arith.addi %13, %c1_i32 : i32
    %c0_7 = arith.constant 0 : index
    %15 = arith.index_cast %14 : i32 to index
    %c0_8 = arith.constant 0 : index
    %16 = vector.load %arg2[%c0_7, %15, %c0_8] : memref<1x54x128xf32, #tpu.memory_space<vmem>>, vector<1x40x128xf32>
    %17 = vector.shape_cast %16 : vector<1x40x128xf32> to vector<40x128xf32>
    %18 = arith.truncf %17 : vector<40x128xf32> to vector<40x128xbf16>
    %c1 = arith.constant 1 : index
    %c0_9 = arith.constant 0 : index
    %c0_10 = arith.constant 0 : index
    %19 = vector.load %arg3[%c1, %c0_9, %c0_10] : memref<9x128x128xbf16, #tpu.memory_space<vmem>>, vector<1x128x128xbf16>
    %20 = vector.shape_cast %19 : vector<1x128x128xbf16> to vector<128x128xbf16>
    %cst_11 = arith.constant dense<0.000000e+00> : vector<40x128xf32>
    %21 = tpu.matmul %18, %20, %cst_11 {dimension_numbers = #tpu.dot_dimension_numbers<[1], [0], [0], [1], [0, 0, 1, 1], [], []>} : vector<40x128xbf16>, vector<128x128xbf16>, vector<40x128xf32> -> vector<40x128xf32>
    %22 = arith.addf %12, %21 : vector<40x128xf32>
    %c0_i32_12 = arith.constant 0 : i32
    %23 = arith.addi %1, %c0_i32_12 : i32
    %c2_i32 = arith.constant 2 : i32
    %24 = arith.addi %23, %c2_i32 : i32
    %c0_13 = arith.constant 0 : index
    %25 = arith.index_cast %24 : i32 to index
    %c0_14 = arith.constant 0 : index
    %26 = vector.load %arg2[%c0_13, %25, %c0_14] : memref<1x54x128xf32, #tpu.memory_space<vmem>>, vector<1x40x128xf32>
    %27 = vector.shape_cast %26 : vector<1x40x128xf32> to vector<40x128xf32>
    %28 = arith.truncf %27 : vector<40x128xf32> to vector<40x128xbf16>
    %c2 = arith.constant 2 : index
    %c0_15 = arith.constant 0 : index
    %c0_16 = arith.constant 0 : index
    %29 = vector.load %arg3[%c2, %c0_15, %c0_16] : memref<9x128x128xbf16, #tpu.memory_space<vmem>>, vector<1x128x128xbf16>
    %30 = vector.shape_cast %29 : vector<1x128x128xbf16> to vector<128x128xbf16>
    %cst_17 = arith.constant dense<0.000000e+00> : vector<40x128xf32>
    %31 = tpu.matmul %28, %30, %cst_17 {dimension_numbers = #tpu.dot_dimension_numbers<[1], [0], [0], [1], [0, 0, 1, 1], [], []>} : vector<40x128xbf16>, vector<128x128xbf16>, vector<40x128xf32> -> vector<40x128xf32>
    %32 = arith.addf %22, %31 : vector<40x128xf32>
    %c6_i32 = arith.constant 6 : i32
    %33 = arith.addi %1, %c6_i32 : i32
    %c0_i32_18 = arith.constant 0 : i32
    %34 = arith.addi %33, %c0_i32_18 : i32
    %c0_19 = arith.constant 0 : index
    %35 = arith.index_cast %34 : i32 to index
    %c0_20 = arith.constant 0 : index
    %36 = vector.load %arg2[%c0_19, %35, %c0_20] : memref<1x54x128xf32, #tpu.memory_space<vmem>>, vector<1x40x128xf32>
    %37 = vector.shape_cast %36 : vector<1x40x128xf32> to vector<40x128xf32>
    %38 = arith.truncf %37 : vector<40x128xf32> to vector<40x128xbf16>
    %c3 = arith.constant 3 : index
    %c0_21 = arith.constant 0 : index
    %c0_22 = arith.constant 0 : index
    %39 = vector.load %arg3[%c3, %c0_21, %c0_22] : memref<9x128x128xbf16, #tpu.memory_space<vmem>>, vector<1x128x128xbf16>
    %40 = vector.shape_cast %39 : vector<1x128x128xbf16> to vector<128x128xbf16>
    %cst_23 = arith.constant dense<0.000000e+00> : vector<40x128xf32>
    %41 = tpu.matmul %38, %40, %cst_23 {dimension_numbers = #tpu.dot_dimension_numbers<[1], [0], [0], [1], [0, 0, 1, 1], [], []>} : vector<40x128xbf16>, vector<128x128xbf16>, vector<40x128xf32> -> vector<40x128xf32>
    %42 = arith.addf %32, %41 : vector<40x128xf32>
    %c6_i32_24 = arith.constant 6 : i32
    %43 = arith.addi %1, %c6_i32_24 : i32
    %c1_i32_25 = arith.constant 1 : i32
    %44 = arith.addi %43, %c1_i32_25 : i32
    %c0_26 = arith.constant 0 : index
    %45 = arith.index_cast %44 : i32 to index
    %c0_27 = arith.constant 0 : index
    %46 = vector.load %arg2[%c0_26, %45, %c0_27] : memref<1x54x128xf32, #tpu.memory_space<vmem>>, vector<1x40x128xf32>
    %47 = vector.shape_cast %46 : vector<1x40x128xf32> to vector<40x128xf32>
    %48 = arith.truncf %47 : vector<40x128xf32> to vector<40x128xbf16>
    %c4 = arith.constant 4 : index
    %c0_28 = arith.constant 0 : index
    %c0_29 = arith.constant 0 : index
    %49 = vector.load %arg3[%c4, %c0_28, %c0_29] : memref<9x128x128xbf16, #tpu.memory_space<vmem>>, vector<1x128x128xbf16>
    %50 = vector.shape_cast %49 : vector<1x128x128xbf16> to vector<128x128xbf16>
    %cst_30 = arith.constant dense<0.000000e+00> : vector<40x128xf32>
    %51 = tpu.matmul %48, %50, %cst_30 {dimension_numbers = #tpu.dot_dimension_numbers<[1], [0], [0], [1], [0, 0, 1, 1], [], []>} : vector<40x128xbf16>, vector<128x128xbf16>, vector<40x128xf32> -> vector<40x128xf32>
    %52 = arith.addf %42, %51 : vector<40x128xf32>
    %c6_i32_31 = arith.constant 6 : i32
    %53 = arith.addi %1, %c6_i32_31 : i32
    %c2_i32_32 = arith.constant 2 : i32
    %54 = arith.addi %53, %c2_i32_32 : i32
    %c0_33 = arith.constant 0 : index
    %55 = arith.index_cast %54 : i32 to index
    %c0_34 = arith.constant 0 : index
    %56 = vector.load %arg2[%c0_33, %55, %c0_34] : memref<1x54x128xf32, #tpu.memory_space<vmem>>, vector<1x40x128xf32>
    %57 = vector.shape_cast %56 : vector<1x40x128xf32> to vector<40x128xf32>
    %58 = arith.truncf %57 : vector<40x128xf32> to vector<40x128xbf16>
    %c5 = arith.constant 5 : index
    %c0_35 = arith.constant 0 : index
    %c0_36 = arith.constant 0 : index
    %59 = vector.load %arg3[%c5, %c0_35, %c0_36] : memref<9x128x128xbf16, #tpu.memory_space<vmem>>, vector<1x128x128xbf16>
    %60 = vector.shape_cast %59 : vector<1x128x128xbf16> to vector<128x128xbf16>
    %cst_37 = arith.constant dense<0.000000e+00> : vector<40x128xf32>
    %61 = tpu.matmul %58, %60, %cst_37 {dimension_numbers = #tpu.dot_dimension_numbers<[1], [0], [0], [1], [0, 0, 1, 1], [], []>} : vector<40x128xbf16>, vector<128x128xbf16>, vector<40x128xf32> -> vector<40x128xf32>
    %62 = arith.addf %52, %61 : vector<40x128xf32>
    %c12_i32 = arith.constant 12 : i32
    %63 = arith.addi %1, %c12_i32 : i32
    %c0_i32_38 = arith.constant 0 : i32
    %64 = arith.addi %63, %c0_i32_38 : i32
    %c0_39 = arith.constant 0 : index
    %65 = arith.index_cast %64 : i32 to index
    %c0_40 = arith.constant 0 : index
    %66 = vector.load %arg2[%c0_39, %65, %c0_40] : memref<1x54x128xf32, #tpu.memory_space<vmem>>, vector<1x40x128xf32>
    %67 = vector.shape_cast %66 : vector<1x40x128xf32> to vector<40x128xf32>
    %68 = arith.truncf %67 : vector<40x128xf32> to vector<40x128xbf16>
    %c6 = arith.constant 6 : index
    %c0_41 = arith.constant 0 : index
    %c0_42 = arith.constant 0 : index
    %69 = vector.load %arg3[%c6, %c0_41, %c0_42] : memref<9x128x128xbf16, #tpu.memory_space<vmem>>, vector<1x128x128xbf16>
    %70 = vector.shape_cast %69 : vector<1x128x128xbf16> to vector<128x128xbf16>
    %cst_43 = arith.constant dense<0.000000e+00> : vector<40x128xf32>
    %71 = tpu.matmul %68, %70, %cst_43 {dimension_numbers = #tpu.dot_dimension_numbers<[1], [0], [0], [1], [0, 0, 1, 1], [], []>} : vector<40x128xbf16>, vector<128x128xbf16>, vector<40x128xf32> -> vector<40x128xf32>
    %72 = arith.addf %62, %71 : vector<40x128xf32>
    %c12_i32_44 = arith.constant 12 : i32
    %73 = arith.addi %1, %c12_i32_44 : i32
    %c1_i32_45 = arith.constant 1 : i32
    %74 = arith.addi %73, %c1_i32_45 : i32
    %c0_46 = arith.constant 0 : index
    %75 = arith.index_cast %74 : i32 to index
    %c0_47 = arith.constant 0 : index
    %76 = vector.load %arg2[%c0_46, %75, %c0_47] : memref<1x54x128xf32, #tpu.memory_space<vmem>>, vector<1x40x128xf32>
    %77 = vector.shape_cast %76 : vector<1x40x128xf32> to vector<40x128xf32>
    %78 = arith.truncf %77 : vector<40x128xf32> to vector<40x128xbf16>
    %c7 = arith.constant 7 : index
    %c0_48 = arith.constant 0 : index
    %c0_49 = arith.constant 0 : index
    %79 = vector.load %arg3[%c7, %c0_48, %c0_49] : memref<9x128x128xbf16, #tpu.memory_space<vmem>>, vector<1x128x128xbf16>
    %80 = vector.shape_cast %79 : vector<1x128x128xbf16> to vector<128x128xbf16>
    %cst_50 = arith.constant dense<0.000000e+00> : vector<40x128xf32>
    %81 = tpu.matmul %78, %80, %cst_50 {dimension_numbers = #tpu.dot_dimension_numbers<[1], [0], [0], [1], [0, 0, 1, 1], [], []>} : vector<40x128xbf16>, vector<128x128xbf16>, vector<40x128xf32> -> vector<40x128xf32>
    %82 = arith.addf %72, %81 : vector<40x128xf32>
    %c12_i32_51 = arith.constant 12 : i32
    %83 = arith.addi %1, %c12_i32_51 : i32
    %c2_i32_52 = arith.constant 2 : i32
    %84 = arith.addi %83, %c2_i32_52 : i32
    %c0_53 = arith.constant 0 : index
    %85 = arith.index_cast %84 : i32 to index
    %c0_54 = arith.constant 0 : index
    %86 = vector.load %arg2[%c0_53, %85, %c0_54] : memref<1x54x128xf32, #tpu.memory_space<vmem>>, vector<1x40x128xf32>
    %87 = vector.shape_cast %86 : vector<1x40x128xf32> to vector<40x128xf32>
    %88 = arith.truncf %87 : vector<40x128xf32> to vector<40x128xbf16>
    %c8 = arith.constant 8 : index
    %c0_55 = arith.constant 0 : index
    %c0_56 = arith.constant 0 : index
    %89 = vector.load %arg3[%c8, %c0_55, %c0_56] : memref<9x128x128xbf16, #tpu.memory_space<vmem>>, vector<1x128x128xbf16>
    %90 = vector.shape_cast %89 : vector<1x128x128xbf16> to vector<128x128xbf16>
    %cst_57 = arith.constant dense<0.000000e+00> : vector<40x128xf32>
    %91 = tpu.matmul %88, %90, %cst_57 {dimension_numbers = #tpu.dot_dimension_numbers<[1], [0], [0], [1], [0, 0, 1, 1], [], []>} : vector<40x128xbf16>, vector<128x128xbf16>, vector<40x128xf32> -> vector<40x128xf32>
    %92 = arith.addf %82, %91 : vector<40x128xf32>
    %c0_58 = arith.constant 0 : index
    %c0_59 = arith.constant 0 : index
    %93 = vector.load %arg4[%c0_58, %c0_59] : memref<1x128xf32, #tpu.memory_space<vmem>>, vector<1x128xf32>
    %94 = vector.broadcast %93 : vector<1x128xf32> to vector<40x128xf32>
    %95 = arith.addf %92, %94 : vector<40x128xf32>
    %c0_60 = arith.constant 0 : index
    %c0_61 = arith.constant 0 : index
    %96 = vector.load %arg5[%c0_60, %c0_61] : memref<40x1xf32, #tpu.memory_space<vmem>>, vector<40x1xf32>
    %97 = vector.broadcast %96 : vector<40x1xf32> to vector<40x128xf32>
    %98 = arith.mulf %95, %97 : vector<40x128xf32>
    %cst_62 = arith.constant 0.000000e+00 : f32
    %99 = vector.broadcast %cst_62 : f32 to vector<40x128xf32>
    %100 = arith.maximumf %98, %99 : vector<40x128xf32>
    %c0_63 = arith.constant 0 : index
    %c0_64 = arith.constant 0 : index
    %c0_65 = arith.constant 0 : index
    %101 = vector.load %arg6[%c0_63, %c0_64, %c0_65] : memref<1x40x128xf32, #tpu.memory_space<vmem>>, vector<1x40x128xf32>
    %102 = vector.shape_cast %101 : vector<1x40x128xf32> to vector<40x128xf32>
    %103 = vector.shape_cast %100 : vector<40x128xf32> to vector<1x40x128xf32>
    tpu.vector_store %arg6[%c0_63, %c0_64, %c0_65], %103 {strides = array<i32>} : memref<1x40x128xf32, #tpu.memory_space<vmem>>, vector<1x40x128xf32>,
    return
  }
  func.func @transform_0(%arg0: i32, %arg1: i32) -> (i32, i32, i32) {
    %c0_i32 = arith.constant 0 : i32
    %c0_i32_0 = arith.constant 0 : i32
    %c0_i32_1 = arith.constant 0 : i32
    return %arg0, %c0_i32, %c0_i32_0 : i32, i32, i32
  }
  func.func @transform_1(%arg0: i32, %arg1: i32) -> (i32, i32, i32) {
    %c0_i32 = arith.constant 0 : i32
    %c0_i32_0 = arith.constant 0 : i32
    %c0_i32_1 = arith.constant 0 : i32
    %c0_i32_2 = arith.constant 0 : i32
    return %c0_i32, %c0_i32_0, %c0_i32_1 : i32, i32, i32
  }
  func.func @transform_2(%arg0: i32, %arg1: i32) -> (i32, i32) {
    %c0_i32 = arith.constant 0 : i32
    %c0_i32_0 = arith.constant 0 : i32
    %c0_i32_1 = arith.constant 0 : i32
    return %c0_i32, %c0_i32_0 : i32, i32
  }
  func.func @transform_3(%arg0: i32, %arg1: i32) -> (i32, i32) {
    %c0_i32 = arith.constant 0 : i32
    %c0_i32_0 = arith.constant 0 : i32
    return %arg1, %c0_i32 : i32, i32
  }
  func.func @transform_4(%arg0: i32, %arg1: i32) -> (i32, i32, i32) {
    %c0_i32 = arith.constant 0 : i32
    %c0_i32_0 = arith.constant 0 : i32
    return %arg0, %arg1, %c0_i32 : i32, i32, i32
  }
}

module attributes {stable_mosaic.version = 11 : i64} {
  func.func @_conv3x3_kernel(%arg0: i32, %arg1: i32, %arg2: memref<1x54x128xf32, #tpu.memory_space<vmem>>, %arg3: memref<9x128x128xbf16, #tpu.memory_space<vmem>>, %arg4: memref<1x128xf32, #tpu.memory_space<vmem>>, %arg5: memref<40x1xf32, #tpu.memory_space<vmem>>, %arg6: memref<1x40x128xf32, #tpu.memory_space<vmem>>, %arg7: memref<1x40x128xf32, #tpu.memory_space<vmem>>) attributes {dimension_semantics = [#tpu.dimension_semantics<parallel>, #tpu.dimension_semantics<parallel>], iteration_bounds = array<i64: 2, 1>, scalar_prefetch = 0 : i64, scratch_operands = 0 : i64, tpu.core_type = #tpu.core_type<tc>, window_params = [{transform_indices = @transform_0, window_bounds = array<i64: 1, 54, 128>}, {pipeline_mode = #tpu.pipeline_mode<synchronous>, transform_indices = @transform_1, window_bounds = array<i64: 9, 128, 128>}, {pipeline_mode = #tpu.pipeline_mode<synchronous>, transform_indices = @transform_2, window_bounds = array<i64: 1, 128>}, {transform_indices = @transform_3, window_bounds = array<i64: 40, 1>}, {transform_indices = @transform_4, window_bounds = array<i64: 1, 40, 128>}, {transform_indices = @transform_5, window_bounds = array<i64: 1, 40, 128>}]} {
    %c40_i32 = arith.constant 40 : i32
    %0 = arith.muli %arg1, %c40_i32 : i32
    %1 = tpu.assume_multiple %0, 8 : i32
    %cst = arith.constant 0.000000e+00 : f32
    %2 = vector.broadcast %cst : f32 to vector<40x128xf32>
    %c0_i32 = arith.constant 0 : i32
    %3 = arith.addi %1, %c0_i32 : i32
    %c0_i32_0 = arith.constant 0 : i32
    %4 = arith.addi %3, %c0_i32_0 : i32
    %c0 = arith.constant 0 : index
    %5 = arith.index_cast %4 : i32 to index
    %c0_1 = arith.constant 0 : index
    %6 = vector.load %arg2[%c0, %5, %c0_1] : memref<1x54x128xf32, #tpu.memory_space<vmem>>, vector<1x40x128xf32>
    %7 = vector.shape_cast %6 : vector<1x40x128xf32> to vector<40x128xf32>
    %8 = arith.truncf %7 : vector<40x128xf32> to vector<40x128xbf16>
    %c0_2 = arith.constant 0 : index
    %c0_3 = arith.constant 0 : index
    %c0_4 = arith.constant 0 : index
    %9 = vector.load %arg3[%c0_2, %c0_3, %c0_4] : memref<9x128x128xbf16, #tpu.memory_space<vmem>>, vector<1x128x128xbf16>
    %10 = vector.shape_cast %9 : vector<1x128x128xbf16> to vector<128x128xbf16>
    %cst_5 = arith.constant dense<0.000000e+00> : vector<40x128xf32>
    %11 = tpu.matmul %8, %10, %cst_5 {dimension_numbers = #tpu.dot_dimension_numbers<[1], [0], [0], [1], [0, 0, 1, 1], [], []>} : vector<40x128xbf16>, vector<128x128xbf16>, vector<40x128xf32> -> vector<40x128xf32>
    %12 = arith.addf %2, %11 : vector<40x128xf32>
    %c0_i32_6 = arith.constant 0 : i32
    %13 = arith.addi %1, %c0_i32_6 : i32
    %c1_i32 = arith.constant 1 : i32
    %14 = arith.addi %13, %c1_i32 : i32
    %c0_7 = arith.constant 0 : index
    %15 = arith.index_cast %14 : i32 to index
    %c0_8 = arith.constant 0 : index
    %16 = vector.load %arg2[%c0_7, %15, %c0_8] : memref<1x54x128xf32, #tpu.memory_space<vmem>>, vector<1x40x128xf32>
    %17 = vector.shape_cast %16 : vector<1x40x128xf32> to vector<40x128xf32>
    %18 = arith.truncf %17 : vector<40x128xf32> to vector<40x128xbf16>
    %c1 = arith.constant 1 : index
    %c0_9 = arith.constant 0 : index
    %c0_10 = arith.constant 0 : index
    %19 = vector.load %arg3[%c1, %c0_9, %c0_10] : memref<9x128x128xbf16, #tpu.memory_space<vmem>>, vector<1x128x128xbf16>
    %20 = vector.shape_cast %19 : vector<1x128x128xbf16> to vector<128x128xbf16>
    %cst_11 = arith.constant dense<0.000000e+00> : vector<40x128xf32>
    %21 = tpu.matmul %18, %20, %cst_11 {dimension_numbers = #tpu.dot_dimension_numbers<[1], [0], [0], [1], [0, 0, 1, 1], [], []>} : vector<40x128xbf16>, vector<128x128xbf16>, vector<40x128xf32> -> vector<40x128xf32>
    %22 = arith.addf %12, %21 : vector<40x128xf32>
    %c0_i32_12 = arith.constant 0 : i32
    %23 = arith.addi %1, %c0_i32_12 : i32
    %c2_i32 = arith.constant 2 : i32
    %24 = arith.addi %23, %c2_i32 : i32
    %c0_13 = arith.constant 0 : index
    %25 = arith.index_cast %24 : i32 to index
    %c0_14 = arith.constant 0 : index
    %26 = vector.load %arg2[%c0_13, %25, %c0_14] : memref<1x54x128xf32, #tpu.memory_space<vmem>>, vector<1x40x128xf32>
    %27 = vector.shape_cast %26 : vector<1x40x128xf32> to vector<40x128xf32>
    %28 = arith.truncf %27 : vector<40x128xf32> to vector<40x128xbf16>
    %c2 = arith.constant 2 : index
    %c0_15 = arith.constant 0 : index
    %c0_16 = arith.constant 0 : index
    %29 = vector.load %arg3[%c2, %c0_15, %c0_16] : memref<9x128x128xbf16, #tpu.memory_space<vmem>>, vector<1x128x128xbf16>
    %30 = vector.shape_cast %29 : vector<1x128x128xbf16> to vector<128x128xbf16>
    %cst_17 = arith.constant dense<0.000000e+00> : vector<40x128xf32>
    %31 = tpu.matmul %28, %30, %cst_17 {dimension_numbers = #tpu.dot_dimension_numbers<[1], [0], [0], [1], [0, 0, 1, 1], [], []>} : vector<40x128xbf16>, vector<128x128xbf16>, vector<40x128xf32> -> vector<40x128xf32>
    %32 = arith.addf %22, %31 : vector<40x128xf32>
    %c6_i32 = arith.constant 6 : i32
    %33 = arith.addi %1, %c6_i32 : i32
    %c0_i32_18 = arith.constant 0 : i32
    %34 = arith.addi %33, %c0_i32_18 : i32
    %c0_19 = arith.constant 0 : index
    %35 = arith.index_cast %34 : i32 to index
    %c0_20 = arith.constant 0 : index
    %36 = vector.load %arg2[%c0_19, %35, %c0_20] : memref<1x54x128xf32, #tpu.memory_space<vmem>>, vector<1x40x128xf32>
    %37 = vector.shape_cast %36 : vector<1x40x128xf32> to vector<40x128xf32>
    %38 = arith.truncf %37 : vector<40x128xf32> to vector<40x128xbf16>
    %c3 = arith.constant 3 : index
    %c0_21 = arith.constant 0 : index
    %c0_22 = arith.constant 0 : index
    %39 = vector.load %arg3[%c3, %c0_21, %c0_22] : memref<9x128x128xbf16, #tpu.memory_space<vmem>>, vector<1x128x128xbf16>
    %40 = vector.shape_cast %39 : vector<1x128x128xbf16> to vector<128x128xbf16>
    %cst_23 = arith.constant dense<0.000000e+00> : vector<40x128xf32>
    %41 = tpu.matmul %38, %40, %cst_23 {dimension_numbers = #tpu.dot_dimension_numbers<[1], [0], [0], [1], [0, 0, 1, 1], [], []>} : vector<40x128xbf16>, vector<128x128xbf16>, vector<40x128xf32> -> vector<40x128xf32>
    %42 = arith.addf %32, %41 : vector<40x128xf32>
    %c6_i32_24 = arith.constant 6 : i32
    %43 = arith.addi %1, %c6_i32_24 : i32
    %c1_i32_25 = arith.constant 1 : i32
    %44 = arith.addi %43, %c1_i32_25 : i32
    %c0_26 = arith.constant 0 : index
    %45 = arith.index_cast %44 : i32 to index
    %c0_27 = arith.constant 0 : index
    %46 = vector.load %arg2[%c0_26, %45, %c0_27] : memref<1x54x128xf32, #tpu.memory_space<vmem>>, vector<1x40x128xf32>
    %47 = vector.shape_cast %46 : vector<1x40x128xf32> to vector<40x128xf32>
    %48 = arith.truncf %47 : vector<40x128xf32> to vector<40x128xbf16>
    %c4 = arith.constant 4 : index
    %c0_28 = arith.constant 0 : index
    %c0_29 = arith.constant 0 : index
    %49 = vector.load %arg3[%c4, %c0_28, %c0_29] : memref<9x128x128xbf16, #tpu.memory_space<vmem>>, vector<1x128x128xbf16>
    %50 = vector.shape_cast %49 : vector<1x128x128xbf16> to vector<128x128xbf16>
    %cst_30 = arith.constant dense<0.000000e+00> : vector<40x128xf32>
    %51 = tpu.matmul %48, %50, %cst_30 {dimension_numbers = #tpu.dot_dimension_numbers<[1], [0], [0], [1], [0, 0, 1, 1], [], []>} : vector<40x128xbf16>, vector<128x128xbf16>, vector<40x128xf32> -> vector<40x128xf32>
    %52 = arith.addf %42, %51 : vector<40x128xf32>
    %c6_i32_31 = arith.constant 6 : i32
    %53 = arith.addi %1, %c6_i32_31 : i32
    %c2_i32_32 = arith.constant 2 : i32
    %54 = arith.addi %53, %c2_i32_32 : i32
    %c0_33 = arith.constant 0 : index
    %55 = arith.index_cast %54 : i32 to index
    %c0_34 = arith.constant 0 : index
    %56 = vector.load %arg2[%c0_33, %55, %c0_34] : memref<1x54x128xf32, #tpu.memory_space<vmem>>, vector<1x40x128xf32>
    %57 = vector.shape_cast %56 : vector<1x40x128xf32> to vector<40x128xf32>
    %58 = arith.truncf %57 : vector<40x128xf32> to vector<40x128xbf16>
    %c5 = arith.constant 5 : index
    %c0_35 = arith.constant 0 : index
    %c0_36 = arith.constant 0 : index
    %59 = vector.load %arg3[%c5, %c0_35, %c0_36] : memref<9x128x128xbf16, #tpu.memory_space<vmem>>, vector<1x128x128xbf16>
    %60 = vector.shape_cast %59 : vector<1x128x128xbf16> to vector<128x128xbf16>
    %cst_37 = arith.constant dense<0.000000e+00> : vector<40x128xf32>
    %61 = tpu.matmul %58, %60, %cst_37 {dimension_numbers = #tpu.dot_dimension_numbers<[1], [0], [0], [1], [0, 0, 1, 1], [], []>} : vector<40x128xbf16>, vector<128x128xbf16>, vector<40x128xf32> -> vector<40x128xf32>
    %62 = arith.addf %52, %61 : vector<40x128xf32>
    %c12_i32 = arith.constant 12 : i32
    %63 = arith.addi %1, %c12_i32 : i32
    %c0_i32_38 = arith.constant 0 : i32
    %64 = arith.addi %63, %c0_i32_38 : i32
    %c0_39 = arith.constant 0 : index
    %65 = arith.index_cast %64 : i32 to index
    %c0_40 = arith.constant 0 : index
    %66 = vector.load %arg2[%c0_39, %65, %c0_40] : memref<1x54x128xf32, #tpu.memory_space<vmem>>, vector<1x40x128xf32>
    %67 = vector.shape_cast %66 : vector<1x40x128xf32> to vector<40x128xf32>
    %68 = arith.truncf %67 : vector<40x128xf32> to vector<40x128xbf16>
    %c6 = arith.constant 6 : index
    %c0_41 = arith.constant 0 : index
    %c0_42 = arith.constant 0 : index
    %69 = vector.load %arg3[%c6, %c0_41, %c0_42] : memref<9x128x128xbf16, #tpu.memory_space<vmem>>, vector<1x128x128xbf16>
    %70 = vector.shape_cast %69 : vector<1x128x128xbf16> to vector<128x128xbf16>
    %cst_43 = arith.constant dense<0.000000e+00> : vector<40x128xf32>
    %71 = tpu.matmul %68, %70, %cst_43 {dimension_numbers = #tpu.dot_dimension_numbers<[1], [0], [0], [1], [0, 0, 1, 1], [], []>} : vector<40x128xbf16>, vector<128x128xbf16>, vector<40x128xf32> -> vector<40x128xf32>
    %72 = arith.addf %62, %71 : vector<40x128xf32>
    %c12_i32_44 = arith.constant 12 : i32
    %73 = arith.addi %1, %c12_i32_44 : i32
    %c1_i32_45 = arith.constant 1 : i32
    %74 = arith.addi %73, %c1_i32_45 : i32
    %c0_46 = arith.constant 0 : index
    %75 = arith.index_cast %74 : i32 to index
    %c0_47 = arith.constant 0 : index
    %76 = vector.load %arg2[%c0_46, %75, %c0_47] : memref<1x54x128xf32, #tpu.memory_space<vmem>>, vector<1x40x128xf32>
    %77 = vector.shape_cast %76 : vector<1x40x128xf32> to vector<40x128xf32>
    %78 = arith.truncf %77 : vector<40x128xf32> to vector<40x128xbf16>
    %c7 = arith.constant 7 : index
    %c0_48 = arith.constant 0 : index
    %c0_49 = arith.constant 0 : index
    %79 = vector.load %arg3[%c7, %c0_48, %c0_49] : memref<9x128x128xbf16, #tpu.memory_space<vmem>>, vector<1x128x128xbf16>
    %80 = vector.shape_cast %79 : vector<1x128x128xbf16> to vector<128x128xbf16>
    %cst_50 = arith.constant dense<0.000000e+00> : vector<40x128xf32>
    %81 = tpu.matmul %78, %80, %cst_50 {dimension_numbers = #tpu.dot_dimension_numbers<[1], [0], [0], [1], [0, 0, 1, 1], [], []>} : vector<40x128xbf16>, vector<128x128xbf16>, vector<40x128xf32> -> vector<40x128xf32>
    %82 = arith.addf %72, %81 : vector<40x128xf32>
    %c12_i32_51 = arith.constant 12 : i32
    %83 = arith.addi %1, %c12_i32_51 : i32
    %c2_i32_52 = arith.constant 2 : i32
    %84 = arith.addi %83, %c2_i32_52 : i32
    %c0_53 = arith.constant 0 : index
    %85 = arith.index_cast %84 : i32 to index
    %c0_54 = arith.constant 0 : index
    %86 = vector.load %arg2[%c0_53, %85, %c0_54] : memref<1x54x128xf32, #tpu.memory_space<vmem>>, vector<1x40x128xf32>
    %87 = vector.shape_cast %86 : vector<1x40x128xf32> to vector<40x128xf32>
    %88 = arith.truncf %87 : vector<40x128xf32> to vector<40x128xbf16>
    %c8 = arith.constant 8 : index
    %c0_55 = arith.constant 0 : index
    %c0_56 = arith.constant 0 : index
    %89 = vector.load %arg3[%c8, %c0_55, %c0_56] : memref<9x128x128xbf16, #tpu.memory_space<vmem>>, vector<1x128x128xbf16>
    %90 = vector.shape_cast %89 : vector<1x128x128xbf16> to vector<128x128xbf16>
    %cst_57 = arith.constant dense<0.000000e+00> : vector<40x128xf32>
    %91 = tpu.matmul %88, %90, %cst_57 {dimension_numbers = #tpu.dot_dimension_numbers<[1], [0], [0], [1], [0, 0, 1, 1], [], []>} : vector<40x128xbf16>, vector<128x128xbf16>, vector<40x128xf32> -> vector<40x128xf32>
    %92 = arith.addf %82, %91 : vector<40x128xf32>
    %c0_58 = arith.constant 0 : index
    %c0_59 = arith.constant 0 : index
    %93 = vector.load %arg4[%c0_58, %c0_59] : memref<1x128xf32, #tpu.memory_space<vmem>>, vector<1x128xf32>
    %94 = vector.broadcast %93 : vector<1x128xf32> to vector<40x128xf32>
    %95 = arith.addf %92, %94 : vector<40x128xf32>
    %c0_60 = arith.constant 0 : index
    %c0_61 = arith.constant 0 : index
    %96 = vector.load %arg5[%c0_60, %c0_61] : memref<40x1xf32, #tpu.memory_space<vmem>>, vector<40x1xf32>
    %97 = vector.broadcast %96 : vector<40x1xf32> to vector<40x128xf32>
    %98 = arith.mulf %95, %97 : vector<40x128xf32>
    %c0_62 = arith.constant 0 : index
    %c0_63 = arith.constant 0 : index
    %c0_64 = arith.constant 0 : index
    %99 = vector.load %arg6[%c0_62, %c0_63, %c0_64] : memref<1x40x128xf32, #tpu.memory_space<vmem>>, vector<1x40x128xf32>
    %100 = vector.shape_cast %99 : vector<1x40x128xf32> to vector<40x128xf32>
    %101 = arith.addf %98, %100 : vector<40x128xf32>
    %cst_65 = arith.constant 0.000000e+00 : f32
    %102 = vector.broadcast %cst_65 : f32 to vector<40x128xf32>
    %103 = arith.maximumf %101, %102 : vector<40x128xf32>
    %c0_66 = arith.constant 0 : index
    %c0_67 = arith.constant 0 : index
    %c0_68 = arith.constant 0 : index
    %104 = vector.load %arg7[%c0_66, %c0_67, %c0_68] : memref<1x40x128xf32, #tpu.memory_space<vmem>>, vector<1x40x128xf32>
    %105 = vector.shape_cast %104 : vector<1x40x128xf32> to vector<40x128xf32>
    %106 = vector.shape_cast %103 : vector<40x128xf32> to vector<1x40x128xf32>
    tpu.vector_store %arg7[%c0_66, %c0_67, %c0_68], %106 {strides = array<i32>} : memref<1x40x128xf32, #tpu.memory_space<vmem>>, vector<1x40x128xf32>,
    return
  }
  func.func @transform_0(%arg0: i32, %arg1: i32) -> (i32, i32, i32) {
    %c0_i32 = arith.constant 0 : i32
    %c0_i32_0 = arith.constant 0 : i32
    %c0_i32_1 = arith.constant 0 : i32
    return %arg0, %c0_i32, %c0_i32_0 : i32, i32, i32
  }
  func.func @transform_1(%arg0: i32, %arg1: i32) -> (i32, i32, i32) {
    %c0_i32 = arith.constant 0 : i32
    %c0_i32_0 = arith.constant 0 : i32
    %c0_i32_1 = arith.constant 0 : i32
    %c0_i32_2 = arith.constant 0 : i32
    return %c0_i32, %c0_i32_0, %c0_i32_1 : i32, i32, i32
  }
  func.func @transform_2(%arg0: i32, %arg1: i32) -> (i32, i32) {
    %c0_i32 = arith.constant 0 : i32
    %c0_i32_0 = arith.constant 0 : i32
    %c0_i32_1 = arith.constant 0 : i32
    return %c0_i32, %c0_i32_0 : i32, i32
  }
  func.func @transform_3(%arg0: i32, %arg1: i32) -> (i32, i32) {
    %c0_i32 = arith.constant 0 : i32
    %c0_i32_0 = arith.constant 0 : i32
    return %arg1, %c0_i32 : i32, i32
  }
  func.func @transform_4(%arg0: i32, %arg1: i32) -> (i32, i32, i32) {
    %c0_i32 = arith.constant 0 : i32
    %c0_i32_0 = arith.constant 0 : i32
    return %arg0, %arg1, %c0_i32 : i32, i32, i32
  }
  func.func @transform_5(%arg0: i32, %arg1: i32) -> (i32, i32, i32) {
    %c0_i32 = arith.constant 0 : i32
    %c0_i32_0 = arith.constant 0 : i32
    return %arg0, %arg1, %c0_i32 : i32, i32, i32
  }
}

</mosaic_0001>

<bundles_post_ra>
// kernel: new_model_forward.7
= control target key start
LH: loop header
LB: loop body
LE: loop exit
PB: predicated region body
PF: predicated region fallthrough
CT: control target
= control target key end

     0   :  { %s673_s6 = smov 0   ;;  %s675_s7 = smov 0   ;;  %s820_s0 = inlined_call_operand.vmem [shape: f32[2,128,128], index: 0, kind: input, shape index: {}]   ;;  %s821_s1 = inlined_call_operand.vmem [shape: f32[2,104,128], index: 1, kind: output, shape index: {}]  }
   0x1   :  { %s677_s8 = smov 0  }
   0x2 LB: > { %s23_s9 = sadd.s32 1, %s657_s7  ;;  %p503_p0 = scmp.ge.s32.totalorder %s661_s8, 1  ;;  %s661_s8 = sphi %s677_s8, %s11_s8   ;;  %s657_s7 = sphi %s675_s7, %s823_s7   ;;  %s653_s6 = sphi %s673_s6, %s822_s6  }
   0x3   : > { %p25_p1 = scmp.ge.s32.totalorder %s23_s9, 2  ;;  %p101_p2 = scmp.lt.s32.totalorder %s661_s8, 3 }
   0x5   : > { %s825_s9 = smov (%p25_p1, %s23_s9), 0  ;;  %p102_p3 = pnand %p503_p0, %p101_p2 }
   0x6   : > { %p125_p4 = scmp.lt.s32.totalorder (!%p102_p3), %s653_s6, 1 }
   0x7   : > { %105 = sbr.rel (%p102_p3) target bundleno = 58 (0x3a), region = 24 }
   0xc   : > { %s827_s6 = smov (!%p125_p4, %s653_s6), 1 }
   0xd   : > { %s613_s10 = sshll.u32 %s827_s6, 7  ;;  %s614_s14 = smul.u32 104, %s827_s6 }
   0xe   : > { %s697_s13 = scalar_lea.vmem %s820_s0, %s613_s10 }
   0xf   : > { %v142_v0 = vld [vmem:[%s697_s13] sm:$0xff]  ;;  %v533_v5 = vld [vmem:[%s697_s13 + $0xa] sm:$0xff]  ;;  %v534_v11 = vld [vmem:[%s697_s13 + $0x12] sm:$0xff]  ;;  %s732_s17 = scalar_lea.vmem %s821_s1, %s614_s14 }
  0x10   : > { %v507_v1 = vld [vmem:[%s697_s13 + $0x1] sm:$0xff]  ;;  %v508_v7 = vld [vmem:[%s697_s13 + $0x9] sm:$0xff]  ;;  %v509_v13 = vld [vmem:[%s697_s13 + $0x11] sm:$0xff] }
  0x11   : > { %v520_v2 = vld [vmem:[%s697_s13 + $0x2] sm:$0xff]  ;;  %v170_v3 = vmax.f32 %v142_v0, %v507_v1  ;;  %v546_v8 = vld [vmem:[%s697_s13 + $0xb] sm:$0xff]  ;;  %v547_v18 = vld [vmem:[%s697_s13 + $0x13] sm:$0xff] }
  0x12   : > { %v143_v6 = vld [vmem:[%s697_s13 + $0x8] sm:$0xff]  ;;  %v144_v12 = vld [vmem:[%s697_s13 + $0x10] sm:$0xff]  ;;  %v145_v19 = vld [vmem:[%s697_s13 + $0x18] sm:$0xff] }
  0x13   : > { %v198_v4 = vmax.f32 %v170_v3, %v520_v2  ;;  %v171_v9 = vmax.f32 %v143_v6, %v508_v7  ;;  %v559_v14 = vld [vmem:[%s697_s13 + $0xc] sm:$0xff]  ;;  %v172_v16 = vmax.f32 %v144_v12, %v509_v13  ;;  %v535_v22 = vld [vmem:[%s697_s13 + $0x1a] sm:$0xff]  ;;  %v536_v31 = vld [vmem:[%s697_s13 + $0x22] sm:$0xff] }
  0x14   : > { %v510_v23 = vld [vmem:[%s697_s13 + $0x19] sm:$0xff]  ;;  %v511_v33 = vld [vmem:[%s697_s13 + $0x21] sm:$0xff]  ;;  %v537_v42 = vld [vmem:[%s697_s13 + $0x2a] sm:$0xff] }
  0x15   : > { %v226_v10 = vmax.f32 %v198_v4, %v533_v5  ;;  %v199_v15 = vmax.f32 %v171_v9, %v533_v5  ;;  %v200_v21 = vmax.f32 %v172_v16, %v534_v11  ;;  %v572_v25 = vld [vmem:[%s697_s13 + $0x14] sm:$0xff]  ;;  %v173_v28 = vmax.f32 %v145_v19, %v510_v23  ;;  %v146_v32 = vld [vmem:[%s697_s13 + $0x20] sm:$0xff]  ;;  %v147_v43 = vld [vmem:[%s697_s13 + $0x28] sm:$0xff] }
  0x16   : > { %v585_v26 = vld [vmem:[%s697_s13 + $0x15] sm:$0xff]  ;;  %v549_v38 = vld [vmem:[%s697_s13 + $0x23] sm:$0xff]  ;;  %v174_v39 = vmax.f32 %v146_v32, %v511_v33  ;;  %v550_v54 = vld [vmem:[%s697_s13 + $0x2b] sm:$0xff] }
  0x17   : > { %v254_v17 = vmax.f32 %v226_v10, %v546_v8  ;;  %v227_v20 = vmax.f32 %v199_v15, %v534_v11  ;;  %v548_v27 = vld [vmem:[%s697_s13 + $0x1b] sm:$0xff]  ;;  %v228_v30 = vmax.f32 %v200_v21, %v535_v22  ;;  %v201_v37 = vmax.f32 %v173_v28, %v535_v22  ;;  %v512_v44 = vld [vmem:[%s697_s13 + $0x29] sm:$0xff]  ;;  %v538_v61 = vld [vmem:[%s697_s13 + $0x32] sm:$0xff] }
  0x18   : > { %v598_v35 = vld [vmem:[%s697_s13 + $0x16] sm:$0xff]  ;;  %v599_v47 = vld [vmem:[%s697_s13 + $0x1e] sm:$0xff]  ;;  %v202_v49 = vmax.f32 %v174_v39, %v536_v31  ;;  %v175_v50 = vmax.f32 %v147_v43, %v512_v44  ;;  %v600_v1 = vld [vmem:[%s697_s13 + $0x26] sm:$0xff] }
  0x19   : > { %v282_v24 = vmax.f32 %v254_v17, %v559_v14  ;;  %v255_v29 = vmax.f32 %v227_v20, %v547_v18  ;;  %v573_v36 = vld [vmem:[%s697_s13 + $0x1c] sm:$0xff]  ;;  %v256_v41 = vmax.f32 %v228_v30, %v548_v27  ;;  %v229_v48 = vmax.f32 %v201_v37, %v536_v31  ;;  %v574_v53 = vld [vmem:[%s697_s13 + $0x24] sm:$0xff]  ;;  %v148_v55 = vld [vmem:[%s697_s13 + $0x30] sm:$0xff] }
  0x1a   : > { %v586_v46 = vld [vmem:[%s697_s13 + $0x1d] sm:$0xff]  ;;  %v587_v57 = vld [vmem:[%s697_s13 + $0x25] sm:$0xff]  ;;  %v230_v59 = vmax.f32 %v202_v49, %v537_v42  ;;  %v203_v60 = vmax.f32 %v175_v50, %v537_v42  ;;  %v513_v62 = vld [vmem:[%s697_s13 + $0x31] sm:$0xff] }
  0x1b   : > { %v310_v34 = vmax.f32 %v282_v24, %v572_v25  ;;  %v283_v40 = vmax.f32 %v255_v29, %v572_v25  ;;  %v284_v52 = vmax.f32 %v256_v41, %v573_v36  ;;  %v257_v58 = vmax.f32 %v229_v48, %v549_v38  ;;  %v575_v2 = vld [vmem:[%s697_s13 + $0x2c] sm:$0xff]  ;;  %v539_v8 = vld [vmem:[%s697_s13 + $0x3a] sm:$0xff]  ;;  %v540_v21 = vld [vmem:[%s697_s13 + $0x42] sm:$0xff] }
  0x1c   : > { %v551_v3 = vld [vmem:[%s697_s13 + $0x33] sm:$0xff]  ;;  %v176_v4 = vmax.f32 %v148_v55, %v513_v62  ;;  %v258_v6 = vmax.f32 %v230_v59, %v550_v54  ;;  %v231_v7 = vmax.f32 %v203_v60, %v538_v61  ;;  %v552_v16 = vld [vmem:[%s697_s13 + $0x3b] sm:$0xff]  ;;  %v541_v41 = vld [vmem:[%s697_s13 + $0x4a] sm:$0xff] }
  0x1d   : > { %v338_v45 = vmax.f32 %v310_v34, %v585_v26  ;;  %v311_v51 = vmax.f32 %v283_v40, %v573_v36  ;;  %v312_v0 = vmax.f32 %v284_v52, %v574_v53  ;;  %v285_v5 = vmax.f32 %v257_v58, %v574_v53  ;;  %v149_v9 = vld [vmem:[%s697_s13 + $0x38] sm:$0xff]  ;;  %v588_v13 = vld [vmem:[%s697_s13 + $0x2d] sm:$0xff]  ;;  %v150_v22 = vld [vmem:[%s697_s13 + $0x40] sm:$0xff] }
  0x1e   : > { %v514_v10 = vld [vmem:[%s697_s13 + $0x39] sm:$0xff]  ;;  %v204_v15 = vmax.f32 %v176_v4, %v538_v61  ;;  %v286_v19 = vmax.f32 %v258_v6, %v575_v2  ;;  %v259_v20 = vmax.f32 %v231_v7, %v551_v3  ;;  %v515_v23 = vld [vmem:[%s697_s13 + $0x41] sm:$0xff]  ;;  %v601_v25 = vld [vmem:[%s697_s13 + $0x2e] sm:$0xff] }
  0x1f   : > { %v366_v56 = vmax.f32 %v338_v45, %v598_v35  ;;  %v339_v63 = vmax.f32 %v311_v51, %v586_v46  ;;  %v340_v12 = vmax.f32 %v312_v0, %v587_v57  ;;  %v576_v14 = vld [vmem:[%s697_s13 + $0x34] sm:$0xff]  ;;  %v177_v17 = vmax.f32 %v149_v9, %v514_v10  ;;  %v577_v34 = vld [vmem:[%s697_s13 + $0x3c] sm:$0xff]  ;;  %v151_v36 = vld [vmem:[%s697_s13 + $0x48] sm:$0xff] }
  0x20   : > { %v313_v18 = vmax.f32 %v285_v5, %v575_v2  ;;  %v589_v26 = vld [vmem:[%s697_s13 + $0x35] sm:$0xff]  ;;  %v232_v28 = vmax.f32 %v204_v15, %v539_v8  ;;  %v178_v30 = vmax.f32 %v150_v22, %v515_v23  ;;  %v314_v32 = vmax.f32 %v286_v19, %v576_v14  ;;  %v553_v35 = vld [vmem:[%s697_s13 + $0x43] sm:$0xff]  ;;  %v554_v48 = vld [vmem:[%s697_s13 + $0x4b] sm:$0xff] }
  0x21   : > { %379 = vst [vmem:[%s732_s17] sm:$0xff] %v366_v56  ;;  %v367_v11 = vmax.f32 %v339_v63, %v599_v47  ;;  %v368_v24 = vmax.f32 %v340_v12, %v600_v1  ;;  %v602_v27 = vld [vmem:[%s697_s13 + $0x36] sm:$0xff]  ;;  %v205_v29 = vmax.f32 %v177_v17, %v539_v8  ;;  %v287_v33 = vmax.f32 %v259_v20, %v576_v14  ;;  %v516_v42 = vld [vmem:[%s697_s13 + $0x49] sm:$0xff]  ;;  %v603_v46 = vld [vmem:[%s697_s13 + $0x3e] sm:$0xff] }
  0x22   : > { %v341_v31 = vmax.f32 %v313_v18, %v588_v13  ;;  %v590_v37 = vld [vmem:[%s697_s13 + $0x3d] sm:$0xff]  ;;  %v260_v38 = vmax.f32 %v232_v28, %v552_v16  ;;  %v206_v40 = vmax.f32 %v178_v30, %v540_v21  ;;  %v342_v44 = vmax.f32 %v314_v32, %v589_v26  ;;  %v542_v53 = vld [vmem:[%s697_s13 + $0x52] sm:$0xff]  ;;  %v591_v58 = vld [vmem:[%s697_s13 + $0x45] sm:$0xff] }
  0x23   : > { %380 = vst [vmem:[%s732_s17 + $0x8] sm:$0xff] %v367_v11  ;;  %381 = vst [vmem:[%s732_s17 + $0x10] sm:$0xff] %v368_v24  ;;  %v233_v39 = vmax.f32 %v205_v29, %v540_v21  ;;  %v315_v45 = vmax.f32 %v287_v33, %v577_v34  ;;  %v578_v47 = vld [vmem:[%s697_s13 + $0x44] sm:$0xff]  ;;  %v179_v49 = vmax.f32 %v151_v36, %v516_v42  ;;  %v152_v54 = vld [vmem:[%s697_s13 + $0x50] sm:$0xff] }
  0x24   : > { %v369_v43 = vmax.f32 %v341_v31, %v601_v25  ;;  %v288_v50 = vmax.f32 %v260_v38, %v577_v34  ;;  %v234_v52 = vmax.f32 %v206_v40, %v541_v41  ;;  %v517_v55 = vld [vmem:[%s697_s13 + $0x51] sm:$0xff]  ;;  %v370_v56 = vmax.f32 %v342_v44, %v602_v27  ;;  %v543_v2 = vld [vmem:[%s697_s13 + $0x5a] sm:$0xff]  ;;  %v604_v6 = vld [vmem:[%s697_s13 + $0x46] sm:$0xff] }
  0x25   : > { %v261_v51 = vmax.f32 %v233_v39, %v553_v35  ;;  %v343_v57 = vmax.f32 %v315_v45, %v590_v37  ;;  %v579_v59 = vld [vmem:[%s697_s13 + $0x4c] sm:$0xff]  ;;  %v207_v60 = vmax.f32 %v179_v49, %v541_v41  ;;  %v180_v62 = vmax.f32 %v152_v54, %v517_v55  ;;  %v153_v3 = vld [vmem:[%s697_s13 + $0x58] sm:$0xff]  ;;  %v154_v17 = vld [vmem:[%s697_s13 + $0x60] sm:$0xff] }
  0x26   : > { %382 = vst [vmem:[%s732_s17 + $0x18] sm:$0xff] %v369_v43  ;;  %v555_v61 = vld [vmem:[%s697_s13 + $0x53] sm:$0xff]  ;;  %v316_v63 = vmax.f32 %v288_v50, %v578_v47  ;;  %v262_v1 = vmax.f32 %v234_v52, %v554_v48  ;;  %383 = vst [vmem:[%s732_s17 + $0x20] sm:$0xff] %v370_v56  ;;  %v556_v16 = vld [vmem:[%s697_s13 + $0x5b] sm:$0xff] }
  0x27   : > { %v289_v0 = vmax.f32 %v261_v51, %v578_v47  ;;  %v518_v4 = vld [vmem:[%s697_s13 + $0x59] sm:$0xff]  ;;  %v371_v5 = vmax.f32 %v343_v57, %v603_v46  ;;  %v592_v7 = vld [vmem:[%s697_s13 + $0x4d] sm:$0xff]  ;;  %v235_v9 = vmax.f32 %v207_v60, %v542_v53  ;;  %v208_v10 = vmax.f32 %v180_v62, %v542_v53  ;;  %v544_v22 = vld [vmem:[%s697_s13 + $0x62] sm:$0xff] }
  0x28   : > { %v605_v8 = vld [vmem:[%s697_s13 + $0x4e] sm:$0xff]  ;;  %v181_v11 = vmax.f32 %v153_v3, %v518_v4  ;;  %v344_v12 = vmax.f32 %v316_v63, %v591_v58  ;;  %v290_v14 = vmax.f32 %v262_v1, %v579_v59  ;;  %v519_v23 = vld [vmem:[%s697_s13 + $0x61] sm:$0xff]  ;;  %v606_v30 = vld [vmem:[%s697_s13 + $0x56] sm:$0xff] }
  0x29   : > { %v317_v13 = vmax.f32 %v289_v0, %v579_v59  ;;  %v580_v15 = vld [vmem:[%s697_s13 + $0x54] sm:$0xff]  ;;  %384 = vst [vmem:[%s732_s17 + $0x28] sm:$0xff] %v371_v5  ;;  %v263_v19 = vmax.f32 %v235_v9, %v555_v61  ;;  %v236_v20 = vmax.f32 %v208_v10, %v543_v2  ;;  %v581_v27 = vld [vmem:[%s697_s13 + $0x5c] sm:$0xff]  ;;  %v182_v29 = vmax.f32 %v154_v17, %v519_v23  ;;  %v545_v34 = vld [vmem:[%s697_s13 + $0x6a] sm:$0xff] }
  0x2a   : > { %v593_v18 = vld [vmem:[%s697_s13 + $0x55] sm:$0xff]  ;;  %v209_v21 = vmax.f32 %v181_v11, %v543_v2  ;;  %v372_v24 = vmax.f32 %v344_v12, %v604_v6  ;;  %v318_v26 = vmax.f32 %v290_v14, %v580_v15  ;;  %v557_v28 = vld [vmem:[%s697_s13 + $0x63] sm:$0xff]  ;;  %v558_v43 = vld [vmem:[%s697_s13 + $0x6b] sm:$0xff] }
  0x2b   : > { %v345_v25 = vmax.f32 %v317_v13, %v592_v7  ;;  %v291_v31 = vmax.f32 %v263_v19, %v580_v15  ;;  %v264_v32 = vmax.f32 %v236_v20, %v556_v16  ;;  %v594_v37 = vld [vmem:[%s697_s13 + $0x5d] sm:$0xff]  ;;  %v210_v39 = vmax.f32 %v182_v29, %v544_v22  ;;  %v595_v46 = vld [vmem:[%s697_s13 + $0x65] sm:$0xff]  ;;  %v596_v53 = vld [vmem:[%s697_s13 + $0x6d] sm:$0xff] }
  0x2c   : > { %v237_v33 = vmax.f32 %v209_v21, %v544_v22  ;;  %385 = vst [vmem:[%s732_s17 + $0x30] sm:$0xff] %v372_v24  ;;  %v346_v36 = vmax.f32 %v318_v26, %v593_v18  ;;  %v582_v38 = vld [vmem:[%s697_s13 + $0x64] sm:$0xff]  ;;  %v583_v51 = vld [vmem:[%s697_s13 + $0x6c] sm:$0xff]  ;;  %v584_v58 = vld [vmem:[%s697_s13 + $0x74] sm:$0xff] }
  0x2d   : > { %v373_v35 = vmax.f32 %v345_v25, %v605_v8  ;;  %v319_v40 = vmax.f32 %v291_v31, %v581_v27  ;;  %v292_v41 = vmax.f32 %v264_v32, %v581_v27  ;;  %v607_v45 = vld [vmem:[%s697_s13 + $0x5e] sm:$0xff]  ;;  %v238_v47 = vmax.f32 %v210_v39, %v545_v34  ;;  %v608_v52 = vld [vmem:[%s697_s13 + $0x66] sm:$0xff]  ;;  %v609_v59 = vld [vmem:[%s697_s13 + $0x6e] sm:$0xff] }
  0x2e   : > { %v265_v42 = vmax.f32 %v237_v33, %v557_v28  ;;  %v374_v44 = vmax.f32 %v346_v36, %v606_v30  ;;  %v597_v63 = vld [vmem:[%s697_s13 + $0x75] sm:$0xff] }
  0x2f   : > { %386 = vst [vmem:[%s732_s17 + $0x38] sm:$0xff] %v373_v35  ;;  %v347_v48 = vmax.f32 %v319_v40, %v594_v37  ;;  %v320_v49 = vmax.f32 %v292_v41, %v582_v38  ;;  %v266_v54 = vmax.f32 %v238_v47, %v558_v43  ;;  %v610_v2 = vld [vmem:[%s697_s13 + $0x76] sm:$0xff] }
  0x30   : > { %v293_v50 = vmax.f32 %v265_v42, %v582_v38  ;;  %387 = vst [vmem:[%s732_s17 + $0x40] sm:$0xff] %v374_v44 }
  0x31   : > { %v375_v55 = vmax.f32 %v347_v48, %v607_v45  ;;  %v348_v56 = vmax.f32 %v320_v49, %v595_v46  ;;  %v294_v60 = vmax.f32 %v266_v54, %v583_v51 }
  0x32   : > { %v321_v57 = vmax.f32 %v293_v50, %v583_v51 }
  0x33   : > { %388 = vst [vmem:[%s732_s17 + $0x48] sm:$0xff] %v375_v55  ;;  %v376_v61 = vmax.f32 %v348_v56, %v608_v52  ;;  %v322_v0 = vmax.f32 %v294_v60, %v584_v58 }
  0x34   : > { %v349_v62 = vmax.f32 %v321_v57, %v596_v53 }
  0x35   : > { %389 = vst [vmem:[%s732_s17 + $0x50] sm:$0xff] %v376_v61  ;;  %v350_v3 = vmax.f32 %v322_v0, %v597_v63 }
  0x36   : > { %v377_v1 = vmax.f32 %v349_v62, %v609_v59 }
  0x37   : > { %v378_v4 = vmax.f32 %v350_v3, %v610_v2 }
  0x38   : > { %390 = vst [vmem:[%s732_s17 + $0x58] sm:$0xff] %v377_v1 }
  0x39   : > { %391 = vst [vmem:[%s732_s17 + $0x60] sm:$0xff] %v378_v4 }
  0x3a PF: > { %s11_s8 = sadd.s32 1, %s661_s8   ;;  %s822_s6 = smov %s657_s7 }
  0x3b   : > { %p8_p5 = scmp.ge.s32.totalorder %s11_s8, 4   ;;  %s823_s7 = smov %s825_s9 }
  0x3d   :  { %10 = sbr.rel (!%p8_p5) target bundleno = 2 (0x2), region = 63 }

// kernel: new_model_forward.6
= control target key start
LH: loop header
LB: loop body
LE: loop exit
PB: predicated region body
PF: predicated region fallthrough
CT: control target
= control target key end

     0   :  { %s880_s12 = smov 0   ;;  %s882_s13 = smov 0   ;;  %s991_s0 = inlined_call_operand.vmem [shape: bf16[2,64,256], index: 0, kind: input, shape index: {}]   ;;  %s992_s1 = inlined_call_operand.vmem [shape: bf16[256,128], index: 1, kind: input, shape index: {}]   ;;  %s993_s2 = inlined_call_operand.vmem [shape: f32[1,128], index: 2, kind: input, shape index: {}]   ;;  %s994_s3 = inlined_call_operand.vmem [shape: f32[2,64,128], index: 3, kind: output, shape index: {}]  }
   0x1   :  { %s884_s14 = smov 0  }
   0x2 LB: > { %s32_s15 = sadd.s32 1, %s854_s13  ;;  %p694_p0 = scmp.ge.s32.totalorder %s858_s14, 1  ;;  %s858_s14 = sphi %s884_s14, %s13_s14   ;;  %s854_s13 = sphi %s882_s13, %s996_s13   ;;  %s850_s12 = sphi %s880_s12, %s995_s12  }
   0x3   : > { %p34_p1 = scmp.ge.s32.totalorder %s32_s15, 2  ;;  %p184_p2 = scmp.lt.s32.totalorder %s858_s14, 3 }
   0x5   : > { %s998_s15 = smov (%p34_p1, %s32_s15), 0  ;;  %p185_p3 = pnand %p694_p0, %p184_p2 }
   0x6   : > { %p228_p4 = scmp.lt.s32.totalorder (!%p185_p3), %s850_s12, 1 }
   0x7   : > { %188 = sbr.rel (%p185_p3) target bundleno = 259 (0x103), region = 32 }
   0xc   : > { %v808_v0 = vld [vmem:[%s992_s1 + $0x78] sm:$0xff]   ;;  %v810_v2 = vld [vmem:[%s992_s1 + $0x70] sm:$0xff]   ;;  %v812_v4 = vld [vmem:[%s992_s1 + $0x68] sm:$0xff]   ;;  %s1000_s12 = smov (!%p228_p4, %s850_s12), 1 }
   0xd   : > { %v809_v1 = vld [vmem:[%s992_s1 + $0x38] sm:$0xff]   ;;  %728 = vmatprep.subr.bf16.mxu0 %v808_v0  ;;  %768 = vmatprep.subr.bf16.mxu1 %v808_v0  ;;  %v811_v3 = vld [vmem:[%s992_s1 + $0x30] sm:$0xff]   ;;  %v813_v5 = vld [vmem:[%s992_s1 + $0x28] sm:$0xff]   ;;  %s726_s5 = sshll.u32 %s1000_s12, 6 }
   0xe   : > { %729 = vmatpush3.bf16.msra.mxu0 %v809_v1  ;;  %776 = vmatpush3.bf16.msra.mxu1 %v809_v1  ;;  %v814_v6 = vld [vmem:[%s992_s1 + $0x60] sm:$0xff]   ;;  %v816_v8 = vld [vmem:[%s992_s1 + $0x58] sm:$0xff]   ;;  %s933_s10 = scalar_lea.vmem %s991_s0, %s726_s5  ;;  %v818_v10 = vld [vmem:[%s992_s1 + $0x50] sm:$0xff]   ;;  %s972_s7 = scalar_lea.vmem %s994_s3, %s726_s5 }
   0xf   : > { %730 = vmatprep.subr.bf16.mxu0 %v810_v2  ;;  %769 = vmatprep.subr.bf16.mxu1 %v810_v2  ;;  %v815_v7 = vld [vmem:[%s992_s1 + $0x20] sm:$0xff]   ;;  %v817_v9 = vld [vmem:[%s992_s1 + $0x18] sm:$0xff]   ;;  %v819_v13 = vld [vmem:[%s992_s1 + $0x10] sm:$0xff]  }
  0x10   : > { %v826_v11 = vld [vmem:[%s933_s10 + $0x4] ss:$8 sps:$4 sm:$0xff]   ;;  %v824_v18 = vld [vmem:[%s933_s10] ss:$8 sps:$4 sm:$0xff]   ;;  %v830_v20 = vld [vmem:[%s933_s10 + $0x14] ss:$8 sps:$4 sm:$0xff]  }
  0x11   : > { %v829_v12 = vld [vmem:[%s933_s10 + $0x24] ss:$8 sps:$4 sm:$0xff]   ;;  %487 = vmatprep.mubr.bf16.mxu0 %v826_v11  ;;  %v827_v19 = vld [vmem:[%s933_s10 + $0x20] ss:$8 sps:$4 sm:$0xff]   ;;  %v832_v21 = vld [vmem:[%s933_s10 + $0x34] ss:$8 sps:$4 sm:$0xff]  }
  0x12   : > { %731 = vmatpush3.bf16.msra.mxu0 %v811_v3  ;;  %777 = vmatpush3.bf16.msra.mxu1 %v811_v3  ;;  %v820_v14 = vld [vmem:[%s992_s1 + $0x48] sm:$0xff]   ;;  %v822_v16 = vld [vmem:[%s992_s1 + $0x40] sm:$0xff]   ;;  %v834_v22 = vld [vmem:[%s933_s10 + $0x10] ss:$8 sps:$4 sm:$0xff]  }
  0x13   : > { %732 = vmatprep.subr.bf16.mxu0 %v812_v4  ;;  %770 = vmatprep.subr.bf16.mxu1 %v812_v4  ;;  %v821_v15 = vld [vmem:[%s992_s1 + $0x8] sm:$0xff]   ;;  %v823_v17 = vld [vmem:[%s992_s1] sm:$0xff]   ;;  %v835_v23 = vld [vmem:[%s933_s10 + $0x30] ss:$8 sps:$4 sm:$0xff]  }
  0x14   : > { %503 = vmatprep.mubr.bf16.mxu1 %v829_v12  ;;  %v723_v27 = vld [vmem:[%s993_s2] ss:$0 sm:$0xff] }
  0x16   : > { %733 = vmatpush3.bf16.msra.mxu0 %v813_v5  ;;  %778 = vmatpush3.bf16.msra.mxu1 %v813_v5 }
  0x17   : > { %734 = vmatprep.subr.bf16.mxu0 %v814_v6  ;;  %771 = vmatprep.subr.bf16.mxu1 %v814_v6 }
  0x1a   : > { %735 = vmatpush3.bf16.msra.mxu0 %v815_v7  ;;  %779 = vmatpush3.bf16.msra.mxu1 %v815_v7 }
  0x1b   : > { %736 = vmatprep.subr.bf16.mxu0 %v816_v8  ;;  %772 = vmatprep.subr.bf16.mxu1 %v816_v8 }
  0x1e   : > { %737 = vmatpush3.bf16.msra.mxu0 %v817_v9  ;;  %780 = vmatpush3.bf16.msra.mxu1 %v817_v9 }
  0x1f   : > { %738 = vmatprep.subr.bf16.mxu0 %v818_v10  ;;  %773 = vmatprep.subr.bf16.mxu1 %v818_v10 }
  0x22   : > { %739 = vmatpush3.bf16.msra.mxu0 %v819_v13  ;;  %781 = vmatpush3.bf16.msra.mxu1 %v819_v13 }
  0x23   : > { %740 = vmatprep.subr.bf16.mxu0 %v820_v14  ;;  %774 = vmatprep.subr.bf16.mxu1 %v820_v14 }
  0x26   : > { %741 = vmatpush3.bf16.msra.mxu0 %v821_v15  ;;  %782 = vmatpush3.bf16.msra.mxu1 %v821_v15 }
  0x27   : > { %742 = vmatprep.subr.bf16.mxu0 %v822_v16  ;;  %775 = vmatprep.subr.bf16.mxu1 %v822_v16 }
  0x2a   : > { %743 = vmatpush3.bf16.msra.mxu0 %v823_v17  ;;  %783 = vmatpush3.bf16.msra.mxu1 %v823_v17 }
  0x2d   : > { %488 = vmatmul.mubr.bf16.vlgmr.msra.gmra.mxu0 %v824_v18  ;;  %504 = vmatmul.mubr.bf16.vlgmr.msra.gmra.mxu1 %v827_v19 }
  0x2e   : > { %495 = vmatprep.mubr.bf16.mxu0 %v830_v20  ;;  %511 = vmatprep.mubr.bf16.mxu1 %v832_v21 }
  0x35   : > { %496 = vmatmul.mubr.bf16.gmra.mxu0 %v834_v22  ;;  %512 = vmatmul.mubr.bf16.gmra.mxu1 %v835_v23 }
  0xed   : > { %v744_v24 = vpop.f32.mrf.mxu0  ;;  %v756_v25 = vpop.f32.mrf.mxu1 }
  0xef   : > { %v745_v26 = vpop.f32.mrf.mxu0  ;;  %v757_v28 = vpop.f32.mrf.mxu1 }
  0xf0   : > { %v746_v29 = vadd.f32 %v745_v26, %v744_v24  ;;  %v758_v30 = vadd.f32 %v757_v28, %v756_v25 }
  0xf1   : > { %v747_v31 = vpop.f32.mrf.mxu0  ;;  %v759_v32 = vpop.f32.mrf.mxu1 }
  0xf2   : > { %v554_v33 = vadd.f32 %v746_v29, %v723_v27  ;;  %v558_v34 = vadd.f32 %v758_v30, %v723_v27 }
  0xf3   : > { %v748_v35 = vpop.f32.mrf.mxu0  ;;  %v760_v36 = vpop.f32.mrf.mxu1 }
  0xf4   : > { %v562_v37 = vmax.f32 %v554_v33, 0.0  ;;  %v566_v38 = vmax.f32 %v558_v34, 0.0  ;;  %v749_v39 = vadd.f32 %v748_v35, %v747_v31  ;;  %v761_v40 = vadd.f32 %v760_v36, %v759_v32 }
  0xf5   : > { %v750_v41 = vpop.f32.mrf.mxu0  ;;  %v762_v42 = vpop.f32.mrf.mxu1 }
  0xf6   : > { %570 = vst [vmem:[%s972_s7] sm:$0xff] %v562_v37  ;;  %574 = vst [vmem:[%s972_s7 + $0x20] sm:$0xff] %v566_v38  ;;  %v555_v43 = vadd.f32 %v749_v39, %v723_v27  ;;  %v559_v44 = vadd.f32 %v761_v40, %v723_v27 }
  0xf7   : > { %v751_v45 = vpop.f32.mrf.mxu0  ;;  %v763_v46 = vpop.f32.mrf.mxu1 }
  0xf8   : > { %v563_v47 = vmax.f32 %v555_v43, 0.0  ;;  %v567_v48 = vmax.f32 %v559_v44, 0.0  ;;  %v752_v49 = vadd.f32 %v751_v45, %v750_v41  ;;  %v764_v50 = vadd.f32 %v763_v46, %v762_v42 }
  0xf9   : > { %v753_v51 = vpop.f32.mrf.mxu0  ;;  %v765_v52 = vpop.f32.mrf.mxu1 }
  0xfa   : > { %571 = vst [vmem:[%s972_s7 + $0x8] sm:$0xff] %v563_v47  ;;  %575 = vst [vmem:[%s972_s7 + $0x28] sm:$0xff] %v567_v48  ;;  %v556_v53 = vadd.f32 %v752_v49, %v723_v27  ;;  %v560_v54 = vadd.f32 %v764_v50, %v723_v27 }
  0xfb   : > { %v754_v55 = vpop.f32.mrf.mxu0  ;;  %v766_v56 = vpop.f32.mrf.mxu1 }
  0xfc   : > { %v564_v57 = vmax.f32 %v556_v53, 0.0  ;;  %v568_v58 = vmax.f32 %v560_v54, 0.0  ;;  %v755_v59 = vadd.f32 %v754_v55, %v753_v51  ;;  %v767_v60 = vadd.f32 %v766_v56, %v765_v52 }
  0xfe   : > { %572 = vst [vmem:[%s972_s7 + $0x10] sm:$0xff] %v564_v57  ;;  %576 = vst [vmem:[%s972_s7 + $0x30] sm:$0xff] %v568_v58  ;;  %v557_v61 = vadd.f32 %v755_v59, %v723_v27  ;;  %v561_v62 = vadd.f32 %v767_v60, %v723_v27 }
 0x100   : > { %v565_v63 = vmax.f32 %v557_v61, 0.0  ;;  %v569_v0 = vmax.f32 %v561_v62, 0.0 }
 0x102   : > { %573 = vst [vmem:[%s972_s7 + $0x18] sm:$0xff] %v565_v63  ;;  %577 = vst [vmem:[%s972_s7 + $0x38] sm:$0xff] %v569_v0 }
 0x103 PF: > { %s13_s14 = sadd.s32 1, %s858_s14   ;;  %s995_s12 = smov %s854_s13 }
 0x104   : > { %p10_p5 = scmp.ge.s32.totalorder %s13_s14, 4   ;;  %s996_s13 = smov %s998_s15 }
 0x106   :  { %12 = sbr.rel (!%p10_p5) target bundleno = 2 (0x2), region = 73 }

// kernel: new_model_forward.8
= control target key start
LH: loop header
LB: loop body
LE: loop exit
PB: predicated region body
PF: predicated region fallthrough
CT: control target
= control target key end

     0   :  { %s2409_s15 = smov 0   ;;  %s2411_s16 = smov 0   ;;  %s2912_s0 = inlined_call_operand.vmem [shape: f32[2,54,128], index: 0, kind: input, shape index: {}]   ;;  %s2913_s1 = inlined_call_operand.vmem [shape: bf16[9,128,128], index: 1, kind: input, shape index: {}]   ;;  %s2914_s2 = inlined_call_operand.vmem [shape: f32[1,128], index: 2, kind: input, shape index: {}]   ;;  %s2915_s3 = inlined_call_operand.vmem [shape: f32[40,1], index: 3, kind: input, shape index: {}]   ;;  %s2916_s4 = inlined_call_operand.vmem [shape: f32[2,40,128], index: 4, kind: output, shape index: {}]  }
   0x1   :  { %s2413_s17 = smov 0  }
   0x2 LB: > { %s26_s18 = sadd.s32 1, %s2375_s16  ;;  %p1641_p0 = scmp.ge.s32.totalorder %s2379_s17, 1  ;;  %s2379_s17 = sphi %s2413_s17, %s14_s17   ;;  %s2375_s16 = sphi %s2411_s16, %s2918_s16   ;;  %s2371_s15 = sphi %s2409_s15, %s2917_s15  }
   0x3   : > { %p28_p1 = scmp.ge.s32.totalorder %s26_s18, 2  ;;  %p187_p2 = scmp.lt.s32.totalorder %s2379_s17, 3 }
   0x5   : > { %s2920_s18 = smov (%p28_p1, %s26_s18), 0  ;;  %p188_p3 = pnand %p1641_p0, %p187_p2 }
   0x6   : > { %p222_p4 = scmp.lt.s32.totalorder (!%p188_p3), %s2371_s15, 1 }
   0x7   : > { %191 = sbr.rel (%p188_p3) target bundleno = 384 (0x180), region = 36 }
   0xc   : > { %v2285_v0 = vld [vmem:[%s2913_s1 + $0x78] sm:$0xff]   ;;  %v2381_v1 = vmov 0.0   ;;  %v2287_v3 = vld [vmem:[%s2913_s1 + $0x70] sm:$0xff]   ;;  %vm2382_vm0 = vmmov 0   ;;  %v2289_v5 = vld [vmem:[%s2913_s1 + $0x68] sm:$0xff]   ;;  %s2922_s15 = smov (!%p222_p4, %s2371_s15), 1 }
   0xd   : > { %1986 = vmatprep.subr.bf16.mxu0 %v2381_v1  ;;  %2014 = vmatprep.subr.bf16.mxu1 %v2381_v1  ;;  %v2286_v2 = vld [vmem:[%s2913_s1 + $0x38] sm:$0xff]   ;;  %v2288_v4 = vld [vmem:[%s2913_s1 + $0x30] sm:$0xff]   ;;  %v2290_v6 = vld [vmem:[%s2913_s1 + $0x28] sm:$0xff]   ;;  %s2254_s13 = smul.u32 56, %s2922_s15  ;;  %v2383_v43 = vmov 0  }
   0xe   : > { %1987 = vmatpush3.bf16.msra.mxu0 %v2285_v0  ;;  %2002 = vmatprep.mubr.msk.bf16.mxu0 %vm2382_vm0, %v2381_v1  ;;  %v2291_v7 = vld [vmem:[%s2913_s1 + $0x60] sm:$0xff]   ;;  %v2293_v9 = vld [vmem:[%s2913_s1 + $0x58] sm:$0xff]   ;;  %v2295_v11 = vld [vmem:[%s2913_s1 + $0x50] sm:$0xff]   ;;  %s2255_s30 = smul.u32 40, %s2922_s15 }
   0xf   : > { %2015 = vmatpush3.bf16.msra.mxu1 %v2286_v2  ;;  %1988 = vmatprep.subr.bf16.mxu0 %v2381_v1  ;;  %v2292_v8 = vld [vmem:[%s2913_s1 + $0x20] sm:$0xff]   ;;  %v2294_v10 = vld [vmem:[%s2913_s1 + $0x18] sm:$0xff]   ;;  %v2296_v12 = vld [vmem:[%s2913_s1 + $0x10] sm:$0xff]   ;;  %s2489_s24 = scalar_lea.vmem %s2912_s0, %s2254_s13 }
  0x10   : > { %2016 = vmatprep.subr.bf16.mxu1 %v2381_v1  ;;  %2030 = vmatprep.mubr.msk.bf16.mxu1 %vm2382_vm0, %v2381_v1  ;;  %v2297_v13 = vld [vmem:[%s2913_s1 + $0x48] sm:$0xff]   ;;  %v2299_v15 = vld [vmem:[%s2913_s1 + $0x40] sm:$0xff]   ;;  %v2301_v23 = vld [vmem:[%s2913_s1 + $0xb8] sm:$0xff]   ;;  %s241_s7 = scalar_lea.vmem %s2916_s4, %s2255_s30 }
  0x11   : > { %v2298_v14 = vld [vmem:[%s2913_s1 + $0x8] sm:$0xff]   ;;  %v2300_v17 = vld [vmem:[%s2913_s1] sm:$0xff]   ;;  %v2302_v24 = vld [vmem:[%s2913_s1 + $0xf8] sm:$0xff]   ;;  %2283 = vset.pattern.permute.xlu0 %v2383_v43  ;;  %2284 = vset.pattern.permute.xlu1 %v2383_v43 }
  0x12   : > { %1989 = vmatpush3.bf16.msra.mxu0 %v2287_v3  ;;  %v1644_v16 = vld [vmem:[%s2489_s24 + $0x1] sm:$0xff]  ;;  %v1645_v18 = vld [vmem:[%s2489_s24 + $0x9] sm:$0xff]  ;;  %v1646_v26 = vld [vmem:[%s2489_s24 + $0x11] sm:$0xff] }
  0x13   : > { %2017 = vmatpush3.bf16.msra.mxu1 %v2288_v4  ;;  %1990 = vmatprep.subr.bf16.mxu0 %v2381_v1  ;;  %v246_v19 = vld [vmem:[%s2489_s24] sm:$0xff]  ;;  %v2510_v20 = vld [vmem:[%s2489_s24 + $0x8] sm:$0xff]  ;;  %v277_v21 = vpack.c.bf16 %v1645_v18, %v1644_v16  ;;  %v2303_v25 = vld [vmem:[%s2913_s1 + $0xb0] sm:$0xff]  }
  0x14   : > { %2018 = vmatprep.subr.bf16.mxu1 %v2381_v1  ;;  %v251_v22 = vpack.c.bf16 %v2510_v20, %v246_v19  ;;  %v1647_v27 = vld [vmem:[%s2489_s24 + $0x19] sm:$0xff]  ;;  %v2304_v28 = vld [vmem:[%s2913_s1 + $0xf0] sm:$0xff]   ;;  %v2305_v32 = vld [vmem:[%s2913_s1 + $0xa8] sm:$0xff]  }
  0x15   : > { %v2532_v29 = vld [vmem:[%s2489_s24 + $0x10] sm:$0xff]  ;;  %v2535_v30 = vld [vmem:[%s2489_s24 + $0x18] sm:$0xff]  ;;  %v278_v31 = vpack.c.bf16 %v1647_v27, %v1646_v26  ;;  %v2306_v34 = vld [vmem:[%s2913_s1 + $0xe8] sm:$0xff]  }
  0x16   : > { %1991 = vmatpush3.bf16.msra.mxu0 %v2289_v5  ;;  %v252_v33 = vpack.c.bf16 %v2535_v30, %v2532_v29  ;;  %v2307_v35 = vld [vmem:[%s2913_s1 + $0xa0] sm:$0xff]   ;;  %v2564_v39 = vld [vmem:[%s2489_s24 + $0xe] sm:$0xff]  ;;  %v2567_v40 = vld [vmem:[%s2489_s24 + $0x16] sm:$0xff] }
  0x17   : > { %2019 = vmatpush3.bf16.msra.mxu1 %v2290_v6  ;;  %1992 = vmatprep.subr.bf16.mxu0 %v2381_v1  ;;  %v2308_v36 = vld [vmem:[%s2913_s1 + $0xe0] sm:$0xff]   ;;  %v1328_v41 = vpack.c.bf16 %v2567_v40, %v2564_v39  ;;  %v2309_v44 = vld [vmem:[%s2913_s1 + $0x98] sm:$0xff]   ;;  %v2311_v50 = vld [vmem:[%s2913_s1 + $0x90] sm:$0xff]  }
  0x18   : > { %2020 = vmatprep.subr.bf16.mxu1 %v2381_v1  ;;  %v1648_v37 = vld [vmem:[%s2489_s24 + $0x21] sm:$0xff]  ;;  %v2310_v46 = vld [vmem:[%s2913_s1 + $0xd8] sm:$0xff]   ;;  %v2312_v51 = vld [vmem:[%s2913_s1 + $0xd0] sm:$0xff]  }
  0x19   : > { %v2561_v38 = vld [vmem:[%s2489_s24 + $0x20] sm:$0xff]  ;;  %v279_v42 = vpack.c.bf16 %v1648_v37, %v1648_v37  ;;  %v2313_v52 = vld [vmem:[%s2913_s1 + $0x88] sm:$0xff]   ;;  %v2317_v61 = vld [vmem:[%s2913_s1 + $0x138] sm:$0xff]  }
  0x1a   : > { %1993 = vmatpush3.bf16.msra.mxu0 %v2291_v7  ;;  %v253_v45 = vpack.c.bf16 %v2561_v38, %v2561_v38  ;;  %v2587_v47 = vld [vmem:[%s2489_s24 + $0x1e] sm:$0xff]  ;;  %v2590_v48 = vld [vmem:[%s2489_s24 + $0x26] sm:$0xff]  ;;  %v2319_v63 = vld [vmem:[%s2913_s1 + $0x130] sm:$0xff]  }
  0x1b   : > { %2021 = vmatpush3.bf16.msra.mxu1 %v2292_v8  ;;  %1994 = vmatprep.subr.bf16.mxu0 %v2381_v1  ;;  %v1329_v49 = vpack.c.bf16 %v2590_v48, %v2587_v47  ;;  %v2314_v53 = vld [vmem:[%s2913_s1 + $0xc8] sm:$0xff]   ;;  %v2315_v54 = vld [vmem:[%s2913_s1 + $0x80] sm:$0xff]   ;;  %v2318_v62 = vld [vmem:[%s2913_s1 + $0x178] sm:$0xff]   ;;  %v649_v6 = vpack.c.bf16 %v2587_v47, %v2567_v40 }
  0x1c   : > { %2022 = vmatprep.subr.bf16.mxu1 %v2381_v1  ;;  %v1681_v55 = vld [vmem:[%s2489_s24 + $0x2] sm:$0xff]  ;;  %v1682_v56 = vld [vmem:[%s2489_s24 + $0xa] sm:$0xff]  ;;  %v1683_v0 = vld [vmem:[%s2489_s24 + $0x12] sm:$0xff] }
  0x1d   : > { %v2316_v57 = vld [vmem:[%s2913_s1 + $0xc0] sm:$0xff]   ;;  %v512_v59 = vpack.c.bf16 %v1682_v56, %v1681_v55  ;;  %v2320_v3 = vld [vmem:[%s2913_s1 + $0x170] sm:$0xff]   ;;  %v2321_v5 = vld [vmem:[%s2913_s1 + $0x128] sm:$0xff]  }
  0x1e   : > { %1995 = vmatpush3.bf16.msra.mxu0 %v2293_v9  ;;  %v1710_v58 = vld [vmem:[%s2489_s24 + $0x6] sm:$0xff]  ;;  %v1684_v2 = vld [vmem:[%s2489_s24 + $0x1a] sm:$0xff]  ;;  %v2328_v16 = vld [vmem:[%s2913_s1 + $0x150] sm:$0xff]  }
  0x1f   : > { %2023 = vmatpush3.bf16.msra.mxu1 %v2294_v10  ;;  %1996 = vmatprep.subr.bf16.mxu0 %v2381_v1  ;;  %v648_v60 = vpack.c.bf16 %v2564_v39, %v1710_v58  ;;  %v513_v4 = vpack.c.bf16 %v1684_v2, %v1683_v0  ;;  %v2322_v7 = vld [vmem:[%s2913_s1 + $0x168] sm:$0xff]   ;;  %v2323_v8 = vld [vmem:[%s2913_s1 + $0x120] sm:$0xff]   ;;  %v2333_v26 = vld [vmem:[%s2913_s1 + $0x1b8] sm:$0xff]  }
  0x20   : > { %2024 = vmatprep.subr.bf16.mxu1 %v2381_v1  ;;  %v1685_v9 = vld [vmem:[%s2489_s24 + $0x22] sm:$0xff]  ;;  %v2334_v27 = vld [vmem:[%s2913_s1 + $0x1f8] sm:$0xff]   ;;  %v2344_v55 = vld [vmem:[%s2913_s1 + $0x1d0] sm:$0xff]  }
  0x21   : > { %v2324_v10 = vld [vmem:[%s2913_s1 + $0x160] sm:$0xff]   ;;  %v2330_v18 = vld [vmem:[%s2913_s1 + $0x148] sm:$0xff]  }
  0x22   : > { %1997 = vmatpush3.bf16.msra.mxu0 %v2295_v11  ;;  %v514_v11 = vpack.c.bf16 %v1685_v9, %v1685_v9  ;;  %v2331_v19 = vld [vmem:[%s2913_s1 + $0x100] sm:$0xff]   ;;  %v2338_v37 = vld [vmem:[%s2913_s1 + $0x1e8] sm:$0xff]  }
  0x23   : > { %2025 = vmatpush3.bf16.msra.mxu1 %v2296_v12  ;;  %1998 = vmatprep.subr.bf16.mxu0 %v2381_v1  ;;  %v2325_v12 = vld [vmem:[%s2913_s1 + $0x118] sm:$0xff]   ;;  %v2340_v43 = vld [vmem:[%s2913_s1 + $0x1e0] sm:$0xff]   ;;  %v2345_v56 = vld [vmem:[%s2913_s1 + $0x188] sm:$0xff]  }
  0x24   : > { %2026 = vmatprep.subr.bf16.mxu1 %v2381_v1  ;;  %v2347_v58 = vld [vmem:[%s2913_s1 + $0x180] sm:$0xff]  }
  0x26   : > { %1999 = vmatpush3.bf16.msra.mxu0 %v2297_v13  ;;  %v650_v13 = vpack.c.bf16 %v2590_v48, %v2590_v48 }
  0x27   : > { %2027 = vmatpush3.bf16.msra.mxu1 %v2298_v14  ;;  %2000 = vmatprep.subr.bf16.mxu0 %v2381_v1  ;;  %v2326_v14 = vld [vmem:[%s2913_s1 + $0x158] sm:$0xff]  }
  0x28   : > { %2028 = vmatprep.subr.bf16.mxu1 %v2381_v1 }
  0x2a   : > { %2001 = vmatpush3.bf16.msra.mxu0 %v2299_v15  ;;  %v2327_v15 = vld [vmem:[%s2913_s1 + $0x110] sm:$0xff]  }
  0x2b   : > { %2029 = vmatpush3.bf16.msra.mxu1 %v2300_v17  ;;  %2042 = vmatprep.subr.bf16.mxu0 %v2381_v1  ;;  %v2329_v17 = vld [vmem:[%s2913_s1 + $0x108] sm:$0xff]  }
  0x2c   : > { %2070 = vmatprep.subr.bf16.mxu1 %v2381_v1 }
  0x2d   : > { %2003 = vmatmul.mubr.bf16.vlgmr.msra.gmra.mxu0 %v277_v21  ;;  %v1739_v21 = vld [vmem:[%s2489_s24 + $0x7] sm:$0xff] }
  0x2e   : > { %2031 = vmatmul.mubr.bf16.vlgmr.msra.gmra.mxu1 %v251_v22  ;;  %2043 = vmatpush3.bf16.msra.mxu0 %v2301_v23  ;;  %v1740_v22 = vld [vmem:[%s2489_s24 + $0xf] sm:$0xff]  ;;  %v2332_v23 = vld [vmem:[%s2913_s1 + $0x140] sm:$0xff]  }
  0x2f   : > { %2071 = vmatpush3.bf16.msra.mxu1 %v2302_v24  ;;  %2044 = vmatprep.subr.bf16.mxu0 %v2381_v1  ;;  %v784_v24 = vpack.c.bf16 %v1740_v22, %v1739_v21  ;;  %v2356_v21 = vld [vmem:[%s2913_s1 + $0x200] sm:$0xff]   ;;  %v1859_v22 = vld [vmem:[%s2489_s24 + $0x2e] sm:$0xff] }
  0x30   : > { %2072 = vmatprep.subr.bf16.mxu1 %v2381_v1  ;;  %2034 = vmatprep.mubr.msk.bf16.mxu1 %vm2382_vm0, %v2381_v1 }
  0x31   : > { %2006 = vmatprep.mubr.msk.bf16.mxu0 %vm2382_vm0, %v2381_v1 }
  0x32   : > { %2045 = vmatpush3.bf16.msra.mxu0 %v2303_v25  ;;  %v920_v25 = vpack.c.bf16 %v2532_v29, %v2510_v20  ;;  %v1741_v20 = vld [vmem:[%s2489_s24 + $0x17] sm:$0xff]  ;;  %v1742_v29 = vld [vmem:[%s2489_s24 + $0x1f] sm:$0xff] }
  0x33   : > { %2073 = vmatpush3.bf16.msra.mxu1 %v2304_v28  ;;  %2046 = vmatprep.subr.bf16.mxu0 %v2381_v1  ;;  %v2335_v28 = vld [vmem:[%s2913_s1 + $0x1b0] sm:$0xff]  }
  0x34   : > { %2074 = vmatprep.subr.bf16.mxu1 %v2381_v1 }
  0x35   : > { %2007 = vmatmul.mubr.bf16.gmra.mxu0 %v278_v31  ;;  %v1469_v31 = vld [vmem:[%s2915_s3] sm:$0xff] }
  0x36   : > { %2047 = vmatpush3.bf16.msra.mxu0 %v2305_v32  ;;  %2035 = vmatmul.mubr.bf16.gmra.mxu1 %v252_v33  ;;  %v2336_v32 = vld [vmem:[%s2913_s1 + $0x1f0] sm:$0xff]   ;;  %v785_v33 = vpack.c.bf16 %v1742_v29, %v1741_v20 }
  0x37   : > { %2075 = vmatpush3.bf16.msra.mxu1 %v2306_v34  ;;  %2048 = vmatprep.subr.bf16.mxu0 %v2381_v1  ;;  %v2337_v34 = vld [vmem:[%s2913_s1 + $0x1a8] sm:$0xff]  }
  0x38   : > { %2076 = vmatprep.subr.bf16.mxu1 %v2381_v1  ;;  %2038 = vmatprep.mubr.msk.bf16.mxu1 %vm2382_vm0, %v2381_v1 }
  0x39   : > { %2010 = vmatprep.mubr.msk.bf16.mxu0 %vm2382_vm0, %v2381_v1  ;;  %1476 = vperm.xlu0 %2283, %v1469_v31  }
  0x3a   : > { %2049 = vmatpush3.bf16.msra.mxu0 %v2307_v35  ;;  %v921_v35 = vpack.c.bf16 %v2561_v38, %v2535_v30  ;;  %v2339_v30 = vld [vmem:[%s2913_s1 + $0x1a0] sm:$0xff]  }
  0x3b   : > { %2077 = vmatpush3.bf16.msra.mxu1 %v2308_v36  ;;  %2050 = vmatprep.subr.bf16.mxu0 %v2381_v1  ;;  %v1470_v36 = vld [vmem:[%s2915_s3 + $0x8] sm:$0xff] }
  0x3c   : > { %2078 = vmatprep.subr.bf16.mxu1 %v2381_v1  ;;  %v1743_v38 = vld [vmem:[%s2489_s24 + $0x27] sm:$0xff] }
  0x3d   : > { %2011 = vmatmul.mubr.bf16.gmra.mxu0 %v279_v42  ;;  %1481 = vperm.xlu0 %2283, %v1470_v36   ;;  %v1471_v42 = vld [vmem:[%s2915_s3 + $0x10] sm:$0xff] }
  0x3e   : > { %2051 = vmatpush3.bf16.msra.mxu0 %v2309_v44  ;;  %2039 = vmatmul.mubr.bf16.gmra.mxu1 %v253_v45  ;;  %v1772_v44 = vld [vmem:[%s2489_s24 + $0x28] sm:$0xff]  ;;  %v1473_v45 = vld [vmem:[%s2915_s3 + $0x20] sm:$0xff] }
  0x3f   : > { %2079 = vmatpush3.bf16.msra.mxu1 %v2310_v46  ;;  %2052 = vmatprep.subr.bf16.mxu0 %v2381_v1  ;;  %v786_v46 = vpack.c.bf16 %v1743_v38, %v1743_v38 }
  0x40   : > { %2080 = vmatprep.subr.bf16.mxu1 %v2381_v1  ;;  %2058 = vmatprep.mubr.msk.bf16.mxu0 %vm2382_vm0, %v2381_v1 }
  0x41   : > { %2086 = vmatprep.mubr.msk.bf16.mxu1 %vm2382_vm0, %v2381_v1  ;;  %1486 = vperm.xlu1 %2284, %v1471_v42  }
  0x42   : > { %2053 = vmatpush3.bf16.msra.mxu0 %v2311_v50  ;;  %v2341_v50 = vld [vmem:[%s2913_s1 + $0x198] sm:$0xff]   ;;  %1496 = vperm.xlu0 %2283, %v1473_v45  }
  0x43   : > { %2081 = vmatpush3.bf16.msra.mxu1 %v2312_v51  ;;  %2054 = vmatprep.subr.bf16.mxu0 %v2381_v1  ;;  %v922_v51 = vpack.c.bf16 %v1772_v44, %v1772_v44 }
  0x44   : > { %2082 = vmatprep.subr.bf16.mxu1 %v2381_v1 }
  0x46   : > { %2055 = vmatpush3.bf16.msra.mxu0 %v2313_v52  ;;  %v1472_v52 = vld [vmem:[%s2915_s3 + $0x18] sm:$0xff] }
  0x47   : > { %2083 = vmatpush3.bf16.msra.mxu1 %v2314_v53  ;;  %2056 = vmatprep.subr.bf16.mxu0 %v2381_v1  ;;  %v2342_v53 = vld [vmem:[%s2913_s1 + $0x1d8] sm:$0xff]  }
  0x48   : > { %2084 = vmatprep.subr.bf16.mxu1 %v2381_v1  ;;  %1491 = vperm.xlu1 %2284, %v1472_v52  }
  0x4a   : > { %2057 = vmatpush3.bf16.msra.mxu0 %v2315_v54  ;;  %v2343_v54 = vld [vmem:[%s2913_s1 + $0x190] sm:$0xff]  }
  0x4b   : > { %2085 = vmatpush3.bf16.msra.mxu1 %v2316_v57  ;;  %2098 = vmatprep.subr.bf16.mxu0 %v2381_v1  ;;  %v2346_v57 = vld [vmem:[%s2913_s1 + $0x1c8] sm:$0xff]  }
  0x4c   : > { %2126 = vmatprep.subr.bf16.mxu1 %v2381_v1 }
  0x4d   : > { %2059 = vmatmul.mubr.bf16.vlgmr.msra.gmra.mxu0 %v512_v59  ;;  %v1797_v59 = vld [vmem:[%s2489_s24 + $0xc] sm:$0xff] }
  0x4e   : > { %2087 = vmatmul.mubr.bf16.vlgmr.msra.gmra.mxu1 %v648_v60  ;;  %2099 = vmatpush3.bf16.msra.mxu0 %v2317_v61  ;;  %v1798_v60 = vld [vmem:[%s2489_s24 + $0x14] sm:$0xff]  ;;  %v2348_v61 = vld [vmem:[%s2913_s1 + $0x1c0] sm:$0xff]  }
  0x4f   : > { %2127 = vmatpush3.bf16.msra.mxu1 %v2318_v62  ;;  %2100 = vmatprep.subr.bf16.mxu0 %v2381_v1  ;;  %v1826_v62 = vld [vmem:[%s2489_s24 + $0xd] sm:$0xff]  ;;  %v1056_v0 = vpack.c.bf16 %v1798_v60, %v1797_v59 }
  0x50   : > { %2128 = vmatprep.subr.bf16.mxu1 %v2381_v1  ;;  %2062 = vmatprep.mubr.msk.bf16.mxu0 %vm2382_vm0, %v2381_v1 }
  0x51   : > { %2090 = vmatprep.mubr.msk.bf16.mxu1 %vm2382_vm0, %v2381_v1 }
  0x52   : > { %2101 = vmatpush3.bf16.msra.mxu0 %v2319_v63  ;;  %v1827_v63 = vld [vmem:[%s2489_s24 + $0x15] sm:$0xff] }
  0x53   : > { %2129 = vmatpush3.bf16.msra.mxu1 %v2320_v3  ;;  %2102 = vmatprep.subr.bf16.mxu0 %v2381_v1  ;;  %v1192_v2 = vpack.c.bf16 %v1827_v63, %v1826_v62  ;;  %v2349_v3 = vld [vmem:[%s2913_s1 + $0x238] sm:$0xff]  }
  0x54   : > { %2130 = vmatprep.subr.bf16.mxu1 %v2381_v1 }
  0x55   : > { %2063 = vmatmul.mubr.bf16.gmra.mxu0 %v513_v4  ;;  %v2350_v4 = vld [vmem:[%s2913_s1 + $0x230] sm:$0xff]  }
  0x56   : > { %2103 = vmatpush3.bf16.msra.mxu0 %v2321_v5  ;;  %2091 = vmatmul.mubr.bf16.gmra.mxu1 %v649_v6  ;;  %v1799_v5 = vld [vmem:[%s2489_s24 + $0x1c] sm:$0xff]  ;;  %v1800_v6 = vld [vmem:[%s2489_s24 + $0x24] sm:$0xff] }
  0x57   : > { %2131 = vmatpush3.bf16.msra.mxu1 %v2322_v7  ;;  %2104 = vmatprep.subr.bf16.mxu0 %v2381_v1  ;;  %v1828_v7 = vld [vmem:[%s2489_s24 + $0x1d] sm:$0xff]  ;;  %v1057_v9 = vpack.c.bf16 %v1800_v6, %v1799_v5 }
  0x58   : > { %2132 = vmatprep.subr.bf16.mxu1 %v2381_v1  ;;  %2066 = vmatprep.mubr.msk.bf16.mxu0 %vm2382_vm0, %v2381_v1 }
  0x59   : > { %2094 = vmatprep.mubr.msk.bf16.mxu1 %vm2382_vm0, %v2381_v1 }
  0x5a   : > { %2105 = vmatpush3.bf16.msra.mxu0 %v2323_v8  ;;  %v1829_v8 = vld [vmem:[%s2489_s24 + $0x25] sm:$0xff] }
  0x5b   : > { %2133 = vmatpush3.bf16.msra.mxu1 %v2324_v10  ;;  %2106 = vmatprep.subr.bf16.mxu0 %v2381_v1  ;;  %v2351_v10 = vld [vmem:[%s2913_s1 + $0x228] sm:$0xff]  }
  0x5c   : > { %2134 = vmatprep.subr.bf16.mxu1 %v2381_v1 }
  0x5d   : > { %2067 = vmatmul.mubr.bf16.gmra.mxu0 %v514_v11  ;;  %v1193_v11 = vpack.c.bf16 %v1829_v8, %v1828_v7 }
  0x5e   : > { %2107 = vmatpush3.bf16.msra.mxu0 %v2325_v12  ;;  %2095 = vmatmul.mubr.bf16.gmra.mxu1 %v650_v13  ;;  %v2352_v12 = vld [vmem:[%s2913_s1 + $0x220] sm:$0xff]   ;;  %v1801_v13 = vld [vmem:[%s2489_s24 + $0x2c] sm:$0xff] }
  0x5f   : > { %2135 = vmatpush3.bf16.msra.mxu1 %v2326_v14  ;;  %2108 = vmatprep.subr.bf16.mxu0 %v2381_v1  ;;  %v1830_v14 = vld [vmem:[%s2489_s24 + $0x2d] sm:$0xff] }
  0x60   : > { %2136 = vmatprep.subr.bf16.mxu1 %v2381_v1  ;;  %2114 = vmatprep.mubr.msk.bf16.mxu0 %vm2382_vm0, %v2381_v1 }
  0x61   : > { %2142 = vmatprep.mubr.msk.bf16.mxu1 %vm2382_vm0, %v2381_v1 }
  0x62   : > { %2109 = vmatpush3.bf16.msra.mxu0 %v2327_v15  ;;  %v1058_v15 = vpack.c.bf16 %v1801_v13, %v1801_v13 }
  0x63   : > { %2137 = vmatpush3.bf16.msra.mxu1 %v2328_v16  ;;  %2110 = vmatprep.subr.bf16.mxu0 %v2381_v1  ;;  %v2353_v16 = vld [vmem:[%s2913_s1 + $0x218] sm:$0xff]  }
  0x64   : > { %2138 = vmatprep.subr.bf16.mxu1 %v2381_v1 }
  0x66   : > { %2111 = vmatpush3.bf16.msra.mxu0 %v2329_v17  ;;  %v1194_v17 = vpack.c.bf16 %v1830_v14, %v1830_v14 }
  0x67   : > { %2139 = vmatpush3.bf16.msra.mxu1 %v2330_v18  ;;  %2112 = vmatprep.subr.bf16.mxu0 %v2381_v1  ;;  %v2354_v18 = vld [vmem:[%s2913_s1 + $0x210] sm:$0xff]  }
  0x68   : > { %2140 = vmatprep.subr.bf16.mxu1 %v2381_v1 }
  0x6a   : > { %2113 = vmatpush3.bf16.msra.mxu0 %v2331_v19  ;;  %v2355_v19 = vld [vmem:[%s2913_s1 + $0x208] sm:$0xff]  }
  0x6b   : > { %2141 = vmatpush3.bf16.msra.mxu1 %v2332_v23  ;;  %2154 = vmatprep.subr.bf16.mxu0 %v2381_v1  ;;  %v1330_v23 = vpack.c.bf16 %v1859_v22, %v1859_v22 }
  0x6c   : > { %2182 = vmatprep.subr.bf16.mxu1 %v2381_v1 }
  0x6d   : > { %2115 = vmatmul.mubr.bf16.vlgmr.msra.gmra.mxu0 %v784_v24 }
  0x6e   : > { %2143 = vmatmul.mubr.bf16.vlgmr.msra.gmra.mxu1 %v920_v25  ;;  %2155 = vmatpush3.bf16.msra.mxu0 %v2333_v26 }
  0x6f   : > { %2183 = vmatpush3.bf16.msra.mxu1 %v2334_v27  ;;  %2156 = vmatprep.subr.bf16.mxu0 %v2381_v1 }
  0x70   : > { %2184 = vmatprep.subr.bf16.mxu1 %v2381_v1  ;;  %2118 = vmatprep.mubr.msk.bf16.mxu0 %vm2382_vm0, %v2381_v1 }
  0x71   : > { %2146 = vmatprep.mubr.msk.bf16.mxu1 %vm2382_vm0, %v2381_v1 }
  0x72   : > { %2157 = vmatpush3.bf16.msra.mxu0 %v2335_v28 }
  0x73   : > { %2185 = vmatpush3.bf16.msra.mxu1 %v2336_v32  ;;  %2158 = vmatprep.subr.bf16.mxu0 %v2381_v1 }
  0x74   : > { %2186 = vmatprep.subr.bf16.mxu1 %v2381_v1 }
  0x75   : > { %2119 = vmatmul.mubr.bf16.gmra.mxu0 %v785_v33 }
  0x76   : > { %2159 = vmatpush3.bf16.msra.mxu0 %v2337_v34  ;;  %2147 = vmatmul.mubr.bf16.gmra.mxu1 %v921_v35 }
  0x77   : > { %2187 = vmatpush3.bf16.msra.mxu1 %v2338_v37  ;;  %2160 = vmatprep.subr.bf16.mxu0 %v2381_v1 }
  0x78   : > { %2188 = vmatprep.subr.bf16.mxu1 %v2381_v1  ;;  %2122 = vmatprep.mubr.msk.bf16.mxu0 %vm2382_vm0, %v2381_v1 }
  0x79   : > { %2150 = vmatprep.mubr.msk.bf16.mxu1 %vm2382_vm0, %v2381_v1 }
  0x7a   : > { %2161 = vmatpush3.bf16.msra.mxu0 %v2339_v30 }
  0x7b   : > { %2189 = vmatpush3.bf16.msra.mxu1 %v2340_v43  ;;  %2162 = vmatprep.subr.bf16.mxu0 %v2381_v1 }
  0x7c   : > { %2190 = vmatprep.subr.bf16.mxu1 %v2381_v1 }
  0x7d   : > { %2123 = vmatmul.mubr.bf16.gmra.mxu0 %v786_v46 }
  0x7e   : > { %2163 = vmatpush3.bf16.msra.mxu0 %v2341_v50  ;;  %2151 = vmatmul.mubr.bf16.gmra.mxu1 %v922_v51 }
  0x7f   : > { %2191 = vmatpush3.bf16.msra.mxu1 %v2342_v53  ;;  %2164 = vmatprep.subr.bf16.mxu0 %v2381_v1 }
  0x80   : > { %2192 = vmatprep.subr.bf16.mxu1 %v2381_v1  ;;  %2170 = vmatprep.mubr.msk.bf16.mxu0 %vm2382_vm0, %v2381_v1 }
  0x81   : > { %2198 = vmatprep.mubr.msk.bf16.mxu1 %vm2382_vm0, %v2381_v1 }
  0x82   : > { %2165 = vmatpush3.bf16.msra.mxu0 %v2343_v54 }
  0x83   : > { %2193 = vmatpush3.bf16.msra.mxu1 %v2344_v55  ;;  %2166 = vmatprep.subr.bf16.mxu0 %v2381_v1 }
  0x84   : > { %2194 = vmatprep.subr.bf16.mxu1 %v2381_v1 }
  0x86   : > { %2167 = vmatpush3.bf16.msra.mxu0 %v2345_v56 }
  0x87   : > { %2195 = vmatpush3.bf16.msra.mxu1 %v2346_v57  ;;  %2168 = vmatprep.subr.bf16.mxu0 %v2381_v1 }
  0x88   : > { %2196 = vmatprep.subr.bf16.mxu1 %v2381_v1 }
  0x8a   : > { %2169 = vmatpush3.bf16.msra.mxu0 %v2347_v58 }
  0x8b   : > { %2197 = vmatpush3.bf16.msra.mxu1 %v2348_v61  ;;  %2210 = vmatprep.subr.bf16.mxu0 %v2381_v1 }
  0x8c   : > { %2238 = vmatprep.subr.bf16.mxu1 %v2381_v1 }
  0x8d   : > { %2171 = vmatmul.mubr.bf16.vlgmr.msra.gmra.mxu0 %v1056_v0 }
  0x8e   : > { %2199 = vmatmul.mubr.bf16.vlgmr.msra.gmra.mxu1 %v1192_v2  ;;  %2211 = vmatpush3.bf16.msra.mxu0 %v2349_v3 }
  0x8f   : > { %2246 = vmatpush3.bf16.msra.mxu1 %v2349_v3  ;;  %2212 = vmatprep.subr.bf16.mxu0 %v2381_v1 }
  0x90   : > { %2239 = vmatprep.subr.bf16.mxu1 %v2381_v1  ;;  %2174 = vmatprep.mubr.msk.bf16.mxu0 %vm2382_vm0, %v2381_v1 }
  0x91   : > { %2202 = vmatprep.mubr.msk.bf16.mxu1 %vm2382_vm0, %v2381_v1 }
  0x92   : > { %2213 = vmatpush3.bf16.msra.mxu0 %v2350_v4 }
  0x93   : > { %2247 = vmatpush3.bf16.msra.mxu1 %v2350_v4  ;;  %2214 = vmatprep.subr.bf16.mxu0 %v2381_v1 }
  0x94   : > { %2240 = vmatprep.subr.bf16.mxu1 %v2381_v1 }
  0x95   : > { %2175 = vmatmul.mubr.bf16.gmra.mxu0 %v1057_v9 }
  0x96   : > { %2215 = vmatpush3.bf16.msra.mxu0 %v2351_v10  ;;  %2203 = vmatmul.mubr.bf16.gmra.mxu1 %v1193_v11 }
  0x97   : > { %2248 = vmatpush3.bf16.msra.mxu1 %v2351_v10  ;;  %2216 = vmatprep.subr.bf16.mxu0 %v2381_v1 }
  0x98   : > { %2241 = vmatprep.subr.bf16.mxu1 %v2381_v1  ;;  %2178 = vmatprep.mubr.msk.bf16.mxu0 %vm2382_vm0, %v2381_v1 }
  0x99   : > { %2206 = vmatprep.mubr.msk.bf16.mxu1 %vm2382_vm0, %v2381_v1 }
  0x9a   : > { %2217 = vmatpush3.bf16.msra.mxu0 %v2352_v12 }
  0x9b   : > { %2249 = vmatpush3.bf16.msra.mxu1 %v2352_v12  ;;  %2218 = vmatprep.subr.bf16.mxu0 %v2381_v1 }
  0x9c   : > { %2242 = vmatprep.subr.bf16.mxu1 %v2381_v1 }
  0x9d   : > { %2179 = vmatmul.mubr.bf16.gmra.mxu0 %v1058_v15 }
  0x9e   : > { %2219 = vmatpush3.bf16.msra.mxu0 %v2353_v16  ;;  %2207 = vmatmul.mubr.bf16.gmra.mxu1 %v1194_v17 }
  0x9f   : > { %2250 = vmatpush3.bf16.msra.mxu1 %v2353_v16  ;;  %2220 = vmatprep.subr.bf16.mxu0 %v2381_v1 }
  0xa0   : > { %2243 = vmatprep.subr.bf16.mxu1 %v2381_v1  ;;  %2226 = vmatprep.mubr.msk.bf16.mxu0 %vm2382_vm0, %v2381_v1 }
  0xa1   : > { %2230 = vmatprep.mubr.msk.bf16.mxu1 %vm2382_vm0, %v2381_v1 }
  0xa2   : > { %2221 = vmatpush3.bf16.msra.mxu0 %v2354_v18 }
  0xa3   : > { %2251 = vmatpush3.bf16.msra.mxu1 %v2354_v18  ;;  %2222 = vmatprep.subr.bf16.mxu0 %v2381_v1 }
  0xa4   : > { %2244 = vmatprep.subr.bf16.mxu1 %v2381_v1 }
  0xa6   : > { %2223 = vmatpush3.bf16.msra.mxu0 %v2355_v19 }
  0xa7   : > { %2252 = vmatpush3.bf16.msra.mxu1 %v2355_v19  ;;  %2224 = vmatprep.subr.bf16.mxu0 %v2381_v1 }
  0xa8   : > { %2245 = vmatprep.subr.bf16.mxu1 %v2381_v1 }
  0xaa   : > { %2225 = vmatpush3.bf16.msra.mxu0 %v2356_v21 }
  0xab   : > { %2253 = vmatpush3.bf16.msra.mxu1 %v2356_v21 }
  0xad   : > { %2227 = vmatmul.mubr.bf16.vlgmr.msra.gmra.mxu0 %v1328_v41 }
  0xae   : > { %2231 = vmatmul.mubr.bf16.vlgmr.msra.gmra.mxu1 %v1329_v49 }
  0xaf   : > { %2234 = vmatprep.mubr.msk.bf16.mxu1 %vm2382_vm0, %v2381_v1 }
  0xb6   : > { %2235 = vmatmul.mubr.bf16.gmra.mxu1 %v1330_v23 }
  0xed   : > { %v379_v24 = vpop.f32.mrf.mxu0 }
  0xee   : > { %v483_v25 = vpop.f32.mrf.mxu1 }
  0xef   : > { %v484_v26 = vadd.f32 %v483_v25, %v379_v24  ;;  %v2004_v27 = vpop.f32.mrf.mxu0 }
  0xf0   : > { %v2032_v28 = vpop.f32.mrf.mxu1 }
  0xf1   : > { %v382_v20 = vpop.f32.mrf.mxu0 }
  0xf2   : > { %v486_v29 = vpop.f32.mrf.mxu1 }
  0xf3   : > { %v487_v31 = vadd.f32 %v486_v29, %v382_v20  ;;  %v2005_v39 = vpop.f32.mrf.mxu0 }
  0xf4   : > { %v2033_v40 = vpop.f32.mrf.mxu1 }
  0xf5   : > { %v387_v41 = vpop.f32.mrf.mxu0 }
  0xf6   : > { %v491_v32 = vpop.f32.mrf.mxu1 }
  0xf7   : > { %v492_v47 = vadd.f32 %v491_v32, %v387_v41  ;;  %v2008_v48 = vpop.f32.mrf.mxu0 }
  0xf8   : > { %v2036_v49 = vpop.f32.mrf.mxu1 }
  0xf9   : > { %v390_v33 = vpop.f32.mrf.mxu0 }
  0xfa   : > { %v494_v1 = vpop.f32.mrf.mxu1 }
  0xfb   : > { %v495_v34 = vadd.f32 %v494_v1, %v390_v33  ;;  %v2009_v35 = vpop.f32.mrf.mxu0 }
  0xfc   : > { %v2037_v36 = vpop.f32.mrf.mxu1 }
  0xfd   : > { %v395_v37 = vpop.f32.mrf.mxu0 }
  0xfe   : > { %v499_v30 = vpop.f32.mrf.mxu1 }
  0xff   : > { %v500_v38 = vadd.f32 %v499_v30, %v395_v37  ;;  %v2012_v42 = vpop.f32.mrf.mxu0 }
 0x100   : > { %v2040_v43 = vpop.f32.mrf.mxu1 }
 0x101   : > { %v398_v44 = vpop.f32.mrf.mxu0 }
 0x102   : > { %v502_v45 = vpop.f32.mrf.mxu1 }
 0x103   : > { %v2013_v46 = vpop.f32.mrf.mxu0 }
 0x104   : > { %v2041_v50 = vpop.f32.mrf.mxu1 }
 0x10d   : > { %v614_v51 = vpop.f32.mrf.mxu0 }
 0x10e   : > { %v636_v52 = vadd.f32 %v614_v51, %v484_v26  ;;  %v750_v53 = vpop.f32.mrf.mxu1 }
 0x10f   : > { %v2060_v54 = vpop.f32.mrf.mxu0 }
 0x110   : > { %v2881_v55 = vadd.f32 %v750_v53, %v636_v52  ;;  %v2088_v56 = vpop.f32.mrf.mxu1 }
 0x111   : > { %v617_v57 = vpop.f32.mrf.mxu0 }
 0x112   : > { %v637_v58 = vadd.f32 %v617_v57, %v487_v31  ;;  %v753_v59 = vpop.f32.mrf.mxu1 }
 0x113   : > { %v2061_v60 = vpop.f32.mrf.mxu0 }
 0x114   : > { %v2883_v61 = vadd.f32 %v753_v59, %v637_v58  ;;  %v2089_v62 = vpop.f32.mrf.mxu1 }
 0x115   : > { %v622_v63 = vpop.f32.mrf.mxu0 }
 0x116   : > { %v638_v0 = vadd.f32 %v622_v63, %v492_v47  ;;  %v758_v2 = vpop.f32.mrf.mxu1 }
 0x117   : > { %v2064_v3 = vpop.f32.mrf.mxu0 }
 0x118   : > { %v2885_v4 = vadd.f32 %v758_v2, %v638_v0  ;;  %v2092_v5 = vpop.f32.mrf.mxu1 }
 0x119   : > { %v625_v6 = vpop.f32.mrf.mxu0 }
 0x11a   : > { %v639_v7 = vadd.f32 %v625_v6, %v495_v34  ;;  %v761_v8 = vpop.f32.mrf.mxu1 }
 0x11b   : > { %v2065_v9 = vpop.f32.mrf.mxu0 }
 0x11c   : > { %v2887_v10 = vadd.f32 %v761_v8, %v639_v7  ;;  %v2093_v11 = vpop.f32.mrf.mxu1 }
 0x11d   : > { %v630_v12 = vpop.f32.mrf.mxu0 }
 0x11e   : > { %v640_v13 = vadd.f32 %v630_v12, %v500_v38  ;;  %v766_v14 = vpop.f32.mrf.mxu1 }
 0x11f   : > { %v2068_v15 = vpop.f32.mrf.mxu0 }
 0x120   : > { %v2889_v16 = vadd.f32 %v766_v14, %v640_v13  ;;  %v2096_v17 = vpop.f32.mrf.mxu1 }
 0x121   : > { %v633_v18 = vpop.f32.mrf.mxu0 }
 0x122   : > { %v769_v19 = vpop.f32.mrf.mxu1 }
 0x123   : > { %v2069_v21 = vpop.f32.mrf.mxu0 }
 0x124   : > { %v2097_v22 = vpop.f32.mrf.mxu1 }
 0x12d   : > { %v886_v23 = vpop.f32.mrf.mxu0 }
 0x12e   : > { %v1022_v24 = vpop.f32.mrf.mxu1  ;;  %v908_v6 = vadd.f32 %v886_v23, %v2881_v55 }
 0x12f   : > { %v2116_v25 = vpop.f32.mrf.mxu0 }
 0x130   : > { %v2144_v26 = vpop.f32.mrf.mxu1  ;;  %v1044_v12 = vadd.f32 %v1022_v24, %v908_v6 }
 0x131   : > { %v889_v27 = vpop.f32.mrf.mxu0 }
 0x132   : > { %v1025_v28 = vpop.f32.mrf.mxu1  ;;  %v909_v13 = vadd.f32 %v889_v27, %v2883_v61  ;;  %v1884_v61 = vld [vmem:[%s2914_s2] ss:$0 sm:$0xff] }
 0x133   : > { %v2117_v20 = vpop.f32.mrf.mxu0 }
 0x134   : > { %v2145_v29 = vpop.f32.mrf.mxu1  ;;  %v1045_v19 = vadd.f32 %v1025_v28, %v909_v13 }
 0x135   : > { %v894_v31 = vpop.f32.mrf.mxu0 }
 0x136   : > { %v1030_v39 = vpop.f32.mrf.mxu1  ;;  %v910_v8 = vadd.f32 %v894_v31, %v2885_v4  ;;  %v1477_v4 = vpop.permute.xlu0 %1476 }
 0x137   : > { %v2120_v40 = vpop.f32.mrf.mxu0 }
 0x138   : > { %v2148_v41 = vpop.f32.mrf.mxu1  ;;  %v1046_v14 = vadd.f32 %v1030_v39, %v910_v8 }
 0x139   : > { %v897_v32 = vpop.f32.mrf.mxu0 }
 0x13a   : > { %v1033_v47 = vpop.f32.mrf.mxu1  ;;  %v911_v15 = vadd.f32 %v897_v32, %v2887_v10  ;;  %v1487_v10 = vpop.permute.xlu1 %1486 }
 0x13b   : > { %v2121_v48 = vpop.f32.mrf.mxu0 }
 0x13c   : > { %v2149_v49 = vpop.f32.mrf.mxu1  ;;  %v1047_v21 = vadd.f32 %v1033_v47, %v911_v15 }
 0x13d   : > { %v902_v33 = vpop.f32.mrf.mxu0 }
 0x13e   : > { %v1038_v1 = vpop.f32.mrf.mxu1  ;;  %v912_v22 = vadd.f32 %v902_v33, %v2889_v16 }
 0x13f   : > { %v2124_v34 = vpop.f32.mrf.mxu0 }
 0x140   : > { %v2152_v35 = vpop.f32.mrf.mxu1  ;;  %v1048_v29 = vadd.f32 %v1038_v1, %v912_v22 }
 0x141   : > { %v905_v36 = vpop.f32.mrf.mxu0  ;;  %v1482_v35 = vpop.permute.xlu0 %1481 }
 0x142   : > { %v1041_v37 = vpop.f32.mrf.mxu1 }
 0x143   : > { %v2125_v30 = vpop.f32.mrf.mxu0 }
 0x144   : > { %v2153_v38 = vpop.f32.mrf.mxu1 }
 0x14d   : > { %v1158_v42 = vpop.f32.mrf.mxu0 }
 0x14e   : > { %v1294_v43 = vpop.f32.mrf.mxu1  ;;  %v1180_v17 = vadd.f32 %v1158_v42, %v1044_v12 }
 0x14f   : > { %v2172_v44 = vpop.f32.mrf.mxu0 }
 0x150   : > { %v2200_v45 = vpop.f32.mrf.mxu1  ;;  %v1316_v25 = vadd.f32 %v1294_v43, %v1180_v17  ;;  %v1492_v43 = vpop.permute.xlu1 %1491 }
 0x151   : > { %v1161_v46 = vpop.f32.mrf.mxu0 }
 0x152   : > { %v1297_v50 = vpop.f32.mrf.mxu1  ;;  %v1181_v55 = vadd.f32 %v1161_v46, %v1045_v19 }
 0x153   : > { %v2173_v51 = vpop.f32.mrf.mxu0 }
 0x154   : > { %v2201_v52 = vpop.f32.mrf.mxu1  ;;  %v1317_v39 = vadd.f32 %v1297_v50, %v1181_v55 }
 0x155   : > { %v1166_v53 = vpop.f32.mrf.mxu0 }
 0x156   : > { %v1302_v54 = vpop.f32.mrf.mxu1  ;;  %v1182_v18 = vadd.f32 %v1166_v53, %v1046_v14 }
 0x157   : > { %v2176_v56 = vpop.f32.mrf.mxu0 }
 0x158   : > { %v2204_v57 = vpop.f32.mrf.mxu1  ;;  %v1318_v23 = vadd.f32 %v1302_v54, %v1182_v18 }
 0x159   : > { %v1169_v58 = vpop.f32.mrf.mxu0 }
 0x15a   : > { %v1305_v59 = vpop.f32.mrf.mxu1  ;;  %v1183_v26 = vadd.f32 %v1169_v58, %v1047_v21 }
 0x15b   : > { %v2177_v60 = vpop.f32.mrf.mxu0 }
 0x15c   : > { %v2205_v62 = vpop.f32.mrf.mxu1  ;;  %v1319_v41 = vadd.f32 %v1305_v59, %v1183_v26  ;;  %v1497_v59 = vpop.permute.xlu0 %1496 }
 0x15d   : > { %v1174_v63 = vpop.f32.mrf.mxu0 }
 0x15e   : > { %v1310_v0 = vpop.f32.mrf.mxu1  ;;  %v1184_v32 = vadd.f32 %v1174_v63, %v1048_v29 }
 0x15f   : > { %v2180_v2 = vpop.f32.mrf.mxu0 }
 0x160   : > { %v2208_v3 = vpop.f32.mrf.mxu1  ;;  %v1320_v44 = vadd.f32 %v1310_v0, %v1184_v32 }
 0x161   : > { %v1177_v5 = vpop.f32.mrf.mxu0 }
 0x162   : > { %v1313_v7 = vpop.f32.mrf.mxu1 }
 0x163   : > { %v2181_v9 = vpop.f32.mrf.mxu0 }
 0x164   : > { %v2209_v11 = vpop.f32.mrf.mxu1 }
 0x16d   : > { %v1430_v20 = vpop.f32.mrf.mxu0 }
 0x16e   : > { %v1452_v24 = vadd.f32 %v1430_v20, %v1316_v25  ;;  %v1438_v27 = vpop.f32.mrf.mxu1 }
 0x16f   : > { %v1454_v31 = vadd.f32 %v1438_v27, %v1318_v23  ;;  %v2228_v28 = vpop.f32.mrf.mxu0 }
 0x170   : > { %v1464_v40 = vadd.f32 %v1884_v61, %v1452_v24  ;;  %v2232_v16 = vpop.f32.mrf.mxu1 }
 0x171   : > { %v1466_v47 = vadd.f32 %v1884_v61, %v1454_v31  ;;  %v1433_v48 = vpop.f32.mrf.mxu0 }
 0x172   : > { %v1499_v49 = vmul.f32 %v1477_v4, %v1464_v40  ;;  %v1453_v33 = vadd.f32 %v1433_v48, %v1317_v39  ;;  %v1441_v34 = vpop.f32.mrf.mxu1 }
 0x173   : > { %v1501_v36 = vmul.f32 %v1487_v10, %v1466_v47  ;;  %v1455_v1 = vadd.f32 %v1441_v34, %v1319_v41  ;;  %v2229_v37 = vpop.f32.mrf.mxu0 }
 0x174   : > { %v1504_v30 = vmax.f32 %v1499_v49, 0.0  ;;  %v1465_v38 = vadd.f32 %v1884_v61, %v1453_v33  ;;  %v2233_v42 = vpop.f32.mrf.mxu1 }
 0x175   : > { %v1506_v45 = vmax.f32 %v1501_v36, 0.0  ;;  %v1467_v46 = vadd.f32 %v1884_v61, %v1455_v1 }
 0x176   : > { %1509 = vst [vmem:[%s241_s7] sm:$0xff] %v1504_v30  ;;  %v1500_v50 = vmul.f32 %v1482_v35, %v1465_v38  ;;  %v1446_v51 = vpop.f32.mrf.mxu1 }
 0x177   : > { %1511 = vst [vmem:[%s241_s7 + $0x10] sm:$0xff] %v1506_v45  ;;  %v1502_v52 = vmul.f32 %v1492_v43, %v1467_v46  ;;  %v1456_v53 = vadd.f32 %v1446_v51, %v1320_v44 }
 0x178   : > { %v1505_v54 = vmax.f32 %v1500_v50, 0.0  ;;  %v2236_v56 = vpop.f32.mrf.mxu1 }
 0x179   : > { %v1507_v57 = vmax.f32 %v1502_v52, 0.0  ;;  %v1468_v58 = vadd.f32 %v1884_v61, %v1456_v53 }
 0x17a   : > { %1510 = vst [vmem:[%s241_s7 + $0x8] sm:$0xff] %v1505_v54  ;;  %v1449_v60 = vpop.f32.mrf.mxu1 }
 0x17b   : > { %1512 = vst [vmem:[%s241_s7 + $0x18] sm:$0xff] %v1507_v57  ;;  %v1503_v62 = vmul.f32 %v1497_v59, %v1468_v58 }
 0x17c   : > { %v2237_v63 = vpop.f32.mrf.mxu1 }
 0x17d   : > { %v1508_v2 = vmax.f32 %v1503_v62, 0.0 }
 0x17f   : > { %1513 = vst [vmem:[%s241_s7 + $0x20] sm:$0xff] %v1508_v2 }
 0x180 PF: > { %s14_s17 = sadd.s32 1, %s2379_s17   ;;  %s2917_s15 = smov %s2375_s16 }
 0x181   : > { %p11_p5 = scmp.ge.s32.totalorder %s14_s17, 4   ;;  %s2918_s16 = smov %s2920_s18 }
 0x183   :  { %13 = sbr.rel (!%p11_p5) target bundleno = 2 (0x2), region = 86 }

// kernel: new_model_forward.9
= control target key start
LH: loop header
LB: loop body
LE: loop exit
PB: predicated region body
PF: predicated region fallthrough
CT: control target
= control target key end

     0   :  { %s2506_s18 = smov 0   ;;  %s2508_s19 = smov 0   ;;  %s3023_s0 = inlined_call_operand.vmem [shape: f32[2,54,128], index: 0, kind: input, shape index: {}]   ;;  %s3024_s1 = inlined_call_operand.vmem [shape: bf16[9,128,128], index: 1, kind: input, shape index: {}]   ;;  %s3025_s2 = inlined_call_operand.vmem [shape: f32[1,128], index: 2, kind: input, shape index: {}]   ;;  %s3026_s3 = inlined_call_operand.vmem [shape: f32[40,1], index: 3, kind: input, shape index: {}]   ;;  %s3027_s4 = inlined_call_operand.vmem [shape: f32[2,40,128], index: 4, kind: input, shape index: {}]   ;;  %s3028_s5 = inlined_call_operand.vmem [shape: f32[2,40,128], index: 5, kind: output, shape index: {}]  }
   0x1   :  { %s2510_s20 = smov 0  }
   0x2 LB: > { %s27_s21 = sadd.s32 1, %s2467_s19  ;;  %p1732_p0 = scmp.ge.s32.totalorder %s2471_s20, 1  ;;  %s2471_s20 = sphi %s2510_s20, %s15_s20   ;;  %s2467_s19 = sphi %s2508_s19, %s3030_s19   ;;  %s2463_s18 = sphi %s2506_s18, %s3029_s18  }
   0x3   : > { %p29_p1 = scmp.ge.s32.totalorder %s27_s21, 2  ;;  %p229_p2 = scmp.lt.s32.totalorder %s2471_s20, 3 }
   0x5   : > { %s3032_s21 = smov (%p29_p1, %s27_s21), 0  ;;  %p230_p3 = pnand %p1732_p0, %p229_p2 }
   0x6   : > { %p275_p4 = scmp.lt.s32.totalorder (!%p230_p3), %s2463_s18, 1 }
   0x7   : > { %233 = sbr.rel (%p230_p3) target bundleno = 386 (0x182), region = 40 }
   0xc   : > { %v2377_v0 = vld [vmem:[%s3024_s1 + $0x78] sm:$0xff]   ;;  %v2473_v1 = vmov 0.0   ;;  %v2379_v3 = vld [vmem:[%s3024_s1 + $0x70] sm:$0xff]   ;;  %vm2474_vm0 = vmmov 0   ;;  %v2381_v5 = vld [vmem:[%s3024_s1 + $0x68] sm:$0xff]   ;;  %s3034_s18 = smov (!%p275_p4, %s2463_s18), 1 }
   0xd   : > { %2078 = vmatprep.subr.bf16.mxu0 %v2473_v1  ;;  %2106 = vmatprep.subr.bf16.mxu1 %v2473_v1  ;;  %v2378_v2 = vld [vmem:[%s3024_s1 + $0x38] sm:$0xff]   ;;  %v2380_v4 = vld [vmem:[%s3024_s1 + $0x30] sm:$0xff]   ;;  %v2382_v6 = vld [vmem:[%s3024_s1 + $0x28] sm:$0xff]   ;;  %s2346_s17 = smul.u32 56, %s3034_s18  ;;  %v2475_v43 = vmov 0  }
   0xe   : > { %2079 = vmatpush3.bf16.msra.mxu0 %v2377_v0  ;;  %2094 = vmatprep.mubr.msk.bf16.mxu0 %vm2474_vm0, %v2473_v1  ;;  %v2383_v7 = vld [vmem:[%s3024_s1 + $0x60] sm:$0xff]   ;;  %v2385_v9 = vld [vmem:[%s3024_s1 + $0x58] sm:$0xff]   ;;  %v2387_v11 = vld [vmem:[%s3024_s1 + $0x50] sm:$0xff]  }
   0xf   : > { %2107 = vmatpush3.bf16.msra.mxu1 %v2378_v2  ;;  %2080 = vmatprep.subr.bf16.mxu0 %v2473_v1  ;;  %v2384_v8 = vld [vmem:[%s3024_s1 + $0x20] sm:$0xff]   ;;  %v2386_v10 = vld [vmem:[%s3024_s1 + $0x18] sm:$0xff]   ;;  %v2388_v12 = vld [vmem:[%s3024_s1 + $0x10] sm:$0xff]   ;;  %s2586_s28 = scalar_lea.vmem %s3023_s0, %s2346_s17 }
  0x10   : > { %2108 = vmatprep.subr.bf16.mxu1 %v2473_v1  ;;  %2122 = vmatprep.mubr.msk.bf16.mxu1 %vm2474_vm0, %v2473_v1  ;;  %v2389_v13 = vld [vmem:[%s3024_s1 + $0x48] sm:$0xff]   ;;  %v2391_v15 = vld [vmem:[%s3024_s1 + $0x40] sm:$0xff]   ;;  %v2393_v23 = vld [vmem:[%s3024_s1 + $0xb8] sm:$0xff]  }
  0x11   : > { %v2390_v14 = vld [vmem:[%s3024_s1 + $0x8] sm:$0xff]   ;;  %v2392_v17 = vld [vmem:[%s3024_s1] sm:$0xff]   ;;  %v2394_v24 = vld [vmem:[%s3024_s1 + $0xf8] sm:$0xff]   ;;  %2375 = vset.pattern.permute.xlu0 %v2475_v43  ;;  %2376 = vset.pattern.permute.xlu1 %v2475_v43 }
  0x12   : > { %2081 = vmatpush3.bf16.msra.mxu0 %v2379_v3  ;;  %v1736_v16 = vld [vmem:[%s2586_s28 + $0x1] sm:$0xff]  ;;  %v1737_v18 = vld [vmem:[%s2586_s28 + $0x9] sm:$0xff]  ;;  %v1738_v26 = vld [vmem:[%s2586_s28 + $0x11] sm:$0xff] }
  0x13   : > { %2109 = vmatpush3.bf16.msra.mxu1 %v2380_v4  ;;  %2082 = vmatprep.subr.bf16.mxu0 %v2473_v1  ;;  %v309_v19 = vld [vmem:[%s2586_s28] sm:$0xff]  ;;  %v2607_v20 = vld [vmem:[%s2586_s28 + $0x8] sm:$0xff]  ;;  %v340_v21 = vpack.c.bf16 %v1737_v18, %v1736_v16  ;;  %v2395_v25 = vld [vmem:[%s3024_s1 + $0xb0] sm:$0xff]  }
  0x14   : > { %2110 = vmatprep.subr.bf16.mxu1 %v2473_v1  ;;  %v314_v22 = vpack.c.bf16 %v2607_v20, %v309_v19  ;;  %v1739_v27 = vld [vmem:[%s2586_s28 + $0x19] sm:$0xff]  ;;  %v2396_v28 = vld [vmem:[%s3024_s1 + $0xf0] sm:$0xff]   ;;  %v2397_v32 = vld [vmem:[%s3024_s1 + $0xa8] sm:$0xff]  }
  0x15   : > { %v2629_v29 = vld [vmem:[%s2586_s28 + $0x10] sm:$0xff]  ;;  %v2632_v30 = vld [vmem:[%s2586_s28 + $0x18] sm:$0xff]  ;;  %v341_v31 = vpack.c.bf16 %v1739_v27, %v1738_v26  ;;  %v2398_v34 = vld [vmem:[%s3024_s1 + $0xe8] sm:$0xff]  }
  0x16   : > { %2083 = vmatpush3.bf16.msra.mxu0 %v2381_v5  ;;  %v315_v33 = vpack.c.bf16 %v2632_v30, %v2629_v29  ;;  %v2399_v35 = vld [vmem:[%s3024_s1 + $0xa0] sm:$0xff]   ;;  %v2661_v39 = vld [vmem:[%s2586_s28 + $0xe] sm:$0xff]  ;;  %v2664_v40 = vld [vmem:[%s2586_s28 + $0x16] sm:$0xff] }
  0x17   : > { %2111 = vmatpush3.bf16.msra.mxu1 %v2382_v6  ;;  %2084 = vmatprep.subr.bf16.mxu0 %v2473_v1  ;;  %v2400_v36 = vld [vmem:[%s3024_s1 + $0xe0] sm:$0xff]   ;;  %v1391_v41 = vpack.c.bf16 %v2664_v40, %v2661_v39  ;;  %v2401_v44 = vld [vmem:[%s3024_s1 + $0x98] sm:$0xff]   ;;  %v2403_v50 = vld [vmem:[%s3024_s1 + $0x90] sm:$0xff]  }
  0x18   : > { %2112 = vmatprep.subr.bf16.mxu1 %v2473_v1  ;;  %v1740_v37 = vld [vmem:[%s2586_s28 + $0x21] sm:$0xff]  ;;  %v2402_v46 = vld [vmem:[%s3024_s1 + $0xd8] sm:$0xff]   ;;  %v2404_v51 = vld [vmem:[%s3024_s1 + $0xd0] sm:$0xff]  }
  0x19   : > { %v2658_v38 = vld [vmem:[%s2586_s28 + $0x20] sm:$0xff]  ;;  %v342_v42 = vpack.c.bf16 %v1740_v37, %v1740_v37  ;;  %v2405_v52 = vld [vmem:[%s3024_s1 + $0x88] sm:$0xff]   ;;  %v2409_v61 = vld [vmem:[%s3024_s1 + $0x138] sm:$0xff]  }
  0x1a   : > { %2085 = vmatpush3.bf16.msra.mxu0 %v2383_v7  ;;  %v316_v45 = vpack.c.bf16 %v2658_v38, %v2658_v38  ;;  %v2684_v47 = vld [vmem:[%s2586_s28 + $0x1e] sm:$0xff]  ;;  %v2687_v48 = vld [vmem:[%s2586_s28 + $0x26] sm:$0xff]  ;;  %v2411_v63 = vld [vmem:[%s3024_s1 + $0x130] sm:$0xff]  }
  0x1b   : > { %2113 = vmatpush3.bf16.msra.mxu1 %v2384_v8  ;;  %2086 = vmatprep.subr.bf16.mxu0 %v2473_v1  ;;  %v1392_v49 = vpack.c.bf16 %v2687_v48, %v2684_v47  ;;  %v2406_v53 = vld [vmem:[%s3024_s1 + $0xc8] sm:$0xff]   ;;  %v2407_v54 = vld [vmem:[%s3024_s1 + $0x80] sm:$0xff]   ;;  %v2410_v62 = vld [vmem:[%s3024_s1 + $0x178] sm:$0xff]   ;;  %v712_v6 = vpack.c.bf16 %v2684_v47, %v2664_v40 }
  0x1c   : > { %2114 = vmatprep.subr.bf16.mxu1 %v2473_v1  ;;  %v1773_v55 = vld [vmem:[%s2586_s28 + $0x2] sm:$0xff]  ;;  %v1774_v56 = vld [vmem:[%s2586_s28 + $0xa] sm:$0xff]  ;;  %v1775_v0 = vld [vmem:[%s2586_s28 + $0x12] sm:$0xff] }
  0x1d   : > { %v2408_v57 = vld [vmem:[%s3024_s1 + $0xc0] sm:$0xff]   ;;  %v575_v59 = vpack.c.bf16 %v1774_v56, %v1773_v55  ;;  %v2412_v3 = vld [vmem:[%s3024_s1 + $0x170] sm:$0xff]   ;;  %v2413_v5 = vld [vmem:[%s3024_s1 + $0x128] sm:$0xff]  }
  0x1e   : > { %2087 = vmatpush3.bf16.msra.mxu0 %v2385_v9  ;;  %v1802_v58 = vld [vmem:[%s2586_s28 + $0x6] sm:$0xff]  ;;  %v1776_v2 = vld [vmem:[%s2586_s28 + $0x1a] sm:$0xff]  ;;  %v2420_v16 = vld [vmem:[%s3024_s1 + $0x150] sm:$0xff]  }
  0x1f   : > { %2115 = vmatpush3.bf16.msra.mxu1 %v2386_v10  ;;  %2088 = vmatprep.subr.bf16.mxu0 %v2473_v1  ;;  %v711_v60 = vpack.c.bf16 %v2661_v39, %v1802_v58  ;;  %v576_v4 = vpack.c.bf16 %v1776_v2, %v1775_v0  ;;  %v2414_v7 = vld [vmem:[%s3024_s1 + $0x168] sm:$0xff]   ;;  %v2415_v8 = vld [vmem:[%s3024_s1 + $0x120] sm:$0xff]   ;;  %v2425_v26 = vld [vmem:[%s3024_s1 + $0x1b8] sm:$0xff]  }
  0x20   : > { %2116 = vmatprep.subr.bf16.mxu1 %v2473_v1  ;;  %v1777_v9 = vld [vmem:[%s2586_s28 + $0x22] sm:$0xff]  ;;  %v2426_v27 = vld [vmem:[%s3024_s1 + $0x1f8] sm:$0xff]   ;;  %v2436_v55 = vld [vmem:[%s3024_s1 + $0x1d0] sm:$0xff]  }
  0x21   : > { %v2416_v10 = vld [vmem:[%s3024_s1 + $0x160] sm:$0xff]   ;;  %v2422_v18 = vld [vmem:[%s3024_s1 + $0x148] sm:$0xff]  }
  0x22   : > { %2089 = vmatpush3.bf16.msra.mxu0 %v2387_v11  ;;  %v577_v11 = vpack.c.bf16 %v1777_v9, %v1777_v9  ;;  %v2423_v19 = vld [vmem:[%s3024_s1 + $0x100] sm:$0xff]   ;;  %v2430_v37 = vld [vmem:[%s3024_s1 + $0x1e8] sm:$0xff]  }
  0x23   : > { %2117 = vmatpush3.bf16.msra.mxu1 %v2388_v12  ;;  %2090 = vmatprep.subr.bf16.mxu0 %v2473_v1  ;;  %v2417_v12 = vld [vmem:[%s3024_s1 + $0x118] sm:$0xff]   ;;  %v2432_v43 = vld [vmem:[%s3024_s1 + $0x1e0] sm:$0xff]   ;;  %v2437_v56 = vld [vmem:[%s3024_s1 + $0x188] sm:$0xff]  }
  0x24   : > { %2118 = vmatprep.subr.bf16.mxu1 %v2473_v1  ;;  %v2439_v58 = vld [vmem:[%s3024_s1 + $0x180] sm:$0xff]  }
  0x26   : > { %2091 = vmatpush3.bf16.msra.mxu0 %v2389_v13  ;;  %v713_v13 = vpack.c.bf16 %v2687_v48, %v2687_v48 }
  0x27   : > { %2119 = vmatpush3.bf16.msra.mxu1 %v2390_v14  ;;  %2092 = vmatprep.subr.bf16.mxu0 %v2473_v1  ;;  %v2418_v14 = vld [vmem:[%s3024_s1 + $0x158] sm:$0xff]  }
  0x28   : > { %2120 = vmatprep.subr.bf16.mxu1 %v2473_v1 }
  0x2a   : > { %2093 = vmatpush3.bf16.msra.mxu0 %v2391_v15  ;;  %v2419_v15 = vld [vmem:[%s3024_s1 + $0x110] sm:$0xff]  }
  0x2b   : > { %2121 = vmatpush3.bf16.msra.mxu1 %v2392_v17  ;;  %2134 = vmatprep.subr.bf16.mxu0 %v2473_v1  ;;  %v2421_v17 = vld [vmem:[%s3024_s1 + $0x108] sm:$0xff]  }
  0x2c   : > { %2162 = vmatprep.subr.bf16.mxu1 %v2473_v1 }
  0x2d   : > { %2095 = vmatmul.mubr.bf16.vlgmr.msra.gmra.mxu0 %v340_v21  ;;  %v1831_v21 = vld [vmem:[%s2586_s28 + $0x7] sm:$0xff] }
  0x2e   : > { %2123 = vmatmul.mubr.bf16.vlgmr.msra.gmra.mxu1 %v314_v22  ;;  %2135 = vmatpush3.bf16.msra.mxu0 %v2393_v23  ;;  %v1832_v22 = vld [vmem:[%s2586_s28 + $0xf] sm:$0xff]  ;;  %v2424_v23 = vld [vmem:[%s3024_s1 + $0x140] sm:$0xff]  }
  0x2f   : > { %2163 = vmatpush3.bf16.msra.mxu1 %v2394_v24  ;;  %2136 = vmatprep.subr.bf16.mxu0 %v2473_v1  ;;  %v847_v24 = vpack.c.bf16 %v1832_v22, %v1831_v21  ;;  %v2448_v21 = vld [vmem:[%s3024_s1 + $0x200] sm:$0xff]   ;;  %v1951_v22 = vld [vmem:[%s2586_s28 + $0x2e] sm:$0xff] }
  0x30   : > { %2164 = vmatprep.subr.bf16.mxu1 %v2473_v1  ;;  %2126 = vmatprep.mubr.msk.bf16.mxu1 %vm2474_vm0, %v2473_v1 }
  0x31   : > { %2098 = vmatprep.mubr.msk.bf16.mxu0 %vm2474_vm0, %v2473_v1 }
  0x32   : > { %2137 = vmatpush3.bf16.msra.mxu0 %v2395_v25  ;;  %v983_v25 = vpack.c.bf16 %v2629_v29, %v2607_v20  ;;  %v1833_v20 = vld [vmem:[%s2586_s28 + $0x17] sm:$0xff]  ;;  %v1834_v29 = vld [vmem:[%s2586_s28 + $0x1f] sm:$0xff] }
  0x33   : > { %2165 = vmatpush3.bf16.msra.mxu1 %v2396_v28  ;;  %2138 = vmatprep.subr.bf16.mxu0 %v2473_v1  ;;  %v2427_v28 = vld [vmem:[%s3024_s1 + $0x1b0] sm:$0xff]  }
  0x34   : > { %2166 = vmatprep.subr.bf16.mxu1 %v2473_v1 }
  0x35   : > { %2099 = vmatmul.mubr.bf16.gmra.mxu0 %v341_v31  ;;  %v1532_v31 = vld [vmem:[%s3026_s3] sm:$0xff] }
  0x36   : > { %2139 = vmatpush3.bf16.msra.mxu0 %v2397_v32  ;;  %2127 = vmatmul.mubr.bf16.gmra.mxu1 %v315_v33  ;;  %v2428_v32 = vld [vmem:[%s3024_s1 + $0x1f0] sm:$0xff]   ;;  %v848_v33 = vpack.c.bf16 %v1834_v29, %v1833_v20 }
  0x37   : > { %2167 = vmatpush3.bf16.msra.mxu1 %v2398_v34  ;;  %2140 = vmatprep.subr.bf16.mxu0 %v2473_v1  ;;  %v2429_v34 = vld [vmem:[%s3024_s1 + $0x1a8] sm:$0xff]  }
  0x38   : > { %2168 = vmatprep.subr.bf16.mxu1 %v2473_v1  ;;  %2130 = vmatprep.mubr.msk.bf16.mxu1 %vm2474_vm0, %v2473_v1 }
  0x39   : > { %2102 = vmatprep.mubr.msk.bf16.mxu0 %vm2474_vm0, %v2473_v1  ;;  %1539 = vperm.xlu0 %2375, %v1532_v31  }
  0x3a   : > { %2141 = vmatpush3.bf16.msra.mxu0 %v2399_v35  ;;  %v984_v35 = vpack.c.bf16 %v2658_v38, %v2632_v30  ;;  %v2431_v30 = vld [vmem:[%s3024_s1 + $0x1a0] sm:$0xff]  }
  0x3b   : > { %2169 = vmatpush3.bf16.msra.mxu1 %v2400_v36  ;;  %2142 = vmatprep.subr.bf16.mxu0 %v2473_v1  ;;  %v1533_v36 = vld [vmem:[%s3026_s3 + $0x8] sm:$0xff] }
  0x3c   : > { %2170 = vmatprep.subr.bf16.mxu1 %v2473_v1  ;;  %v1835_v38 = vld [vmem:[%s2586_s28 + $0x27] sm:$0xff] }
  0x3d   : > { %2103 = vmatmul.mubr.bf16.gmra.mxu0 %v342_v42  ;;  %1544 = vperm.xlu0 %2375, %v1533_v36   ;;  %v1534_v42 = vld [vmem:[%s3026_s3 + $0x10] sm:$0xff] }
  0x3e   : > { %2143 = vmatpush3.bf16.msra.mxu0 %v2401_v44  ;;  %2131 = vmatmul.mubr.bf16.gmra.mxu1 %v316_v45  ;;  %v1864_v44 = vld [vmem:[%s2586_s28 + $0x28] sm:$0xff]  ;;  %v1536_v45 = vld [vmem:[%s3026_s3 + $0x20] sm:$0xff] }
  0x3f   : > { %2171 = vmatpush3.bf16.msra.mxu1 %v2402_v46  ;;  %2144 = vmatprep.subr.bf16.mxu0 %v2473_v1  ;;  %v849_v46 = vpack.c.bf16 %v1835_v38, %v1835_v38 }
  0x40   : > { %2172 = vmatprep.subr.bf16.mxu1 %v2473_v1  ;;  %2150 = vmatprep.mubr.msk.bf16.mxu0 %vm2474_vm0, %v2473_v1 }
  0x41   : > { %2178 = vmatprep.mubr.msk.bf16.mxu1 %vm2474_vm0, %v2473_v1  ;;  %1549 = vperm.xlu1 %2376, %v1534_v42  }
  0x42   : > { %2145 = vmatpush3.bf16.msra.mxu0 %v2403_v50  ;;  %v2433_v50 = vld [vmem:[%s3024_s1 + $0x198] sm:$0xff]   ;;  %1559 = vperm.xlu0 %2375, %v1536_v45  }
  0x43   : > { %2173 = vmatpush3.bf16.msra.mxu1 %v2404_v51  ;;  %2146 = vmatprep.subr.bf16.mxu0 %v2473_v1  ;;  %v985_v51 = vpack.c.bf16 %v1864_v44, %v1864_v44 }
  0x44   : > { %2174 = vmatprep.subr.bf16.mxu1 %v2473_v1 }
  0x46   : > { %2147 = vmatpush3.bf16.msra.mxu0 %v2405_v52  ;;  %v1535_v52 = vld [vmem:[%s3026_s3 + $0x18] sm:$0xff] }
  0x47   : > { %2175 = vmatpush3.bf16.msra.mxu1 %v2406_v53  ;;  %2148 = vmatprep.subr.bf16.mxu0 %v2473_v1  ;;  %v2434_v53 = vld [vmem:[%s3024_s1 + $0x1d8] sm:$0xff]  }
  0x48   : > { %2176 = vmatprep.subr.bf16.mxu1 %v2473_v1  ;;  %1554 = vperm.xlu1 %2376, %v1535_v52  }
  0x4a   : > { %2149 = vmatpush3.bf16.msra.mxu0 %v2407_v54  ;;  %v2435_v54 = vld [vmem:[%s3024_s1 + $0x190] sm:$0xff]  }
  0x4b   : > { %2177 = vmatpush3.bf16.msra.mxu1 %v2408_v57  ;;  %2190 = vmatprep.subr.bf16.mxu0 %v2473_v1  ;;  %v2438_v57 = vld [vmem:[%s3024_s1 + $0x1c8] sm:$0xff]  }
  0x4c   : > { %2218 = vmatprep.subr.bf16.mxu1 %v2473_v1 }
  0x4d   : > { %2151 = vmatmul.mubr.bf16.vlgmr.msra.gmra.mxu0 %v575_v59  ;;  %v1889_v59 = vld [vmem:[%s2586_s28 + $0xc] sm:$0xff] }
  0x4e   : > { %2179 = vmatmul.mubr.bf16.vlgmr.msra.gmra.mxu1 %v711_v60  ;;  %2191 = vmatpush3.bf16.msra.mxu0 %v2409_v61  ;;  %v1890_v60 = vld [vmem:[%s2586_s28 + $0x14] sm:$0xff]  ;;  %v2440_v61 = vld [vmem:[%s3024_s1 + $0x1c0] sm:$0xff]  }
  0x4f   : > { %2219 = vmatpush3.bf16.msra.mxu1 %v2410_v62  ;;  %2192 = vmatprep.subr.bf16.mxu0 %v2473_v1  ;;  %v1918_v62 = vld [vmem:[%s2586_s28 + $0xd] sm:$0xff]  ;;  %v1119_v0 = vpack.c.bf16 %v1890_v60, %v1889_v59 }
  0x50   : > { %2220 = vmatprep.subr.bf16.mxu1 %v2473_v1  ;;  %2154 = vmatprep.mubr.msk.bf16.mxu0 %vm2474_vm0, %v2473_v1 }
  0x51   : > { %2182 = vmatprep.mubr.msk.bf16.mxu1 %vm2474_vm0, %v2473_v1 }
  0x52   : > { %2193 = vmatpush3.bf16.msra.mxu0 %v2411_v63  ;;  %v1919_v63 = vld [vmem:[%s2586_s28 + $0x15] sm:$0xff] }
  0x53   : > { %2221 = vmatpush3.bf16.msra.mxu1 %v2412_v3  ;;  %2194 = vmatprep.subr.bf16.mxu0 %v2473_v1  ;;  %v1255_v2 = vpack.c.bf16 %v1919_v63, %v1918_v62  ;;  %v2441_v3 = vld [vmem:[%s3024_s1 + $0x238] sm:$0xff]  }
  0x54   : > { %2222 = vmatprep.subr.bf16.mxu1 %v2473_v1 }
  0x55   : > { %2155 = vmatmul.mubr.bf16.gmra.mxu0 %v576_v4  ;;  %v2442_v4 = vld [vmem:[%s3024_s1 + $0x230] sm:$0xff]  }
  0x56   : > { %2195 = vmatpush3.bf16.msra.mxu0 %v2413_v5  ;;  %2183 = vmatmul.mubr.bf16.gmra.mxu1 %v712_v6  ;;  %v1891_v5 = vld [vmem:[%s2586_s28 + $0x1c] sm:$0xff]  ;;  %v1892_v6 = vld [vmem:[%s2586_s28 + $0x24] sm:$0xff] }
  0x57   : > { %2223 = vmatpush3.bf16.msra.mxu1 %v2414_v7  ;;  %2196 = vmatprep.subr.bf16.mxu0 %v2473_v1  ;;  %v1920_v7 = vld [vmem:[%s2586_s28 + $0x1d] sm:$0xff]  ;;  %v1120_v9 = vpack.c.bf16 %v1892_v6, %v1891_v5 }
  0x58   : > { %2224 = vmatprep.subr.bf16.mxu1 %v2473_v1  ;;  %2158 = vmatprep.mubr.msk.bf16.mxu0 %vm2474_vm0, %v2473_v1 }
  0x59   : > { %2186 = vmatprep.mubr.msk.bf16.mxu1 %vm2474_vm0, %v2473_v1 }
  0x5a   : > { %2197 = vmatpush3.bf16.msra.mxu0 %v2415_v8  ;;  %v1921_v8 = vld [vmem:[%s2586_s28 + $0x25] sm:$0xff] }
  0x5b   : > { %2225 = vmatpush3.bf16.msra.mxu1 %v2416_v10  ;;  %2198 = vmatprep.subr.bf16.mxu0 %v2473_v1  ;;  %v2443_v10 = vld [vmem:[%s3024_s1 + $0x228] sm:$0xff]  }
  0x5c   : > { %2226 = vmatprep.subr.bf16.mxu1 %v2473_v1 }
  0x5d   : > { %2159 = vmatmul.mubr.bf16.gmra.mxu0 %v577_v11  ;;  %v1256_v11 = vpack.c.bf16 %v1921_v8, %v1920_v7 }
  0x5e   : > { %2199 = vmatpush3.bf16.msra.mxu0 %v2417_v12  ;;  %2187 = vmatmul.mubr.bf16.gmra.mxu1 %v713_v13  ;;  %v2444_v12 = vld [vmem:[%s3024_s1 + $0x220] sm:$0xff]   ;;  %v1893_v13 = vld [vmem:[%s2586_s28 + $0x2c] sm:$0xff] }
  0x5f   : > { %2227 = vmatpush3.bf16.msra.mxu1 %v2418_v14  ;;  %2200 = vmatprep.subr.bf16.mxu0 %v2473_v1  ;;  %v1922_v14 = vld [vmem:[%s2586_s28 + $0x2d] sm:$0xff]  ;;  %s2347_s28 = smul.u32 40, %s3034_s18 }
  0x60   : > { %2228 = vmatprep.subr.bf16.mxu1 %v2473_v1  ;;  %2206 = vmatprep.mubr.msk.bf16.mxu0 %vm2474_vm0, %v2473_v1 }
  0x61   : > { %2234 = vmatprep.mubr.msk.bf16.mxu1 %vm2474_vm0, %v2473_v1  ;;  %s3002_s22 = scalar_lea.vmem %s3027_s4, %s2347_s28  ;;  %s304_s25 = scalar_lea.vmem %s3028_s5, %s2347_s28 }
  0x62   : > { %2201 = vmatpush3.bf16.msra.mxu0 %v2419_v15  ;;  %v1121_v15 = vpack.c.bf16 %v1893_v13, %v1893_v13 }
  0x63   : > { %2229 = vmatpush3.bf16.msra.mxu1 %v2420_v16  ;;  %2202 = vmatprep.subr.bf16.mxu0 %v2473_v1  ;;  %v2445_v16 = vld [vmem:[%s3024_s1 + $0x218] sm:$0xff]  }
  0x64   : > { %2230 = vmatprep.subr.bf16.mxu1 %v2473_v1 }
  0x66   : > { %2203 = vmatpush3.bf16.msra.mxu0 %v2421_v17  ;;  %v1257_v17 = vpack.c.bf16 %v1922_v14, %v1922_v14 }
  0x67   : > { %2231 = vmatpush3.bf16.msra.mxu1 %v2422_v18  ;;  %2204 = vmatprep.subr.bf16.mxu0 %v2473_v1  ;;  %v2446_v18 = vld [vmem:[%s3024_s1 + $0x210] sm:$0xff]  }
  0x68   : > { %2232 = vmatprep.subr.bf16.mxu1 %v2473_v1 }
  0x6a   : > { %2205 = vmatpush3.bf16.msra.mxu0 %v2423_v19  ;;  %v2447_v19 = vld [vmem:[%s3024_s1 + $0x208] sm:$0xff]  }
  0x6b   : > { %2233 = vmatpush3.bf16.msra.mxu1 %v2424_v23  ;;  %2246 = vmatprep.subr.bf16.mxu0 %v2473_v1  ;;  %v1393_v23 = vpack.c.bf16 %v1951_v22, %v1951_v22 }
  0x6c   : > { %2274 = vmatprep.subr.bf16.mxu1 %v2473_v1 }
  0x6d   : > { %2207 = vmatmul.mubr.bf16.vlgmr.msra.gmra.mxu0 %v847_v24 }
  0x6e   : > { %2235 = vmatmul.mubr.bf16.vlgmr.msra.gmra.mxu1 %v983_v25  ;;  %2247 = vmatpush3.bf16.msra.mxu0 %v2425_v26 }
  0x6f   : > { %2275 = vmatpush3.bf16.msra.mxu1 %v2426_v27  ;;  %2248 = vmatprep.subr.bf16.mxu0 %v2473_v1 }
  0x70   : > { %2276 = vmatprep.subr.bf16.mxu1 %v2473_v1  ;;  %2210 = vmatprep.mubr.msk.bf16.mxu0 %vm2474_vm0, %v2473_v1 }
  0x71   : > { %2238 = vmatprep.mubr.msk.bf16.mxu1 %vm2474_vm0, %v2473_v1 }
  0x72   : > { %2249 = vmatpush3.bf16.msra.mxu0 %v2427_v28 }
  0x73   : > { %2277 = vmatpush3.bf16.msra.mxu1 %v2428_v32  ;;  %2250 = vmatprep.subr.bf16.mxu0 %v2473_v1 }
  0x74   : > { %2278 = vmatprep.subr.bf16.mxu1 %v2473_v1 }
  0x75   : > { %2211 = vmatmul.mubr.bf16.gmra.mxu0 %v848_v33 }
  0x76   : > { %2251 = vmatpush3.bf16.msra.mxu0 %v2429_v34  ;;  %2239 = vmatmul.mubr.bf16.gmra.mxu1 %v984_v35 }
  0x77   : > { %2279 = vmatpush3.bf16.msra.mxu1 %v2430_v37  ;;  %2252 = vmatprep.subr.bf16.mxu0 %v2473_v1 }
  0x78   : > { %2280 = vmatprep.subr.bf16.mxu1 %v2473_v1  ;;  %2214 = vmatprep.mubr.msk.bf16.mxu0 %vm2474_vm0, %v2473_v1 }
  0x79   : > { %2242 = vmatprep.mubr.msk.bf16.mxu1 %vm2474_vm0, %v2473_v1 }
  0x7a   : > { %2253 = vmatpush3.bf16.msra.mxu0 %v2431_v30 }
  0x7b   : > { %2281 = vmatpush3.bf16.msra.mxu1 %v2432_v43  ;;  %2254 = vmatprep.subr.bf16.mxu0 %v2473_v1 }
  0x7c   : > { %2282 = vmatprep.subr.bf16.mxu1 %v2473_v1 }
  0x7d   : > { %2215 = vmatmul.mubr.bf16.gmra.mxu0 %v849_v46 }
  0x7e   : > { %2255 = vmatpush3.bf16.msra.mxu0 %v2433_v50  ;;  %2243 = vmatmul.mubr.bf16.gmra.mxu1 %v985_v51 }
  0x7f   : > { %2283 = vmatpush3.bf16.msra.mxu1 %v2434_v53  ;;  %2256 = vmatprep.subr.bf16.mxu0 %v2473_v1 }
  0x80   : > { %2284 = vmatprep.subr.bf16.mxu1 %v2473_v1  ;;  %2262 = vmatprep.mubr.msk.bf16.mxu0 %vm2474_vm0, %v2473_v1 }
  0x81   : > { %2290 = vmatprep.mubr.msk.bf16.mxu1 %vm2474_vm0, %v2473_v1 }
  0x82   : > { %2257 = vmatpush3.bf16.msra.mxu0 %v2435_v54 }
  0x83   : > { %2285 = vmatpush3.bf16.msra.mxu1 %v2436_v55  ;;  %2258 = vmatprep.subr.bf16.mxu0 %v2473_v1 }
  0x84   : > { %2286 = vmatprep.subr.bf16.mxu1 %v2473_v1 }
  0x86   : > { %2259 = vmatpush3.bf16.msra.mxu0 %v2437_v56 }
  0x87   : > { %2287 = vmatpush3.bf16.msra.mxu1 %v2438_v57  ;;  %2260 = vmatprep.subr.bf16.mxu0 %v2473_v1 }
  0x88   : > { %2288 = vmatprep.subr.bf16.mxu1 %v2473_v1 }
  0x8a   : > { %2261 = vmatpush3.bf16.msra.mxu0 %v2439_v58 }
  0x8b   : > { %2289 = vmatpush3.bf16.msra.mxu1 %v2440_v61  ;;  %2302 = vmatprep.subr.bf16.mxu0 %v2473_v1 }
  0x8c   : > { %2330 = vmatprep.subr.bf16.mxu1 %v2473_v1 }
  0x8d   : > { %2263 = vmatmul.mubr.bf16.vlgmr.msra.gmra.mxu0 %v1119_v0 }
  0x8e   : > { %2291 = vmatmul.mubr.bf16.vlgmr.msra.gmra.mxu1 %v1255_v2  ;;  %2303 = vmatpush3.bf16.msra.mxu0 %v2441_v3 }
  0x8f   : > { %2338 = vmatpush3.bf16.msra.mxu1 %v2441_v3  ;;  %2304 = vmatprep.subr.bf16.mxu0 %v2473_v1 }
  0x90   : > { %2331 = vmatprep.subr.bf16.mxu1 %v2473_v1  ;;  %2266 = vmatprep.mubr.msk.bf16.mxu0 %vm2474_vm0, %v2473_v1 }
  0x91   : > { %2294 = vmatprep.mubr.msk.bf16.mxu1 %vm2474_vm0, %v2473_v1 }
  0x92   : > { %2305 = vmatpush3.bf16.msra.mxu0 %v2442_v4 }
  0x93   : > { %2339 = vmatpush3.bf16.msra.mxu1 %v2442_v4  ;;  %2306 = vmatprep.subr.bf16.mxu0 %v2473_v1 }
  0x94   : > { %2332 = vmatprep.subr.bf16.mxu1 %v2473_v1 }
  0x95   : > { %2267 = vmatmul.mubr.bf16.gmra.mxu0 %v1120_v9 }
  0x96   : > { %2307 = vmatpush3.bf16.msra.mxu0 %v2443_v10  ;;  %2295 = vmatmul.mubr.bf16.gmra.mxu1 %v1256_v11 }
  0x97   : > { %2340 = vmatpush3.bf16.msra.mxu1 %v2443_v10  ;;  %2308 = vmatprep.subr.bf16.mxu0 %v2473_v1 }
  0x98   : > { %2333 = vmatprep.subr.bf16.mxu1 %v2473_v1  ;;  %2270 = vmatprep.mubr.msk.bf16.mxu0 %vm2474_vm0, %v2473_v1 }
  0x99   : > { %2298 = vmatprep.mubr.msk.bf16.mxu1 %vm2474_vm0, %v2473_v1 }
  0x9a   : > { %2309 = vmatpush3.bf16.msra.mxu0 %v2444_v12 }
  0x9b   : > { %2341 = vmatpush3.bf16.msra.mxu1 %v2444_v12  ;;  %2310 = vmatprep.subr.bf16.mxu0 %v2473_v1 }
  0x9c   : > { %2334 = vmatprep.subr.bf16.mxu1 %v2473_v1 }
  0x9d   : > { %2271 = vmatmul.mubr.bf16.gmra.mxu0 %v1121_v15 }
  0x9e   : > { %2311 = vmatpush3.bf16.msra.mxu0 %v2445_v16  ;;  %2299 = vmatmul.mubr.bf16.gmra.mxu1 %v1257_v17 }
  0x9f   : > { %2342 = vmatpush3.bf16.msra.mxu1 %v2445_v16  ;;  %2312 = vmatprep.subr.bf16.mxu0 %v2473_v1 }
  0xa0   : > { %2335 = vmatprep.subr.bf16.mxu1 %v2473_v1  ;;  %2318 = vmatprep.mubr.msk.bf16.mxu0 %vm2474_vm0, %v2473_v1 }
  0xa1   : > { %2322 = vmatprep.mubr.msk.bf16.mxu1 %vm2474_vm0, %v2473_v1 }
  0xa2   : > { %2313 = vmatpush3.bf16.msra.mxu0 %v2446_v18 }
  0xa3   : > { %2343 = vmatpush3.bf16.msra.mxu1 %v2446_v18  ;;  %2314 = vmatprep.subr.bf16.mxu0 %v2473_v1 }
  0xa4   : > { %2336 = vmatprep.subr.bf16.mxu1 %v2473_v1 }
  0xa6   : > { %2315 = vmatpush3.bf16.msra.mxu0 %v2447_v19 }
  0xa7   : > { %2344 = vmatpush3.bf16.msra.mxu1 %v2447_v19  ;;  %2316 = vmatprep.subr.bf16.mxu0 %v2473_v1 }
  0xa8   : > { %2337 = vmatprep.subr.bf16.mxu1 %v2473_v1 }
  0xaa   : > { %2317 = vmatpush3.bf16.msra.mxu0 %v2448_v21 }
  0xab   : > { %2345 = vmatpush3.bf16.msra.mxu1 %v2448_v21 }
  0xad   : > { %2319 = vmatmul.mubr.bf16.vlgmr.msra.gmra.mxu0 %v1391_v41 }
  0xae   : > { %2323 = vmatmul.mubr.bf16.vlgmr.msra.gmra.mxu1 %v1392_v49 }
  0xaf   : > { %2326 = vmatprep.mubr.msk.bf16.mxu1 %vm2474_vm0, %v2473_v1 }
  0xb6   : > { %2327 = vmatmul.mubr.bf16.gmra.mxu1 %v1393_v23 }
  0xed   : > { %v442_v24 = vpop.f32.mrf.mxu0 }
  0xee   : > { %v546_v25 = vpop.f32.mrf.mxu1 }
  0xef   : > { %v547_v26 = vadd.f32 %v546_v25, %v442_v24  ;;  %v2096_v27 = vpop.f32.mrf.mxu0 }
  0xf0   : > { %v2124_v28 = vpop.f32.mrf.mxu1 }
  0xf1   : > { %v445_v20 = vpop.f32.mrf.mxu0 }
  0xf2   : > { %v549_v29 = vpop.f32.mrf.mxu1 }
  0xf3   : > { %v550_v31 = vadd.f32 %v549_v29, %v445_v20  ;;  %v2097_v39 = vpop.f32.mrf.mxu0 }
  0xf4   : > { %v2125_v40 = vpop.f32.mrf.mxu1 }
  0xf5   : > { %v450_v41 = vpop.f32.mrf.mxu0 }
  0xf6   : > { %v554_v32 = vpop.f32.mrf.mxu1 }
  0xf7   : > { %v555_v47 = vadd.f32 %v554_v32, %v450_v41  ;;  %v2100_v48 = vpop.f32.mrf.mxu0 }
  0xf8   : > { %v2128_v49 = vpop.f32.mrf.mxu1 }
  0xf9   : > { %v453_v33 = vpop.f32.mrf.mxu0 }
  0xfa   : > { %v557_v1 = vpop.f32.mrf.mxu1 }
  0xfb   : > { %v558_v34 = vadd.f32 %v557_v1, %v453_v33  ;;  %v2101_v35 = vpop.f32.mrf.mxu0 }
  0xfc   : > { %v2129_v36 = vpop.f32.mrf.mxu1 }
  0xfd   : > { %v458_v37 = vpop.f32.mrf.mxu0 }
  0xfe   : > { %v562_v30 = vpop.f32.mrf.mxu1 }
  0xff   : > { %v563_v38 = vadd.f32 %v562_v30, %v458_v37  ;;  %v2104_v42 = vpop.f32.mrf.mxu0 }
 0x100   : > { %v2132_v43 = vpop.f32.mrf.mxu1 }
 0x101   : > { %v461_v44 = vpop.f32.mrf.mxu0 }
 0x102   : > { %v565_v45 = vpop.f32.mrf.mxu1 }
 0x103   : > { %v2105_v46 = vpop.f32.mrf.mxu0 }
 0x104   : > { %v2133_v50 = vpop.f32.mrf.mxu1 }
 0x10d   : > { %v677_v51 = vpop.f32.mrf.mxu0 }
 0x10e   : > { %v699_v52 = vadd.f32 %v677_v51, %v547_v26  ;;  %v813_v53 = vpop.f32.mrf.mxu1 }
 0x10f   : > { %v2152_v54 = vpop.f32.mrf.mxu0 }
 0x110   : > { %v2978_v55 = vadd.f32 %v813_v53, %v699_v52  ;;  %v2180_v56 = vpop.f32.mrf.mxu1 }
 0x111   : > { %v680_v57 = vpop.f32.mrf.mxu0 }
 0x112   : > { %v700_v58 = vadd.f32 %v680_v57, %v550_v31  ;;  %v816_v59 = vpop.f32.mrf.mxu1 }
 0x113   : > { %v2153_v60 = vpop.f32.mrf.mxu0 }
 0x114   : > { %v2980_v61 = vadd.f32 %v816_v59, %v700_v58  ;;  %v2181_v62 = vpop.f32.mrf.mxu1 }
 0x115   : > { %v685_v63 = vpop.f32.mrf.mxu0 }
 0x116   : > { %v701_v0 = vadd.f32 %v685_v63, %v555_v47  ;;  %v821_v2 = vpop.f32.mrf.mxu1 }
 0x117   : > { %v2156_v3 = vpop.f32.mrf.mxu0 }
 0x118   : > { %v2982_v4 = vadd.f32 %v821_v2, %v701_v0  ;;  %v2184_v5 = vpop.f32.mrf.mxu1 }
 0x119   : > { %v688_v6 = vpop.f32.mrf.mxu0 }
 0x11a   : > { %v702_v7 = vadd.f32 %v688_v6, %v558_v34  ;;  %v824_v8 = vpop.f32.mrf.mxu1 }
 0x11b   : > { %v2157_v9 = vpop.f32.mrf.mxu0 }
 0x11c   : > { %v2984_v10 = vadd.f32 %v824_v8, %v702_v7  ;;  %v2185_v11 = vpop.f32.mrf.mxu1 }
 0x11d   : > { %v693_v12 = vpop.f32.mrf.mxu0 }
 0x11e   : > { %v703_v13 = vadd.f32 %v693_v12, %v563_v38  ;;  %v829_v14 = vpop.f32.mrf.mxu1 }
 0x11f   : > { %v2160_v15 = vpop.f32.mrf.mxu0 }
 0x120   : > { %v2986_v16 = vadd.f32 %v829_v14, %v703_v13  ;;  %v2188_v17 = vpop.f32.mrf.mxu1 }
 0x121   : > { %v696_v18 = vpop.f32.mrf.mxu0 }
 0x122   : > { %v832_v19 = vpop.f32.mrf.mxu1 }
 0x123   : > { %v2161_v21 = vpop.f32.mrf.mxu0 }
 0x124   : > { %v2189_v22 = vpop.f32.mrf.mxu1 }
 0x12d   : > { %v949_v23 = vpop.f32.mrf.mxu0 }
 0x12e   : > { %v1085_v24 = vpop.f32.mrf.mxu1  ;;  %v971_v6 = vadd.f32 %v949_v23, %v2978_v55 }
 0x12f   : > { %v2208_v25 = vpop.f32.mrf.mxu0 }
 0x130   : > { %v2236_v26 = vpop.f32.mrf.mxu1  ;;  %v1107_v12 = vadd.f32 %v1085_v24, %v971_v6  ;;  %v1550_v24 = vpop.permute.xlu1 %1549  ;;  %v1571_v6 = vld [vmem:[%s3002_s22 + $0x20] sm:$0xff] }
 0x131   : > { %v952_v27 = vpop.f32.mrf.mxu0  ;;  %v1540_v26 = vpop.permute.xlu0 %1539 }
 0x132   : > { %v1088_v28 = vpop.f32.mrf.mxu1  ;;  %v972_v13 = vadd.f32 %v952_v27, %v2980_v61  ;;  %v1976_v61 = vld [vmem:[%s3025_s2] ss:$0 sm:$0xff] }
 0x133   : > { %v2209_v20 = vpop.f32.mrf.mxu0 }
 0x134   : > { %v2237_v29 = vpop.f32.mrf.mxu1  ;;  %v1108_v19 = vadd.f32 %v1088_v28, %v972_v13 }
 0x135   : > { %v957_v31 = vpop.f32.mrf.mxu0 }
 0x136   : > { %v1093_v39 = vpop.f32.mrf.mxu1  ;;  %v973_v8 = vadd.f32 %v957_v31, %v2982_v4 }
 0x137   : > { %v2212_v40 = vpop.f32.mrf.mxu0 }
 0x138   : > { %v2240_v41 = vpop.f32.mrf.mxu1  ;;  %v1109_v14 = vadd.f32 %v1093_v39, %v973_v8 }
 0x139   : > { %v960_v32 = vpop.f32.mrf.mxu0 }
 0x13a   : > { %v1096_v47 = vpop.f32.mrf.mxu1  ;;  %v974_v15 = vadd.f32 %v960_v32, %v2984_v10 }
 0x13b   : > { %v2213_v48 = vpop.f32.mrf.mxu0 }
 0x13c   : > { %v2241_v49 = vpop.f32.mrf.mxu1  ;;  %v1110_v21 = vadd.f32 %v1096_v47, %v974_v15  ;;  %v1567_v47 = vld [vmem:[%s3002_s22] sm:$0xff] }
 0x13d   : > { %v965_v33 = vpop.f32.mrf.mxu0 }
 0x13e   : > { %v1101_v1 = vpop.f32.mrf.mxu1  ;;  %v975_v22 = vadd.f32 %v965_v33, %v2986_v16 }
 0x13f   : > { %v2216_v34 = vpop.f32.mrf.mxu0 }
 0x140   : > { %v2244_v35 = vpop.f32.mrf.mxu1  ;;  %v1111_v27 = vadd.f32 %v1101_v1, %v975_v22  ;;  %v1569_v34 = vld [vmem:[%s3002_s22 + $0x10] sm:$0xff] }
 0x141   : > { %v968_v36 = vpop.f32.mrf.mxu0 }
 0x142   : > { %v1104_v37 = vpop.f32.mrf.mxu1 }
 0x143   : > { %v2217_v30 = vpop.f32.mrf.mxu0  ;;  %v1545_v37 = vpop.permute.xlu0 %1544 }
 0x144   : > { %v2245_v38 = vpop.f32.mrf.mxu1 }
 0x14d   : > { %v1221_v42 = vpop.f32.mrf.mxu0 }
 0x14e   : > { %v1357_v43 = vpop.f32.mrf.mxu1  ;;  %v1243_v17 = vadd.f32 %v1221_v42, %v1107_v12 }
 0x14f   : > { %v2264_v44 = vpop.f32.mrf.mxu0 }
 0x150   : > { %v2292_v45 = vpop.f32.mrf.mxu1  ;;  %v1379_v55 = vadd.f32 %v1357_v43, %v1243_v17 }
 0x151   : > { %v1224_v46 = vpop.f32.mrf.mxu0  ;;  %v1555_v45 = vpop.permute.xlu1 %1554 }
 0x152   : > { %v1360_v50 = vpop.f32.mrf.mxu1  ;;  %v1244_v23 = vadd.f32 %v1224_v46, %v1108_v19 }
 0x153   : > { %v2265_v51 = vpop.f32.mrf.mxu0 }
 0x154   : > { %v2293_v52 = vpop.f32.mrf.mxu1  ;;  %v1380_v31 = vadd.f32 %v1360_v50, %v1244_v23  ;;  %v1568_v51 = vld [vmem:[%s3002_s22 + $0x8] sm:$0xff] }
 0x155   : > { %v1229_v53 = vpop.f32.mrf.mxu0 }
 0x156   : > { %v1365_v54 = vpop.f32.mrf.mxu1  ;;  %v1245_v18 = vadd.f32 %v1229_v53, %v1109_v14 }
 0x157   : > { %v2268_v56 = vpop.f32.mrf.mxu0 }
 0x158   : > { %v2296_v57 = vpop.f32.mrf.mxu1  ;;  %v1381_v25 = vadd.f32 %v1365_v54, %v1245_v18  ;;  %v1570_v56 = vld [vmem:[%s3002_s22 + $0x18] sm:$0xff] }
 0x159   : > { %v1232_v58 = vpop.f32.mrf.mxu0 }
 0x15a   : > { %v1368_v59 = vpop.f32.mrf.mxu1  ;;  %v1246_v4 = vadd.f32 %v1232_v58, %v1110_v21 }
 0x15b   : > { %v2269_v60 = vpop.f32.mrf.mxu0 }
 0x15c   : > { %v2297_v62 = vpop.f32.mrf.mxu1  ;;  %v1382_v41 = vadd.f32 %v1368_v59, %v1246_v4 }
 0x15d   : > { %v1237_v63 = vpop.f32.mrf.mxu0 }
 0x15e   : > { %v1373_v0 = vpop.f32.mrf.mxu1  ;;  %v1247_v32 = vadd.f32 %v1237_v63, %v1111_v27 }
 0x15f   : > { %v2272_v2 = vpop.f32.mrf.mxu0 }
 0x160   : > { %v2300_v3 = vpop.f32.mrf.mxu1  ;;  %v1383_v46 = vadd.f32 %v1373_v0, %v1247_v32 }
 0x161   : > { %v1240_v5 = vpop.f32.mrf.mxu0  ;;  %v1560_v3 = vpop.permute.xlu0 %1559 }
 0x162   : > { %v1376_v7 = vpop.f32.mrf.mxu1 }
 0x163   : > { %v2273_v9 = vpop.f32.mrf.mxu0 }
 0x164   : > { %v2301_v11 = vpop.f32.mrf.mxu1 }
 0x16d   : > { %v1493_v20 = vpop.f32.mrf.mxu0 }
 0x16e   : > { %v1515_v10 = vadd.f32 %v1493_v20, %v1379_v55  ;;  %v1501_v16 = vpop.f32.mrf.mxu1 }
 0x16f   : > { %v1517_v28 = vadd.f32 %v1501_v16, %v1381_v25  ;;  %v2320_v29 = vpop.f32.mrf.mxu0 }
 0x170   : > { %v1527_v39 = vadd.f32 %v1976_v61, %v1515_v10  ;;  %v2324_v40 = vpop.f32.mrf.mxu1 }
 0x171   : > { %v1529_v48 = vadd.f32 %v1976_v61, %v1517_v28  ;;  %v1496_v49 = vpop.f32.mrf.mxu0 }
 0x172   : > { %v1562_v33 = vmul.f32 %v1540_v26, %v1527_v39  ;;  %v1516_v35 = vadd.f32 %v1496_v49, %v1380_v31  ;;  %v1504_v36 = vpop.f32.mrf.mxu1 }
 0x173   : > { %v1564_v30 = vmul.f32 %v1550_v24, %v1529_v48  ;;  %v1518_v1 = vadd.f32 %v1504_v36, %v1382_v41  ;;  %v2321_v38 = vpop.f32.mrf.mxu0 }
 0x174   : > { %v1572_v42 = vadd.f32 %v1567_v47, %v1562_v33  ;;  %v1528_v43 = vadd.f32 %v1976_v61, %v1516_v35  ;;  %v2325_v44 = vpop.f32.mrf.mxu1 }
 0x175   : > { %v1574_v50 = vadd.f32 %v1569_v34, %v1564_v30  ;;  %v1530_v52 = vadd.f32 %v1976_v61, %v1518_v1 }
 0x176   : > { %v1577_v53 = vmax.f32 %v1572_v42, 0.0  ;;  %v1563_v54 = vmul.f32 %v1545_v37, %v1528_v43  ;;  %v1509_v57 = vpop.f32.mrf.mxu1 }
 0x177   : > { %v1579_v58 = vmax.f32 %v1574_v50, 0.0  ;;  %v1565_v59 = vmul.f32 %v1555_v45, %v1530_v52  ;;  %v1519_v60 = vadd.f32 %v1509_v57, %v1383_v46 }
 0x178   : > { %1582 = vst [vmem:[%s304_s25] sm:$0xff] %v1577_v53  ;;  %v1573_v62 = vadd.f32 %v1568_v51, %v1563_v54  ;;  %v2328_v63 = vpop.f32.mrf.mxu1 }
 0x179   : > { %1584 = vst [vmem:[%s304_s25 + $0x10] sm:$0xff] %v1579_v58  ;;  %v1575_v0 = vadd.f32 %v1570_v56, %v1565_v59  ;;  %v1531_v2 = vadd.f32 %v1976_v61, %v1519_v60 }
 0x17a   : > { %v1578_v5 = vmax.f32 %v1573_v62, 0.0  ;;  %v1512_v7 = vpop.f32.mrf.mxu1 }
 0x17b   : > { %v1580_v8 = vmax.f32 %v1575_v0, 0.0  ;;  %v1566_v9 = vmul.f32 %v1560_v3, %v1531_v2 }
 0x17c   : > { %1583 = vst [vmem:[%s304_s25 + $0x8] sm:$0xff] %v1578_v5  ;;  %v2329_v11 = vpop.f32.mrf.mxu1 }
 0x17d   : > { %1585 = vst [vmem:[%s304_s25 + $0x18] sm:$0xff] %v1580_v8  ;;  %v1576_v12 = vadd.f32 %v1571_v6, %v1566_v9 }
 0x17f   : > { %v1581_v13 = vmax.f32 %v1576_v12, 0.0 }
 0x181   : > { %1586 = vst [vmem:[%s304_s25 + $0x20] sm:$0xff] %v1581_v13 }
 0x182 PF: > { %s15_s20 = sadd.s32 1, %s2471_s20   ;;  %s3029_s18 = smov %s2467_s19 }
 0x183   : > { %p12_p5 = scmp.ge.s32.totalorder %s15_s20, 4   ;;  %s3030_s19 = smov %s3032_s21 }
 0x185   :  { %14 = sbr.rel (!%p12_p5) target bundleno = 2 (0x2), region = 93 }

</bundles_post_ra>
